<compile_context>
chip_gen: v6e
topology: v6e:2x2x1
jax: 0.10.0
libtpu: 0.0.40
codegen_flags: <defaults>
</compile_context>

<pallas_src>
import jax
import jax.numpy as jnp
from jax import lax
from jax.experimental import pallas as pl
from jax.experimental.pallas import tpu as pltpu


def _round_up(x, m):
    return (x + m - 1) // m * m


# ------------------------------ Pallas kernel ------------------------------

def _make_bilstm_kernel(apply_mask: bool, T: int, Bp: int, H: int):
    """Fused bidirectional LSTM layer: both directions interleaved in one body.

    All arrays are time-major and flattened to [T*Bp, ...] (Bp = batch padded
    to a multiple of 8 sublanes); weights are pre-transposed / gate-permuted
    host-side so the kernel only does lane-aligned slices.
    """

    def kernel(*refs):
        if apply_mask:
            (x_ref, wih_ref, whhf_ref, whhb_ref, b_ref, mask_ref,
             out_ref, gx_ref) = refs
        else:
            (x_ref, wih_ref, whhf_ref, whhb_ref, b_ref,
             out_ref, gx_ref) = refs
            mask_ref = None

        cdt = wih_ref.dtype          # matmul compute dtype (bf16 or f32)

        # (1) Hoisted input projection for BOTH directions: a single
        #     [T*Bp, Din] @ [Din, 8H] MXU GEMM + one bias broadcast, outside
        #     the serial loop.  Gates / accumulation stay f32.
        gx_ref[...] = (
            jnp.dot(x_ref[...], wih_ref[...],
                    preferred_element_type=jnp.float32)
            + b_ref[...])

        # (2) Serial recurrence: only h @ W_hh per chain per step.  Forward
        #     and backward chains are independent, so interleaving them lets
        #     one chain's MXU/EUP work hide the other's dependency latency.
        #     h/c are carried in vregs (loop carry), not VMEM.
        def step(s, carry):
            h_f, c_f, h_b, c_b = carry
            row_f = pl.multiple_of(s * Bp, Bp)                # fwd time index s
            row_b = pl.multiple_of((T - 1 - s) * Bp, Bp)      # bwd time index

            g_f = gx_ref[pl.ds(row_f, Bp), pl.ds(0, 4 * H)] + jnp.dot(
                h_f.astype(cdt), whhf_ref[...],
                preferred_element_type=jnp.float32)
            g_b = gx_ref[pl.ds(row_b, Bp), pl.ds(4 * H, 4 * H)] + jnp.dot(
                h_b.astype(cdt), whhb_ref[...],
                preferred_element_type=jnp.float32)

            # Gate order is (i, f, o | g): one sigmoid over 3H, one tanh over H.
            sg_f = jax.nn.sigmoid(g_f[:, :3 * H])
            gg_f = jnp.tanh(g_f[:, 3 * H:])
            sg_b = jax.nn.sigmoid(g_b[:, :3 * H])
            gg_b = jnp.tanh(g_b[:, 3 * H:])

            c_f = sg_f[:, H:2 * H] * c_f + sg_f[:, :H] * gg_f
            c_b = sg_b[:, H:2 * H] * c_b + sg_b[:, :H] * gg_b
            h_f = sg_f[:, 2 * H:3 * H] * jnp.tanh(c_f)
            h_b = sg_b[:, 2 * H:3 * H] * jnp.tanh(c_b)

            # (3) Fused mask at the store (last layer only): one free VPU mul
            #     on data already in vregs; no post-loop output pass.
            o_f, o_b = h_f, h_b
            if apply_mask:
                o_f = o_f * mask_ref[pl.ds(row_f, Bp), :]
                o_b = o_b * mask_ref[pl.ds(row_b, Bp), :]
            out_ref[pl.ds(row_f, Bp), pl.ds(0, H)] = o_f.astype(out_ref.dtype)
            out_ref[pl.ds(row_b, Bp), pl.ds(H, H)] = o_b.astype(out_ref.dtype)
            return (h_f, c_f, h_b, c_b)

        z = jnp.zeros((Bp, H), jnp.float32)
        lax.fori_loop(0, T, step, (z, z, z, z),
                      unroll=(True if T <= 16 else 4))

    return kernel


# -------------------------------- wrappers ---------------------------------

def bilstm_layer(x_2d, w_ih_cat, w_hh_f, w_hh_b, b_cat, T, Bp, mask_2d=None,
                 out_dtype=jnp.float32):
    """One fused bidirectional LSTM layer.

    x_2d:     [T*Bp, Din_pad]  time-major, batch padded, compute dtype
    w_ih_cat: [Din_pad, 8H]    fwd cols [0:4H], bwd cols [4H:8H], gate order (i,f,o,g)
    w_hh_f/b: [H, 4H]          per direction, gate order (i,f,o,g)
    b_cat:    [1, 8H]          f32, (b_ih + b_hh), both directions
    mask_2d:  [T*Bp, 1] f32 or None (mask fused into the per-step store)
    Returns   [T*Bp, 2H] out_dtype with fwd hiddens in [:, :H], bwd in [:, H:].
    """
    TB, din_pad = x_2d.shape
    H = w_hh_f.shape[0]
    assert TB == T * Bp and Bp % 8 == 0
    assert H % 128 == 0 and din_pad % 128 == 0

    apply_mask = mask_2d is not None
    args = [x_2d, w_ih_cat, w_hh_f, w_hh_b, b_cat]
    if apply_mask:
        args.append(mask_2d)

    wbytes = jnp.dtype(w_ih_cat.dtype).itemsize
    cost = pl.CostEstimate(
        flops=2 * TB * din_pad * 8 * H + 2 * 2 * TB * H * 4 * H,
        transcendentals=2 * TB * 5 * H,
        bytes_accessed=(x_2d.size * jnp.dtype(x_2d.dtype).itemsize
                        + (w_ih_cat.size + w_hh_f.size + w_hh_b.size) * wbytes
                        + b_cat.size * 4
                        + TB * 2 * H * jnp.dtype(out_dtype).itemsize
                        + (mask_2d.size * 4 if apply_mask else 0)),
    )

    return pl.pallas_call(
        _make_bilstm_kernel(apply_mask, T, Bp, H),
        out_shape=jax.ShapeDtypeStruct((TB, 2 * H), out_dtype),
        # No grid: whole (small) arrays resident in VMEM; gx scratch holds the
        # hoisted input projection for both directions.
        scratch_shapes=[pltpu.VMEM((TB, 8 * H), jnp.float32)],
        compiler_params=pltpu.CompilerParams(
            vmem_limit_bytes=48 * 1024 * 1024,   # safe on v7x (64 MiB physical)
        ),
        cost_estimate=cost,
    )(*args)


def _prepare_layer_params(p, compute_dtype):
    """torch-layout params -> kernel layout (gate permute, transpose, pad, cat)."""
    H = p["w_hh"].shape[2]
    # torch gate order (i, f, g, o) -> kernel order (i, f, o, g)
    perm = jnp.concatenate([jnp.arange(0, 2 * H),
                            jnp.arange(3 * H, 4 * H),
                            jnp.arange(2 * H, 3 * H)])
    w_ih = p["w_ih"][:, perm, :]                     # [2, 4H, Din]
    w_hh = p["w_hh"][:, perm, :]                     # [2, 4H, H]
    bias = (p["b_ih"] + p["b_hh"])[:, perm]          # [2, 4H]

    din = w_ih.shape[2]
    din_pad = _round_up(din, 128)                    # lane-dense contraction
    w_ih_t = jnp.transpose(w_ih, (0, 2, 1))          # [2, Din, 4H]
    if din_pad != din:
        w_ih_t = jnp.pad(w_ih_t, ((0, 0), (0, din_pad - din), (0, 0)))
    w_ih_cat = jnp.concatenate([w_ih_t[0], w_ih_t[1]], axis=1)   # [Din_pad, 8H]

    w_hh_f = jnp.transpose(w_hh[0])                  # [H, 4H]
    w_hh_b = jnp.transpose(w_hh[1])
    b_cat = jnp.concatenate([bias[0], bias[1]]).reshape(1, 8 * H).astype(jnp.float32)
    return (w_ih_cat.astype(compute_dtype), w_hh_f.astype(compute_dtype),
            w_hh_b.astype(compute_dtype), b_cat, din_pad)


def sent_encoder_forward(sent_reps, sent_masks, params,
                         compute_dtype=jnp.bfloat16):
    """sent_reps: [B, S, D] f32, sent_masks: [B, S] -> [B, S, 2H] f32."""
    B, S, D = sent_reps.shape
    H = params[0]["w_hh"].shape[2]
    Bp = _round_up(B, 8)                             # sublane-aligned batch
    pad_b = Bp - B

    # Time-major, batch-padded, flattened to lane-dense 2-D slabs.
    x_tm = jnp.transpose(sent_reps, (1, 0, 2))
    if pad_b:
        x_tm = jnp.pad(x_tm, ((0, 0), (0, pad_b), (0, 0)))
    layer_in = x_tm.reshape(S * Bp, D)

    mask_tm = jnp.transpose(sent_masks, (1, 0)).astype(jnp.float32)
    if pad_b:
        mask_tm = jnp.pad(mask_tm, ((0, 0), (0, pad_b)))
    mask_2d = mask_tm.reshape(S * Bp, 1)

    n_layers = len(params)
    for li, p in enumerate(params):
        w_ih_cat, w_hh_f, w_hh_b, b_cat, din_pad = _prepare_layer_params(
            p, compute_dtype)
        din = layer_in.shape[1]
        if din_pad != din:
            layer_in = jnp.pad(layer_in, ((0, 0), (0, din_pad - din)))
        last = li == n_layers - 1
        layer_in = bilstm_layer(
            layer_in.astype(compute_dtype), w_ih_cat, w_hh_f, w_hh_b, b_cat,
            S, Bp, mask_2d if last else None,
            out_dtype=jnp.float32 if last else compute_dtype)

    # Drop padded batch rows; back to batch-first.
    out_tm = layer_in.reshape(S, Bp, 2 * H)[:, :B, :]
    return jnp.transpose(out_tm, (1, 0, 2))


# ----------------------------- parameter init ------------------------------

def init_lstm_params(key, input_size, hidden_size, num_layers):
    """torch.nn.LSTM-style uniform(-1/sqrt(H), 1/sqrt(H)) init in torch layout:
    w_ih [2, 4H, Din], w_hh [2, 4H, H], b_ih/b_hh [2, 4H]; gate order (i,f,g,o)."""
    bound = hidden_size ** -0.5
    params = []
    for layer in range(num_layers):
        d_in = input_size if layer == 0 else 2 * hidden_size
        w_ih, w_hh, b_ih, b_hh = [], [], [], []
        for _ in range(2):                       # fwd, bwd
            key, k1, k2, k3, k4 = jax.random.split(key, 5)
            w_ih.append(jax.random.uniform(k1, (4 * hidden_size, d_in),
                                           jnp.float32, -bound, bound))
            w_hh.append(jax.random.uniform(k2, (4 * hidden_size, hidden_size),
                                           jnp.float32, -bound, bound))
            b_ih.append(jax.random.uniform(k3, (4 * hidden_size,),
                                           jnp.float32, -bound, bound))
            b_hh.append(jax.random.uniform(k4, (4 * hidden_size,),
                                           jnp.float32, -bound, bound))
        params.append(dict(w_ih=jnp.stack(w_ih), w_hh=jnp.stack(w_hh),
                           b_ih=jnp.stack(b_ih), b_hh=jnp.stack(b_hh)))
    return params


# ---------------------------- pure-JAX reference ---------------------------

def _ref_lstm_dir(x_tm, w_ih, w_hh, b, H):
    Bsz = x_tm.shape[1]

    def step(carry, x_t):
        h, c = carry
        g = x_t @ w_ih.T + h @ w_hh.T + b
        i_g = jax.nn.sigmoid(g[:, :H])
        f_g = jax.nn.sigmoid(g[:, H:2 * H])
        g_g = jnp.tanh(g[:, 2 * H:3 * H])
        o_g = jax.nn.sigmoid(g[:, 3 * H:])
        c = f_g * c + i_g * g_g
        h = o_g * jnp.tanh(c)
        return (h, c), h

    init = (jnp.zeros((Bsz, H), jnp.float32), jnp.zeros((Bsz, H), jnp.float32))
    _, hs = lax.scan(step, init, x_tm)
    return hs


def ref_forward(sent_reps, sent_masks, params):
    H = params[0]["w_hh"].shape[2]
    x_tm = jnp.transpose(sent_reps, (1, 0, 2))
    layer_in = x_tm
    for p in params:
        b_f = p["b_ih"][0] + p["b_hh"][0]
        b_b = p["b_ih"][1] + p["b_hh"][1]
        h_f = _ref_lstm_dir(layer_in, p["w_ih"][0], p["w_hh"][0], b_f, H)
        h_b = _ref_lstm_dir(layer_in[::-1], p["w_ih"][1], p["w_hh"][1],
                            b_b, H)[::-1]
        layer_in = jnp.concatenate([h_f, h_b], axis=-1)
    out = jnp.transpose(layer_in, (1, 0, 2))
    return out * sent_masks[..., None]


# ---------------------------------- main -----------------------------------

if __name__ == "__main__":
    B, S = 2, 8               # documents, sentences per document
    SENT_REP_SIZE = 64        # sent_rep_size
    SENT_HIDDEN = 128         # sent_hidden_size (multiple of 128; prod default 256)
    NUM_LAYERS = 2            # sent_num_layers

    key = jax.random.PRNGKey(0)
    k_x, k_m, k_p = jax.random.split(key, 3)

    sent_reps = jax.random.normal(k_x, (B, S, SENT_REP_SIZE), jnp.float32)
    sent_masks = (jax.random.uniform(k_m, (B, S)) > 0.3).astype(jnp.float32)
    params = init_lstm_params(k_p, SENT_REP_SIZE, SENT_HIDDEN, NUM_LAYERS)

    expected = jax.block_until_ready(ref_forward(sent_reps, sent_masks, params))

    # f32 matmul path (strict-accuracy reference path)
    out_f32 = jax.block_until_ready(
        sent_encoder_forward(sent_reps, sent_masks, params,
                             compute_dtype=jnp.float32))
    assert out_f32.shape == (B, S, 2 * SENT_HIDDEN), out_f32.shape
    err = float(jnp.max(jnp.abs(out_f32 - expected)))
    assert err < 3e-2, f"f32 kernel mismatch vs reference (max abs err {err})"

    # bf16 MXU path (default; bf16-native on v5e/v6e/v7x). Gate/cell math f32.
    out_bf16 = jax.block_until_ready(
        sent_encoder_forward(sent_reps, sent_masks, params))
    err_bf16 = float(jnp.max(jnp.abs(out_bf16 - expected)))
    assert err_bf16 < 1e-1, f"bf16 kernel mismatch vs reference (max abs err {err_bf16})"

    print("KERNEL_OK")
</pallas_src>

<mosaic_0001>
module attributes {stable_mosaic.version = 11 : i64} {
  func.func @kernel(%arg0: memref<64x128xf32, #tpu.memory_space<vmem>>, %arg1: memref<128x1024xf32, #tpu.memory_space<vmem>>, %arg2: memref<128x512xf32, #tpu.memory_space<vmem>>, %arg3: memref<128x512xf32, #tpu.memory_space<vmem>>, %arg4: memref<1x1024xf32, #tpu.memory_space<vmem>>, %arg5: memref<64x256xf32, #tpu.memory_space<vmem>>, %arg6: memref<64x1024xf32, #tpu.memory_space<vmem>>) attributes {dimension_semantics = [], scalar_prefetch = 0 : i64, scratch_operands = 1 : i64, tpu.core_type = #tpu.core_type<tc>} {
    %c0 = arith.constant 0 : index
    %c0_0 = arith.constant 0 : index
    %0 = vector.load %arg0[%c0, %c0_0] : memref<64x128xf32, #tpu.memory_space<vmem>>, vector<64x128xf32>
    %c0_1 = arith.constant 0 : index
    %c0_2 = arith.constant 0 : index
    %1 = vector.load %arg1[%c0_1, %c0_2] : memref<128x1024xf32, #tpu.memory_space<vmem>>, vector<128x1024xf32>
    %cst = arith.constant dense<0.000000e+00> : vector<64x1024xf32>
    %2 = tpu.matmul %0, %1, %cst {dimension_numbers = #tpu.dot_dimension_numbers<[1], [0], [0], [1], [0, 0, 1, 1], [], []>} : vector<64x128xf32>, vector<128x1024xf32>, vector<64x1024xf32> -> vector<64x1024xf32>
    %c0_3 = arith.constant 0 : index
    %c0_4 = arith.constant 0 : index
    %3 = vector.load %arg4[%c0_3, %c0_4] : memref<1x1024xf32, #tpu.memory_space<vmem>>, vector<1x1024xf32>
    %4 = vector.broadcast %3 : vector<1x1024xf32> to vector<64x1024xf32>
    %5 = arith.addf %2, %4 : vector<64x1024xf32>
    %c0_5 = arith.constant 0 : index
    %c0_6 = arith.constant 0 : index
    %6 = vector.load %arg6[%c0_5, %c0_6] : memref<64x1024xf32, #tpu.memory_space<vmem>>, vector<64x1024xf32>
    tpu.vector_store %arg6[%c0_5, %c0_6], %5 {strides = array<i32>} : memref<64x1024xf32, #tpu.memory_space<vmem>>, vector<64x1024xf32>,
    %cst_7 = arith.constant 0.000000e+00 : f32
    %7 = vector.broadcast %cst_7 : f32 to vector<8x128xf32>
    %c0_i32 = arith.constant 0 : i32
    %c8_i32 = arith.constant 8 : i32
    %8 = arith.muli %c0_i32, %c8_i32 : i32
    %9 = tpu.assume_multiple %8, 8 : i32
    %c7_i32 = arith.constant 7 : i32
    %10 = arith.subi %c7_i32, %c0_i32 : i32
    %c8_i32_8 = arith.constant 8 : i32
    %11 = arith.muli %10, %c8_i32_8 : i32
    %12 = tpu.assume_multiple %11, 8 : i32
    %13 = arith.index_cast %9 : i32 to index
    %c0_9 = arith.constant 0 : index
    %14 = vector.load %arg6[%13, %c0_9] : memref<64x1024xf32, #tpu.memory_space<vmem>>, vector<8x512xf32>
    %c0_10 = arith.constant 0 : index
    %c0_11 = arith.constant 0 : index
    %15 = vector.load %arg2[%c0_10, %c0_11] : memref<128x512xf32, #tpu.memory_space<vmem>>, vector<128x512xf32>
    %cst_12 = arith.constant dense<0.000000e+00> : vector<8x512xf32>
    %16 = tpu.matmul %7, %15, %cst_12 {dimension_numbers = #tpu.dot_dimension_numbers<[1], [0], [0], [1], [0, 0, 1, 1], [], []>} : vector<8x128xf32>, vector<128x512xf32>, vector<8x512xf32> -> vector<8x512xf32>
    %17 = arith.addf %14, %16 : vector<8x512xf32>
    %18 = arith.index_cast %12 : i32 to index
    %c512 = arith.constant 512 : index
    %19 = vector.load %arg6[%18, %c512] : memref<64x1024xf32, #tpu.memory_space<vmem>>, vector<8x512xf32>
    %c0_13 = arith.constant 0 : index
    %c0_14 = arith.constant 0 : index
    %20 = vector.load %arg3[%c0_13, %c0_14] : memref<128x512xf32, #tpu.memory_space<vmem>>, vector<128x512xf32>
    %cst_15 = arith.constant dense<0.000000e+00> : vector<8x512xf32>
    %21 = tpu.matmul %7, %20, %cst_15 {dimension_numbers = #tpu.dot_dimension_numbers<[1], [0], [0], [1], [0, 0, 1, 1], [], []>} : vector<8x128xf32>, vector<128x512xf32>, vector<8x512xf32> -> vector<8x512xf32>
    %22 = arith.addf %19, %21 : vector<8x512xf32>
    %23 = vector.extract_strided_slice %17 {offsets = [0, 0], sizes = [8, 384], strides = [1, 1]} : vector<8x512xf32> to vector<8x384xf32>
    %24 = arith.negf %23 : vector<8x384xf32>
    %25 = math.exp %24 : vector<8x384xf32>
    %cst_16 = arith.constant 1.000000e+00 : f32
    %26 = vector.broadcast %cst_16 : f32 to vector<8x384xf32>
    %27 = arith.addf %26, %25 : vector<8x384xf32>
    %28 = arith.divf %26, %27 : vector<8x384xf32>
    %29 = vector.extract_strided_slice %17 {offsets = [0, 384], sizes = [8, 128], strides = [1, 1]} : vector<8x512xf32> to vector<8x128xf32>
    %30 = math.tanh %29 : vector<8x128xf32>
    %31 = vector.extract_strided_slice %22 {offsets = [0, 0], sizes = [8, 384], strides = [1, 1]} : vector<8x512xf32> to vector<8x384xf32>
    %32 = arith.negf %31 : vector<8x384xf32>
    %33 = math.exp %32 : vector<8x384xf32>
    %cst_17 = arith.constant 1.000000e+00 : f32
    %34 = vector.broadcast %cst_17 : f32 to vector<8x384xf32>
    %35 = arith.addf %34, %33 : vector<8x384xf32>
    %36 = arith.divf %34, %35 : vector<8x384xf32>
    %37 = vector.extract_strided_slice %22 {offsets = [0, 384], sizes = [8, 128], strides = [1, 1]} : vector<8x512xf32> to vector<8x128xf32>
    %38 = math.tanh %37 : vector<8x128xf32>
    %39 = vector.extract_strided_slice %28 {offsets = [0, 128], sizes = [8, 128], strides = [1, 1]} : vector<8x384xf32> to vector<8x128xf32>
    %40 = arith.mulf %39, %7 : vector<8x128xf32>
    %41 = vector.extract_strided_slice %28 {offsets = [0, 0], sizes = [8, 128], strides = [1, 1]} : vector<8x384xf32> to vector<8x128xf32>
    %42 = arith.mulf %41, %30 : vector<8x128xf32>
    %43 = arith.addf %40, %42 : vector<8x128xf32>
    %44 = vector.extract_strided_slice %36 {offsets = [0, 128], sizes = [8, 128], strides = [1, 1]} : vector<8x384xf32> to vector<8x128xf32>
    %45 = arith.mulf %44, %7 : vector<8x128xf32>
    %46 = vector.extract_strided_slice %36 {offsets = [0, 0], sizes = [8, 128], strides = [1, 1]} : vector<8x384xf32> to vector<8x128xf32>
    %47 = arith.mulf %46, %38 : vector<8x128xf32>
    %48 = arith.addf %45, %47 : vector<8x128xf32>
    %49 = vector.extract_strided_slice %28 {offsets = [0, 256], sizes = [8, 128], strides = [1, 1]} : vector<8x384xf32> to vector<8x128xf32>
    %50 = math.tanh %43 : vector<8x128xf32>
    %51 = arith.mulf %49, %50 : vector<8x128xf32>
    %52 = vector.extract_strided_slice %36 {offsets = [0, 256], sizes = [8, 128], strides = [1, 1]} : vector<8x384xf32> to vector<8x128xf32>
    %53 = math.tanh %48 : vector<8x128xf32>
    %54 = arith.mulf %52, %53 : vector<8x128xf32>
    %55 = arith.index_cast %9 : i32 to index
    %c0_18 = arith.constant 0 : index
    %56 = vector.load %arg5[%55, %c0_18] : memref<64x256xf32, #tpu.memory_space<vmem>>, vector<8x128xf32>
    tpu.vector_store %arg5[%55, %c0_18], %51 {strides = array<i32>} : memref<64x256xf32, #tpu.memory_space<vmem>>, vector<8x128xf32>,
    %57 = arith.index_cast %12 : i32 to index
    %c128 = arith.constant 128 : index
    %58 = vector.load %arg5[%57, %c128] : memref<64x256xf32, #tpu.memory_space<vmem>>, vector<8x128xf32>
    tpu.vector_store %arg5[%57, %c128], %54 {strides = array<i32>} : memref<64x256xf32, #tpu.memory_space<vmem>>, vector<8x128xf32>,
    %c1_i32 = arith.constant 1 : i32
    %c8_i32_19 = arith.constant 8 : i32
    %59 = arith.muli %c1_i32, %c8_i32_19 : i32
    %60 = tpu.assume_multiple %59, 8 : i32
    %c7_i32_20 = arith.constant 7 : i32
    %61 = arith.subi %c7_i32_20, %c1_i32 : i32
    %c8_i32_21 = arith.constant 8 : i32
    %62 = arith.muli %61, %c8_i32_21 : i32
    %63 = tpu.assume_multiple %62, 8 : i32
    %64 = arith.index_cast %60 : i32 to index
    %c0_22 = arith.constant 0 : index
    %65 = vector.load %arg6[%64, %c0_22] : memref<64x1024xf32, #tpu.memory_space<vmem>>, vector<8x512xf32>
    %c0_23 = arith.constant 0 : index
    %c0_24 = arith.constant 0 : index
    %66 = vector.load %arg2[%c0_23, %c0_24] : memref<128x512xf32, #tpu.memory_space<vmem>>, vector<128x512xf32>
    %cst_25 = arith.constant dense<0.000000e+00> : vector<8x512xf32>
    %67 = tpu.matmul %51, %66, %cst_25 {dimension_numbers = #tpu.dot_dimension_numbers<[1], [0], [0], [1], [0, 0, 1, 1], [], []>} : vector<8x128xf32>, vector<128x512xf32>, vector<8x512xf32> -> vector<8x512xf32>
    %68 = arith.addf %65, %67 : vector<8x512xf32>
    %69 = arith.index_cast %63 : i32 to index
    %c512_26 = arith.constant 512 : index
    %70 = vector.load %arg6[%69, %c512_26] : memref<64x1024xf32, #tpu.memory_space<vmem>>, vector<8x512xf32>
    %c0_27 = arith.constant 0 : index
    %c0_28 = arith.constant 0 : index
    %71 = vector.load %arg3[%c0_27, %c0_28] : memref<128x512xf32, #tpu.memory_space<vmem>>, vector<128x512xf32>
    %cst_29 = arith.constant dense<0.000000e+00> : vector<8x512xf32>
    %72 = tpu.matmul %54, %71, %cst_29 {dimension_numbers = #tpu.dot_dimension_numbers<[1], [0], [0], [1], [0, 0, 1, 1], [], []>} : vector<8x128xf32>, vector<128x512xf32>, vector<8x512xf32> -> vector<8x512xf32>
    %73 = arith.addf %70, %72 : vector<8x512xf32>
    %74 = vector.extract_strided_slice %68 {offsets = [0, 0], sizes = [8, 384], strides = [1, 1]} : vector<8x512xf32> to vector<8x384xf32>
    %75 = arith.negf %74 : vector<8x384xf32>
    %76 = math.exp %75 : vector<8x384xf32>
    %cst_30 = arith.constant 1.000000e+00 : f32
    %77 = vector.broadcast %cst_30 : f32 to vector<8x384xf32>
    %78 = arith.addf %77, %76 : vector<8x384xf32>
    %79 = arith.divf %77, %78 : vector<8x384xf32>
    %80 = vector.extract_strided_slice %68 {offsets = [0, 384], sizes = [8, 128], strides = [1, 1]} : vector<8x512xf32> to vector<8x128xf32>
    %81 = math.tanh %80 : vector<8x128xf32>
    %82 = vector.extract_strided_slice %73 {offsets = [0, 0], sizes = [8, 384], strides = [1, 1]} : vector<8x512xf32> to vector<8x384xf32>
    %83 = arith.negf %82 : vector<8x384xf32>
    %84 = math.exp %83 : vector<8x384xf32>
    %cst_31 = arith.constant 1.000000e+00 : f32
    %85 = vector.broadcast %cst_31 : f32 to vector<8x384xf32>
    %86 = arith.addf %85, %84 : vector<8x384xf32>
    %87 = arith.divf %85, %86 : vector<8x384xf32>
    %88 = vector.extract_strided_slice %73 {offsets = [0, 384], sizes = [8, 128], strides = [1, 1]} : vector<8x512xf32> to vector<8x128xf32>
    %89 = math.tanh %88 : vector<8x128xf32>
    %90 = vector.extract_strided_slice %79 {offsets = [0, 128], sizes = [8, 128], strides = [1, 1]} : vector<8x384xf32> to vector<8x128xf32>
    %91 = arith.mulf %90, %43 : vector<8x128xf32>
    %92 = vector.extract_strided_slice %79 {offsets = [0, 0], sizes = [8, 128], strides = [1, 1]} : vector<8x384xf32> to vector<8x128xf32>
    %93 = arith.mulf %92, %81 : vector<8x128xf32>
    %94 = arith.addf %91, %93 : vector<8x128xf32>
    %95 = vector.extract_strided_slice %87 {offsets = [0, 128], sizes = [8, 128], strides = [1, 1]} : vector<8x384xf32> to vector<8x128xf32>
    %96 = arith.mulf %95, %48 : vector<8x128xf32>
    %97 = vector.extract_strided_slice %87 {offsets = [0, 0], sizes = [8, 128], strides = [1, 1]} : vector<8x384xf32> to vector<8x128xf32>
    %98 = arith.mulf %97, %89 : vector<8x128xf32>
    %99 = arith.addf %96, %98 : vector<8x128xf32>
    %100 = vector.extract_strided_slice %79 {offsets = [0, 256], sizes = [8, 128], strides = [1, 1]} : vector<8x384xf32> to vector<8x128xf32>
    %101 = math.tanh %94 : vector<8x128xf32>
    %102 = arith.mulf %100, %101 : vector<8x128xf32>
    %103 = vector.extract_strided_slice %87 {offsets = [0, 256], sizes = [8, 128], strides = [1, 1]} : vector<8x384xf32> to vector<8x128xf32>
    %104 = math.tanh %99 : vector<8x128xf32>
    %105 = arith.mulf %103, %104 : vector<8x128xf32>
    %106 = arith.index_cast %60 : i32 to index
    %c0_32 = arith.constant 0 : index
    %107 = vector.load %arg5[%106, %c0_32] : memref<64x256xf32, #tpu.memory_space<vmem>>, vector<8x128xf32>
    tpu.vector_store %arg5[%106, %c0_32], %102 {strides = array<i32>} : memref<64x256xf32, #tpu.memory_space<vmem>>, vector<8x128xf32>,
    %108 = arith.index_cast %63 : i32 to index
    %c128_33 = arith.constant 128 : index
    %109 = vector.load %arg5[%108, %c128_33] : memref<64x256xf32, #tpu.memory_space<vmem>>, vector<8x128xf32>
    tpu.vector_store %arg5[%108, %c128_33], %105 {strides = array<i32>} : memref<64x256xf32, #tpu.memory_space<vmem>>, vector<8x128xf32>,
    %c2_i32 = arith.constant 2 : i32
    %c8_i32_34 = arith.constant 8 : i32
    %110 = arith.muli %c2_i32, %c8_i32_34 : i32
    %111 = tpu.assume_multiple %110, 8 : i32
    %c7_i32_35 = arith.constant 7 : i32
    %112 = arith.subi %c7_i32_35, %c2_i32 : i32
    %c8_i32_36 = arith.constant 8 : i32
    %113 = arith.muli %112, %c8_i32_36 : i32
    %114 = tpu.assume_multiple %113, 8 : i32
    %115 = arith.index_cast %111 : i32 to index
    %c0_37 = arith.constant 0 : index
    %116 = vector.load %arg6[%115, %c0_37] : memref<64x1024xf32, #tpu.memory_space<vmem>>, vector<8x512xf32>
    %c0_38 = arith.constant 0 : index
    %c0_39 = arith.constant 0 : index
    %117 = vector.load %arg2[%c0_38, %c0_39] : memref<128x512xf32, #tpu.memory_space<vmem>>, vector<128x512xf32>
    %cst_40 = arith.constant dense<0.000000e+00> : vector<8x512xf32>
    %118 = tpu.matmul %102, %117, %cst_40 {dimension_numbers = #tpu.dot_dimension_numbers<[1], [0], [0], [1], [0, 0, 1, 1], [], []>} : vector<8x128xf32>, vector<128x512xf32>, vector<8x512xf32> -> vector<8x512xf32>
    %119 = arith.addf %116, %118 : vector<8x512xf32>
    %120 = arith.index_cast %114 : i32 to index
    %c512_41 = arith.constant 512 : index
    %121 = vector.load %arg6[%120, %c512_41] : memref<64x1024xf32, #tpu.memory_space<vmem>>, vector<8x512xf32>
    %c0_42 = arith.constant 0 : index
    %c0_43 = arith.constant 0 : index
    %122 = vector.load %arg3[%c0_42, %c0_43] : memref<128x512xf32, #tpu.memory_space<vmem>>, vector<128x512xf32>
    %cst_44 = arith.constant dense<0.000000e+00> : vector<8x512xf32>
    %123 = tpu.matmul %105, %122, %cst_44 {dimension_numbers = #tpu.dot_dimension_numbers<[1], [0], [0], [1], [0, 0, 1, 1], [], []>} : vector<8x128xf32>, vector<128x512xf32>, vector<8x512xf32> -> vector<8x512xf32>
    %124 = arith.addf %121, %123 : vector<8x512xf32>
    %125 = vector.extract_strided_slice %119 {offsets = [0, 0], sizes = [8, 384], strides = [1, 1]} : vector<8x512xf32> to vector<8x384xf32>
    %126 = arith.negf %125 : vector<8x384xf32>
    %127 = math.exp %126 : vector<8x384xf32>
    %cst_45 = arith.constant 1.000000e+00 : f32
    %128 = vector.broadcast %cst_45 : f32 to vector<8x384xf32>
    %129 = arith.addf %128, %127 : vector<8x384xf32>
    %130 = arith.divf %128, %129 : vector<8x384xf32>
    %131 = vector.extract_strided_slice %119 {offsets = [0, 384], sizes = [8, 128], strides = [1, 1]} : vector<8x512xf32> to vector<8x128xf32>
    %132 = math.tanh %131 : vector<8x128xf32>
    %133 = vector.extract_strided_slice %124 {offsets = [0, 0], sizes = [8, 384], strides = [1, 1]} : vector<8x512xf32> to vector<8x384xf32>
    %134 = arith.negf %133 : vector<8x384xf32>
    %135 = math.exp %134 : vector<8x384xf32>
    %cst_46 = arith.constant 1.000000e+00 : f32
    %136 = vector.broadcast %cst_46 : f32 to vector<8x384xf32>
    %137 = arith.addf %136, %135 : vector<8x384xf32>
    %138 = arith.divf %136, %137 : vector<8x384xf32>
    %139 = vector.extract_strided_slice %124 {offsets = [0, 384], sizes = [8, 128], strides = [1, 1]} : vector<8x512xf32> to vector<8x128xf32>
    %140 = math.tanh %139 : vector<8x128xf32>
    %141 = vector.extract_strided_slice %130 {offsets = [0, 128], sizes = [8, 128], strides = [1, 1]} : vector<8x384xf32> to vector<8x128xf32>
    %142 = arith.mulf %141, %94 : vector<8x128xf32>
    %143 = vector.extract_strided_slice %130 {offsets = [0, 0], sizes = [8, 128], strides = [1, 1]} : vector<8x384xf32> to vector<8x128xf32>
    %144 = arith.mulf %143, %132 : vector<8x128xf32>
    %145 = arith.addf %142, %144 : vector<8x128xf32>
    %146 = vector.extract_strided_slice %138 {offsets = [0, 128], sizes = [8, 128], strides = [1, 1]} : vector<8x384xf32> to vector<8x128xf32>
    %147 = arith.mulf %146, %99 : vector<8x128xf32>
    %148 = vector.extract_strided_slice %138 {offsets = [0, 0], sizes = [8, 128], strides = [1, 1]} : vector<8x384xf32> to vector<8x128xf32>
    %149 = arith.mulf %148, %140 : vector<8x128xf32>
    %150 = arith.addf %147, %149 : vector<8x128xf32>
    %151 = vector.extract_strided_slice %130 {offsets = [0, 256], sizes = [8, 128], strides = [1, 1]} : vector<8x384xf32> to vector<8x128xf32>
    %152 = math.tanh %145 : vector<8x128xf32>
    %153 = arith.mulf %151, %152 : vector<8x128xf32>
    %154 = vector.extract_strided_slice %138 {offsets = [0, 256], sizes = [8, 128], strides = [1, 1]} : vector<8x384xf32> to vector<8x128xf32>
    %155 = math.tanh %150 : vector<8x128xf32>
    %156 = arith.mulf %154, %155 : vector<8x128xf32>
    %157 = arith.index_cast %111 : i32 to index
    %c0_47 = arith.constant 0 : index
    %158 = vector.load %arg5[%157, %c0_47] : memref<64x256xf32, #tpu.memory_space<vmem>>, vector<8x128xf32>
    tpu.vector_store %arg5[%157, %c0_47], %153 {strides = array<i32>} : memref<64x256xf32, #tpu.memory_space<vmem>>, vector<8x128xf32>,
    %159 = arith.index_cast %114 : i32 to index
    %c128_48 = arith.constant 128 : index
    %160 = vector.load %arg5[%159, %c128_48] : memref<64x256xf32, #tpu.memory_space<vmem>>, vector<8x128xf32>
    tpu.vector_store %arg5[%159, %c128_48], %156 {strides = array<i32>} : memref<64x256xf32, #tpu.memory_space<vmem>>, vector<8x128xf32>,
    %c3_i32 = arith.constant 3 : i32
    %c8_i32_49 = arith.constant 8 : i32
    %161 = arith.muli %c3_i32, %c8_i32_49 : i32
    %162 = tpu.assume_multiple %161, 8 : i32
    %c7_i32_50 = arith.constant 7 : i32
    %163 = arith.subi %c7_i32_50, %c3_i32 : i32
    %c8_i32_51 = arith.constant 8 : i32
    %164 = arith.muli %163, %c8_i32_51 : i32
    %165 = tpu.assume_multiple %164, 8 : i32
    %166 = arith.index_cast %162 : i32 to index
    %c0_52 = arith.constant 0 : index
    %167 = vector.load %arg6[%166, %c0_52] : memref<64x1024xf32, #tpu.memory_space<vmem>>, vector<8x512xf32>
    %c0_53 = arith.constant 0 : index
    %c0_54 = arith.constant 0 : index
    %168 = vector.load %arg2[%c0_53, %c0_54] : memref<128x512xf32, #tpu.memory_space<vmem>>, vector<128x512xf32>
    %cst_55 = arith.constant dense<0.000000e+00> : vector<8x512xf32>
    %169 = tpu.matmul %153, %168, %cst_55 {dimension_numbers = #tpu.dot_dimension_numbers<[1], [0], [0], [1], [0, 0, 1, 1], [], []>} : vector<8x128xf32>, vector<128x512xf32>, vector<8x512xf32> -> vector<8x512xf32>
    %170 = arith.addf %167, %169 : vector<8x512xf32>
    %171 = arith.index_cast %165 : i32 to index
    %c512_56 = arith.constant 512 : index
    %172 = vector.load %arg6[%171, %c512_56] : memref<64x1024xf32, #tpu.memory_space<vmem>>, vector<8x512xf32>
    %c0_57 = arith.constant 0 : index
    %c0_58 = arith.constant 0 : index
    %173 = vector.load %arg3[%c0_57, %c0_58] : memref<128x512xf32, #tpu.memory_space<vmem>>, vector<128x512xf32>
    %cst_59 = arith.constant dense<0.000000e+00> : vector<8x512xf32>
    %174 = tpu.matmul %156, %173, %cst_59 {dimension_numbers = #tpu.dot_dimension_numbers<[1], [0], [0], [1], [0, 0, 1, 1], [], []>} : vector<8x128xf32>, vector<128x512xf32>, vector<8x512xf32> -> vector<8x512xf32>
    %175 = arith.addf %172, %174 : vector<8x512xf32>
    %176 = vector.extract_strided_slice %170 {offsets = [0, 0], sizes = [8, 384], strides = [1, 1]} : vector<8x512xf32> to vector<8x384xf32>
    %177 = arith.negf %176 : vector<8x384xf32>
    %178 = math.exp %177 : vector<8x384xf32>
    %cst_60 = arith.constant 1.000000e+00 : f32
    %179 = vector.broadcast %cst_60 : f32 to vector<8x384xf32>
    %180 = arith.addf %179, %178 : vector<8x384xf32>
    %181 = arith.divf %179, %180 : vector<8x384xf32>
    %182 = vector.extract_strided_slice %170 {offsets = [0, 384], sizes = [8, 128], strides = [1, 1]} : vector<8x512xf32> to vector<8x128xf32>
    %183 = math.tanh %182 : vector<8x128xf32>
    %184 = vector.extract_strided_slice %175 {offsets = [0, 0], sizes = [8, 384], strides = [1, 1]} : vector<8x512xf32> to vector<8x384xf32>
    %185 = arith.negf %184 : vector<8x384xf32>
    %186 = math.exp %185 : vector<8x384xf32>
    %cst_61 = arith.constant 1.000000e+00 : f32
    %187 = vector.broadcast %cst_61 : f32 to vector<8x384xf32>
    %188 = arith.addf %187, %186 : vector<8x384xf32>
    %189 = arith.divf %187, %188 : vector<8x384xf32>
    %190 = vector.extract_strided_slice %175 {offsets = [0, 384], sizes = [8, 128], strides = [1, 1]} : vector<8x512xf32> to vector<8x128xf32>
    %191 = math.tanh %190 : vector<8x128xf32>
    %192 = vector.extract_strided_slice %181 {offsets = [0, 128], sizes = [8, 128], strides = [1, 1]} : vector<8x384xf32> to vector<8x128xf32>
    %193 = arith.mulf %192, %145 : vector<8x128xf32>
    %194 = vector.extract_strided_slice %181 {offsets = [0, 0], sizes = [8, 128], strides = [1, 1]} : vector<8x384xf32> to vector<8x128xf32>
    %195 = arith.mulf %194, %183 : vector<8x128xf32>
    %196 = arith.addf %193, %195 : vector<8x128xf32>
    %197 = vector.extract_strided_slice %189 {offsets = [0, 128], sizes = [8, 128], strides = [1, 1]} : vector<8x384xf32> to vector<8x128xf32>
    %198 = arith.mulf %197, %150 : vector<8x128xf32>
    %199 = vector.extract_strided_slice %189 {offsets = [0, 0], sizes = [8, 128], strides = [1, 1]} : vector<8x384xf32> to vector<8x128xf32>
    %200 = arith.mulf %199, %191 : vector<8x128xf32>
    %201 = arith.addf %198, %200 : vector<8x128xf32>
    %202 = vector.extract_strided_slice %181 {offsets = [0, 256], sizes = [8, 128], strides = [1, 1]} : vector<8x384xf32> to vector<8x128xf32>
    %203 = math.tanh %196 : vector<8x128xf32>
    %204 = arith.mulf %202, %203 : vector<8x128xf32>
    %205 = vector.extract_strided_slice %189 {offsets = [0, 256], sizes = [8, 128], strides = [1, 1]} : vector<8x384xf32> to vector<8x128xf32>
    %206 = math.tanh %201 : vector<8x128xf32>
    %207 = arith.mulf %205, %206 : vector<8x128xf32>
    %208 = arith.index_cast %162 : i32 to index
    %c0_62 = arith.constant 0 : index
    %209 = vector.load %arg5[%208, %c0_62] : memref<64x256xf32, #tpu.memory_space<vmem>>, vector<8x128xf32>
    tpu.vector_store %arg5[%208, %c0_62], %204 {strides = array<i32>} : memref<64x256xf32, #tpu.memory_space<vmem>>, vector<8x128xf32>,
    %210 = arith.index_cast %165 : i32 to index
    %c128_63 = arith.constant 128 : index
    %211 = vector.load %arg5[%210, %c128_63] : memref<64x256xf32, #tpu.memory_space<vmem>>, vector<8x128xf32>
    tpu.vector_store %arg5[%210, %c128_63], %207 {strides = array<i32>} : memref<64x256xf32, #tpu.memory_space<vmem>>, vector<8x128xf32>,
    %c4_i32 = arith.constant 4 : i32
    %c8_i32_64 = arith.constant 8 : i32
    %212 = arith.muli %c4_i32, %c8_i32_64 : i32
    %213 = tpu.assume_multiple %212, 8 : i32
    %c7_i32_65 = arith.constant 7 : i32
    %214 = arith.subi %c7_i32_65, %c4_i32 : i32
    %c8_i32_66 = arith.constant 8 : i32
    %215 = arith.muli %214, %c8_i32_66 : i32
    %216 = tpu.assume_multiple %215, 8 : i32
    %217 = arith.index_cast %213 : i32 to index
    %c0_67 = arith.constant 0 : index
    %218 = vector.load %arg6[%217, %c0_67] : memref<64x1024xf32, #tpu.memory_space<vmem>>, vector<8x512xf32>
    %c0_68 = arith.constant 0 : index
    %c0_69 = arith.constant 0 : index
    %219 = vector.load %arg2[%c0_68, %c0_69] : memref<128x512xf32, #tpu.memory_space<vmem>>, vector<128x512xf32>
    %cst_70 = arith.constant dense<0.000000e+00> : vector<8x512xf32>
    %220 = tpu.matmul %204, %219, %cst_70 {dimension_numbers = #tpu.dot_dimension_numbers<[1], [0], [0], [1], [0, 0, 1, 1], [], []>} : vector<8x128xf32>, vector<128x512xf32>, vector<8x512xf32> -> vector<8x512xf32>
    %221 = arith.addf %218, %220 : vector<8x512xf32>
    %222 = arith.index_cast %216 : i32 to index
    %c512_71 = arith.constant 512 : index
    %223 = vector.load %arg6[%222, %c512_71] : memref<64x1024xf32, #tpu.memory_space<vmem>>, vector<8x512xf32>
    %c0_72 = arith.constant 0 : index
    %c0_73 = arith.constant 0 : index
    %224 = vector.load %arg3[%c0_72, %c0_73] : memref<128x512xf32, #tpu.memory_space<vmem>>, vector<128x512xf32>
    %cst_74 = arith.constant dense<0.000000e+00> : vector<8x512xf32>
    %225 = tpu.matmul %207, %224, %cst_74 {dimension_numbers = #tpu.dot_dimension_numbers<[1], [0], [0], [1], [0, 0, 1, 1], [], []>} : vector<8x128xf32>, vector<128x512xf32>, vector<8x512xf32> -> vector<8x512xf32>
    %226 = arith.addf %223, %225 : vector<8x512xf32>
    %227 = vector.extract_strided_slice %221 {offsets = [0, 0], sizes = [8, 384], strides = [1, 1]} : vector<8x512xf32> to vector<8x384xf32>
    %228 = arith.negf %227 : vector<8x384xf32>
    %229 = math.exp %228 : vector<8x384xf32>
    %cst_75 = arith.constant 1.000000e+00 : f32
    %230 = vector.broadcast %cst_75 : f32 to vector<8x384xf32>
    %231 = arith.addf %230, %229 : vector<8x384xf32>
    %232 = arith.divf %230, %231 : vector<8x384xf32>
    %233 = vector.extract_strided_slice %221 {offsets = [0, 384], sizes = [8, 128], strides = [1, 1]} : vector<8x512xf32> to vector<8x128xf32>
    %234 = math.tanh %233 : vector<8x128xf32>
    %235 = vector.extract_strided_slice %226 {offsets = [0, 0], sizes = [8, 384], strides = [1, 1]} : vector<8x512xf32> to vector<8x384xf32>
    %236 = arith.negf %235 : vector<8x384xf32>
    %237 = math.exp %236 : vector<8x384xf32>
    %cst_76 = arith.constant 1.000000e+00 : f32
    %238 = vector.broadcast %cst_76 : f32 to vector<8x384xf32>
    %239 = arith.addf %238, %237 : vector<8x384xf32>
    %240 = arith.divf %238, %239 : vector<8x384xf32>
    %241 = vector.extract_strided_slice %226 {offsets = [0, 384], sizes = [8, 128], strides = [1, 1]} : vector<8x512xf32> to vector<8x128xf32>
    %242 = math.tanh %241 : vector<8x128xf32>
    %243 = vector.extract_strided_slice %232 {offsets = [0, 128], sizes = [8, 128], strides = [1, 1]} : vector<8x384xf32> to vector<8x128xf32>
    %244 = arith.mulf %243, %196 : vector<8x128xf32>
    %245 = vector.extract_strided_slice %232 {offsets = [0, 0], sizes = [8, 128], strides = [1, 1]} : vector<8x384xf32> to vector<8x128xf32>
    %246 = arith.mulf %245, %234 : vector<8x128xf32>
    %247 = arith.addf %244, %246 : vector<8x128xf32>
    %248 = vector.extract_strided_slice %240 {offsets = [0, 128], sizes = [8, 128], strides = [1, 1]} : vector<8x384xf32> to vector<8x128xf32>
    %249 = arith.mulf %248, %201 : vector<8x128xf32>
    %250 = vector.extract_strided_slice %240 {offsets = [0, 0], sizes = [8, 128], strides = [1, 1]} : vector<8x384xf32> to vector<8x128xf32>
    %251 = arith.mulf %250, %242 : vector<8x128xf32>
    %252 = arith.addf %249, %251 : vector<8x128xf32>
    %253 = vector.extract_strided_slice %232 {offsets = [0, 256], sizes = [8, 128], strides = [1, 1]} : vector<8x384xf32> to vector<8x128xf32>
    %254 = math.tanh %247 : vector<8x128xf32>
    %255 = arith.mulf %253, %254 : vector<8x128xf32>
    %256 = vector.extract_strided_slice %240 {offsets = [0, 256], sizes = [8, 128], strides = [1, 1]} : vector<8x384xf32> to vector<8x128xf32>
    %257 = math.tanh %252 : vector<8x128xf32>
    %258 = arith.mulf %256, %257 : vector<8x128xf32>
    %259 = arith.index_cast %213 : i32 to index
    %c0_77 = arith.constant 0 : index
    %260 = vector.load %arg5[%259, %c0_77] : memref<64x256xf32, #tpu.memory_space<vmem>>, vector<8x128xf32>
    tpu.vector_store %arg5[%259, %c0_77], %255 {strides = array<i32>} : memref<64x256xf32, #tpu.memory_space<vmem>>, vector<8x128xf32>,
    %261 = arith.index_cast %216 : i32 to index
    %c128_78 = arith.constant 128 : index
    %262 = vector.load %arg5[%261, %c128_78] : memref<64x256xf32, #tpu.memory_space<vmem>>, vector<8x128xf32>
    tpu.vector_store %arg5[%261, %c128_78], %258 {strides = array<i32>} : memref<64x256xf32, #tpu.memory_space<vmem>>, vector<8x128xf32>,
    %c5_i32 = arith.constant 5 : i32
    %c8_i32_79 = arith.constant 8 : i32
    %263 = arith.muli %c5_i32, %c8_i32_79 : i32
    %264 = tpu.assume_multiple %263, 8 : i32
    %c7_i32_80 = arith.constant 7 : i32
    %265 = arith.subi %c7_i32_80, %c5_i32 : i32
    %c8_i32_81 = arith.constant 8 : i32
    %266 = arith.muli %265, %c8_i32_81 : i32
    %267 = tpu.assume_multiple %266, 8 : i32
    %268 = arith.index_cast %264 : i32 to index
    %c0_82 = arith.constant 0 : index
    %269 = vector.load %arg6[%268, %c0_82] : memref<64x1024xf32, #tpu.memory_space<vmem>>, vector<8x512xf32>
    %c0_83 = arith.constant 0 : index
    %c0_84 = arith.constant 0 : index
    %270 = vector.load %arg2[%c0_83, %c0_84] : memref<128x512xf32, #tpu.memory_space<vmem>>, vector<128x512xf32>
    %cst_85 = arith.constant dense<0.000000e+00> : vector<8x512xf32>
    %271 = tpu.matmul %255, %270, %cst_85 {dimension_numbers = #tpu.dot_dimension_numbers<[1], [0], [0], [1], [0, 0, 1, 1], [], []>} : vector<8x128xf32>, vector<128x512xf32>, vector<8x512xf32> -> vector<8x512xf32>
    %272 = arith.addf %269, %271 : vector<8x512xf32>
    %273 = arith.index_cast %267 : i32 to index
    %c512_86 = arith.constant 512 : index
    %274 = vector.load %arg6[%273, %c512_86] : memref<64x1024xf32, #tpu.memory_space<vmem>>, vector<8x512xf32>
    %c0_87 = arith.constant 0 : index
    %c0_88 = arith.constant 0 : index
    %275 = vector.load %arg3[%c0_87, %c0_88] : memref<128x512xf32, #tpu.memory_space<vmem>>, vector<128x512xf32>
    %cst_89 = arith.constant dense<0.000000e+00> : vector<8x512xf32>
    %276 = tpu.matmul %258, %275, %cst_89 {dimension_numbers = #tpu.dot_dimension_numbers<[1], [0], [0], [1], [0, 0, 1, 1], [], []>} : vector<8x128xf32>, vector<128x512xf32>, vector<8x512xf32> -> vector<8x512xf32>
    %277 = arith.addf %274, %276 : vector<8x512xf32>
    %278 = vector.extract_strided_slice %272 {offsets = [0, 0], sizes = [8, 384], strides = [1, 1]} : vector<8x512xf32> to vector<8x384xf32>
    %279 = arith.negf %278 : vector<8x384xf32>
    %280 = math.exp %279 : vector<8x384xf32>
    %cst_90 = arith.constant 1.000000e+00 : f32
    %281 = vector.broadcast %cst_90 : f32 to vector<8x384xf32>
    %282 = arith.addf %281, %280 : vector<8x384xf32>
    %283 = arith.divf %281, %282 : vector<8x384xf32>
    %284 = vector.extract_strided_slice %272 {offsets = [0, 384], sizes = [8, 128], strides = [1, 1]} : vector<8x512xf32> to vector<8x128xf32>
    %285 = math.tanh %284 : vector<8x128xf32>
    %286 = vector.extract_strided_slice %277 {offsets = [0, 0], sizes = [8, 384], strides = [1, 1]} : vector<8x512xf32> to vector<8x384xf32>
    %287 = arith.negf %286 : vector<8x384xf32>
    %288 = math.exp %287 : vector<8x384xf32>
    %cst_91 = arith.constant 1.000000e+00 : f32
    %289 = vector.broadcast %cst_91 : f32 to vector<8x384xf32>
    %290 = arith.addf %289, %288 : vector<8x384xf32>
    %291 = arith.divf %289, %290 : vector<8x384xf32>
    %292 = vector.extract_strided_slice %277 {offsets = [0, 384], sizes = [8, 128], strides = [1, 1]} : vector<8x512xf32> to vector<8x128xf32>
    %293 = math.tanh %292 : vector<8x128xf32>
    %294 = vector.extract_strided_slice %283 {offsets = [0, 128], sizes = [8, 128], strides = [1, 1]} : vector<8x384xf32> to vector<8x128xf32>
    %295 = arith.mulf %294, %247 : vector<8x128xf32>
    %296 = vector.extract_strided_slice %283 {offsets = [0, 0], sizes = [8, 128], strides = [1, 1]} : vector<8x384xf32> to vector<8x128xf32>
    %297 = arith.mulf %296, %285 : vector<8x128xf32>
    %298 = arith.addf %295, %297 : vector<8x128xf32>
    %299 = vector.extract_strided_slice %291 {offsets = [0, 128], sizes = [8, 128], strides = [1, 1]} : vector<8x384xf32> to vector<8x128xf32>
    %300 = arith.mulf %299, %252 : vector<8x128xf32>
    %301 = vector.extract_strided_slice %291 {offsets = [0, 0], sizes = [8, 128], strides = [1, 1]} : vector<8x384xf32> to vector<8x128xf32>
    %302 = arith.mulf %301, %293 : vector<8x128xf32>
    %303 = arith.addf %300, %302 : vector<8x128xf32>
    %304 = vector.extract_strided_slice %283 {offsets = [0, 256], sizes = [8, 128], strides = [1, 1]} : vector<8x384xf32> to vector<8x128xf32>
    %305 = math.tanh %298 : vector<8x128xf32>
    %306 = arith.mulf %304, %305 : vector<8x128xf32>
    %307 = vector.extract_strided_slice %291 {offsets = [0, 256], sizes = [8, 128], strides = [1, 1]} : vector<8x384xf32> to vector<8x128xf32>
    %308 = math.tanh %303 : vector<8x128xf32>
    %309 = arith.mulf %307, %308 : vector<8x128xf32>
    %310 = arith.index_cast %264 : i32 to index
    %c0_92 = arith.constant 0 : index
    %311 = vector.load %arg5[%310, %c0_92] : memref<64x256xf32, #tpu.memory_space<vmem>>, vector<8x128xf32>
    tpu.vector_store %arg5[%310, %c0_92], %306 {strides = array<i32>} : memref<64x256xf32, #tpu.memory_space<vmem>>, vector<8x128xf32>,
    %312 = arith.index_cast %267 : i32 to index
    %c128_93 = arith.constant 128 : index
    %313 = vector.load %arg5[%312, %c128_93] : memref<64x256xf32, #tpu.memory_space<vmem>>, vector<8x128xf32>
    tpu.vector_store %arg5[%312, %c128_93], %309 {strides = array<i32>} : memref<64x256xf32, #tpu.memory_space<vmem>>, vector<8x128xf32>,
    %c6_i32 = arith.constant 6 : i32
    %c8_i32_94 = arith.constant 8 : i32
    %314 = arith.muli %c6_i32, %c8_i32_94 : i32
    %315 = tpu.assume_multiple %314, 8 : i32
    %c7_i32_95 = arith.constant 7 : i32
    %316 = arith.subi %c7_i32_95, %c6_i32 : i32
    %c8_i32_96 = arith.constant 8 : i32
    %317 = arith.muli %316, %c8_i32_96 : i32
    %318 = tpu.assume_multiple %317, 8 : i32
    %319 = arith.index_cast %315 : i32 to index
    %c0_97 = arith.constant 0 : index
    %320 = vector.load %arg6[%319, %c0_97] : memref<64x1024xf32, #tpu.memory_space<vmem>>, vector<8x512xf32>
    %c0_98 = arith.constant 0 : index
    %c0_99 = arith.constant 0 : index
    %321 = vector.load %arg2[%c0_98, %c0_99] : memref<128x512xf32, #tpu.memory_space<vmem>>, vector<128x512xf32>
    %cst_100 = arith.constant dense<0.000000e+00> : vector<8x512xf32>
    %322 = tpu.matmul %306, %321, %cst_100 {dimension_numbers = #tpu.dot_dimension_numbers<[1], [0], [0], [1], [0, 0, 1, 1], [], []>} : vector<8x128xf32>, vector<128x512xf32>, vector<8x512xf32> -> vector<8x512xf32>
    %323 = arith.addf %320, %322 : vector<8x512xf32>
    %324 = arith.index_cast %318 : i32 to index
    %c512_101 = arith.constant 512 : index
    %325 = vector.load %arg6[%324, %c512_101] : memref<64x1024xf32, #tpu.memory_space<vmem>>, vector<8x512xf32>
    %c0_102 = arith.constant 0 : index
    %c0_103 = arith.constant 0 : index
    %326 = vector.load %arg3[%c0_102, %c0_103] : memref<128x512xf32, #tpu.memory_space<vmem>>, vector<128x512xf32>
    %cst_104 = arith.constant dense<0.000000e+00> : vector<8x512xf32>
    %327 = tpu.matmul %309, %326, %cst_104 {dimension_numbers = #tpu.dot_dimension_numbers<[1], [0], [0], [1], [0, 0, 1, 1], [], []>} : vector<8x128xf32>, vector<128x512xf32>, vector<8x512xf32> -> vector<8x512xf32>
    %328 = arith.addf %325, %327 : vector<8x512xf32>
    %329 = vector.extract_strided_slice %323 {offsets = [0, 0], sizes = [8, 384], strides = [1, 1]} : vector<8x512xf32> to vector<8x384xf32>
    %330 = arith.negf %329 : vector<8x384xf32>
    %331 = math.exp %330 : vector<8x384xf32>
    %cst_105 = arith.constant 1.000000e+00 : f32
    %332 = vector.broadcast %cst_105 : f32 to vector<8x384xf32>
    %333 = arith.addf %332, %331 : vector<8x384xf32>
    %334 = arith.divf %332, %333 : vector<8x384xf32>
    %335 = vector.extract_strided_slice %323 {offsets = [0, 384], sizes = [8, 128], strides = [1, 1]} : vector<8x512xf32> to vector<8x128xf32>
    %336 = math.tanh %335 : vector<8x128xf32>
    %337 = vector.extract_strided_slice %328 {offsets = [0, 0], sizes = [8, 384], strides = [1, 1]} : vector<8x512xf32> to vector<8x384xf32>
    %338 = arith.negf %337 : vector<8x384xf32>
    %339 = math.exp %338 : vector<8x384xf32>
    %cst_106 = arith.constant 1.000000e+00 : f32
    %340 = vector.broadcast %cst_106 : f32 to vector<8x384xf32>
    %341 = arith.addf %340, %339 : vector<8x384xf32>
    %342 = arith.divf %340, %341 : vector<8x384xf32>
    %343 = vector.extract_strided_slice %328 {offsets = [0, 384], sizes = [8, 128], strides = [1, 1]} : vector<8x512xf32> to vector<8x128xf32>
    %344 = math.tanh %343 : vector<8x128xf32>
    %345 = vector.extract_strided_slice %334 {offsets = [0, 128], sizes = [8, 128], strides = [1, 1]} : vector<8x384xf32> to vector<8x128xf32>
    %346 = arith.mulf %345, %298 : vector<8x128xf32>
    %347 = vector.extract_strided_slice %334 {offsets = [0, 0], sizes = [8, 128], strides = [1, 1]} : vector<8x384xf32> to vector<8x128xf32>
    %348 = arith.mulf %347, %336 : vector<8x128xf32>
    %349 = arith.addf %346, %348 : vector<8x128xf32>
    %350 = vector.extract_strided_slice %342 {offsets = [0, 128], sizes = [8, 128], strides = [1, 1]} : vector<8x384xf32> to vector<8x128xf32>
    %351 = arith.mulf %350, %303 : vector<8x128xf32>
    %352 = vector.extract_strided_slice %342 {offsets = [0, 0], sizes = [8, 128], strides = [1, 1]} : vector<8x384xf32> to vector<8x128xf32>
    %353 = arith.mulf %352, %344 : vector<8x128xf32>
    %354 = arith.addf %351, %353 : vector<8x128xf32>
    %355 = vector.extract_strided_slice %334 {offsets = [0, 256], sizes = [8, 128], strides = [1, 1]} : vector<8x384xf32> to vector<8x128xf32>
    %356 = math.tanh %349 : vector<8x128xf32>
    %357 = arith.mulf %355, %356 : vector<8x128xf32>
    %358 = vector.extract_strided_slice %342 {offsets = [0, 256], sizes = [8, 128], strides = [1, 1]} : vector<8x384xf32> to vector<8x128xf32>
    %359 = math.tanh %354 : vector<8x128xf32>
    %360 = arith.mulf %358, %359 : vector<8x128xf32>
    %361 = arith.index_cast %315 : i32 to index
    %c0_107 = arith.constant 0 : index
    %362 = vector.load %arg5[%361, %c0_107] : memref<64x256xf32, #tpu.memory_space<vmem>>, vector<8x128xf32>
    tpu.vector_store %arg5[%361, %c0_107], %357 {strides = array<i32>} : memref<64x256xf32, #tpu.memory_space<vmem>>, vector<8x128xf32>,
    %363 = arith.index_cast %318 : i32 to index
    %c128_108 = arith.constant 128 : index
    %364 = vector.load %arg5[%363, %c128_108] : memref<64x256xf32, #tpu.memory_space<vmem>>, vector<8x128xf32>
    tpu.vector_store %arg5[%363, %c128_108], %360 {strides = array<i32>} : memref<64x256xf32, #tpu.memory_space<vmem>>, vector<8x128xf32>,
    %c7_i32_109 = arith.constant 7 : i32
    %c8_i32_110 = arith.constant 8 : i32
    %365 = arith.muli %c7_i32_109, %c8_i32_110 : i32
    %366 = tpu.assume_multiple %365, 8 : i32
    %c7_i32_111 = arith.constant 7 : i32
    %367 = arith.subi %c7_i32_111, %c7_i32_109 : i32
    %c8_i32_112 = arith.constant 8 : i32
    %368 = arith.muli %367, %c8_i32_112 : i32
    %369 = tpu.assume_multiple %368, 8 : i32
    %370 = arith.index_cast %366 : i32 to index
    %c0_113 = arith.constant 0 : index
    %371 = vector.load %arg6[%370, %c0_113] : memref<64x1024xf32, #tpu.memory_space<vmem>>, vector<8x512xf32>
    %c0_114 = arith.constant 0 : index
    %c0_115 = arith.constant 0 : index
    %372 = vector.load %arg2[%c0_114, %c0_115] : memref<128x512xf32, #tpu.memory_space<vmem>>, vector<128x512xf32>
    %cst_116 = arith.constant dense<0.000000e+00> : vector<8x512xf32>
    %373 = tpu.matmul %357, %372, %cst_116 {dimension_numbers = #tpu.dot_dimension_numbers<[1], [0], [0], [1], [0, 0, 1, 1], [], []>} : vector<8x128xf32>, vector<128x512xf32>, vector<8x512xf32> -> vector<8x512xf32>
    %374 = arith.addf %371, %373 : vector<8x512xf32>
    %375 = arith.index_cast %369 : i32 to index
    %c512_117 = arith.constant 512 : index
    %376 = vector.load %arg6[%375, %c512_117] : memref<64x1024xf32, #tpu.memory_space<vmem>>, vector<8x512xf32>
    %c0_118 = arith.constant 0 : index
    %c0_119 = arith.constant 0 : index
    %377 = vector.load %arg3[%c0_118, %c0_119] : memref<128x512xf32, #tpu.memory_space<vmem>>, vector<128x512xf32>
    %cst_120 = arith.constant dense<0.000000e+00> : vector<8x512xf32>
    %378 = tpu.matmul %360, %377, %cst_120 {dimension_numbers = #tpu.dot_dimension_numbers<[1], [0], [0], [1], [0, 0, 1, 1], [], []>} : vector<8x128xf32>, vector<128x512xf32>, vector<8x512xf32> -> vector<8x512xf32>
    %379 = arith.addf %376, %378 : vector<8x512xf32>
    %380 = vector.extract_strided_slice %374 {offsets = [0, 0], sizes = [8, 384], strides = [1, 1]} : vector<8x512xf32> to vector<8x384xf32>
    %381 = arith.negf %380 : vector<8x384xf32>
    %382 = math.exp %381 : vector<8x384xf32>
    %cst_121 = arith.constant 1.000000e+00 : f32
    %383 = vector.broadcast %cst_121 : f32 to vector<8x384xf32>
    %384 = arith.addf %383, %382 : vector<8x384xf32>
    %385 = arith.divf %383, %384 : vector<8x384xf32>
    %386 = vector.extract_strided_slice %374 {offsets = [0, 384], sizes = [8, 128], strides = [1, 1]} : vector<8x512xf32> to vector<8x128xf32>
    %387 = math.tanh %386 : vector<8x128xf32>
    %388 = vector.extract_strided_slice %379 {offsets = [0, 0], sizes = [8, 384], strides = [1, 1]} : vector<8x512xf32> to vector<8x384xf32>
    %389 = arith.negf %388 : vector<8x384xf32>
    %390 = math.exp %389 : vector<8x384xf32>
    %cst_122 = arith.constant 1.000000e+00 : f32
    %391 = vector.broadcast %cst_122 : f32 to vector<8x384xf32>
    %392 = arith.addf %391, %390 : vector<8x384xf32>
    %393 = arith.divf %391, %392 : vector<8x384xf32>
    %394 = vector.extract_strided_slice %379 {offsets = [0, 384], sizes = [8, 128], strides = [1, 1]} : vector<8x512xf32> to vector<8x128xf32>
    %395 = math.tanh %394 : vector<8x128xf32>
    %396 = vector.extract_strided_slice %385 {offsets = [0, 128], sizes = [8, 128], strides = [1, 1]} : vector<8x384xf32> to vector<8x128xf32>
    %397 = arith.mulf %396, %349 : vector<8x128xf32>
    %398 = vector.extract_strided_slice %385 {offsets = [0, 0], sizes = [8, 128], strides = [1, 1]} : vector<8x384xf32> to vector<8x128xf32>
    %399 = arith.mulf %398, %387 : vector<8x128xf32>
    %400 = arith.addf %397, %399 : vector<8x128xf32>
    %401 = vector.extract_strided_slice %393 {offsets = [0, 128], sizes = [8, 128], strides = [1, 1]} : vector<8x384xf32> to vector<8x128xf32>
    %402 = arith.mulf %401, %354 : vector<8x128xf32>
    %403 = vector.extract_strided_slice %393 {offsets = [0, 0], sizes = [8, 128], strides = [1, 1]} : vector<8x384xf32> to vector<8x128xf32>
    %404 = arith.mulf %403, %395 : vector<8x128xf32>
    %405 = arith.addf %402, %404 : vector<8x128xf32>
    %406 = vector.extract_strided_slice %385 {offsets = [0, 256], sizes = [8, 128], strides = [1, 1]} : vector<8x384xf32> to vector<8x128xf32>
    %407 = math.tanh %400 : vector<8x128xf32>
    %408 = arith.mulf %406, %407 : vector<8x128xf32>
    %409 = vector.extract_strided_slice %393 {offsets = [0, 256], sizes = [8, 128], strides = [1, 1]} : vector<8x384xf32> to vector<8x128xf32>
    %410 = math.tanh %405 : vector<8x128xf32>
    %411 = arith.mulf %409, %410 : vector<8x128xf32>
    %412 = arith.index_cast %366 : i32 to index
    %c0_123 = arith.constant 0 : index
    %413 = vector.load %arg5[%412, %c0_123] : memref<64x256xf32, #tpu.memory_space<vmem>>, vector<8x128xf32>
    tpu.vector_store %arg5[%412, %c0_123], %408 {strides = array<i32>} : memref<64x256xf32, #tpu.memory_space<vmem>>, vector<8x128xf32>,
    %414 = arith.index_cast %369 : i32 to index
    %c128_124 = arith.constant 128 : index
    %415 = vector.load %arg5[%414, %c128_124] : memref<64x256xf32, #tpu.memory_space<vmem>>, vector<8x128xf32>
    tpu.vector_store %arg5[%414, %c128_124], %411 {strides = array<i32>} : memref<64x256xf32, #tpu.memory_space<vmem>>, vector<8x128xf32>,
    %c8_i32_125 = arith.constant 8 : i32
    return
  }
}

</mosaic_0001>

<bundles_post_ra>
// kernel: tpu_custom_call.1
= control target key start
LH: loop header
LB: loop body
LE: loop exit
PB: predicated region body
PF: predicated region fallthrough
CT: control target
= control target key end

     0   :  { %10 = vsyncpa [#allocation4], 0  ;;  %s7696_s0 = inlined_call_operand.hbm [shape: f32[64,128], index: 0, kind: input, shape index: {}]   ;;  %s7697_s1 = inlined_call_operand.hbm [shape: f32[128,1024], index: 1, kind: input, shape index: {}]   ;;  %s7698_s2 = inlined_call_operand.hbm [shape: f32[128,512], index: 2, kind: input, shape index: {}]   ;;  %s7699_s3 = inlined_call_operand.hbm [shape: f32[128,512], index: 3, kind: input, shape index: {}]   ;;  %s7700_s4 = inlined_call_operand.hbm [shape: f32[1,1024], index: 4, kind: input, shape index: {}]   ;;  %s7701_s5 = inlined_call_operand.hbm [shape: f32[64,256], index: 5, kind: output, shape index: {}]  }
   0x1   :  { %11 = vsyncpa [#allocation7], 0 }
   0x2   :  { %12 = vsyncpa [#allocation10], 0 }
   0x3   :  { %13 = vsyncpa [#allocation5], 0  ;;  %s5133_s18 = smov [#allocation6]  }
   0x4   :  { %s31_s19 = sshll.u32 %s5133_s18, 4  ;;  %s32_s19 = int_to_ptr.vmem [resolvable:$true] %s31_s19 }
   0x5   :  { %s5013_s20 = scalar_lea.vmem %s32_s19, 16384  ;;  %p5018_p1 = scmp.lt.s32.totalorder %s32_s19, %s32_s19 }
   0x6   :  { %p5014_p0 = scmp.ne.s32.totalorder %s32_s19, %s5013_s20  ;;  %p5019_p2 = scmp.lt.s32.totalorder %s5013_s20, %s5013_s20 }
   0x8   :  { %p5020_p3 = por %p5019_p2, %p5018_p1 }
   0xa   :  { %p5021_p4 = pnand %p5020_p3, %p5014_p0 }
   0xc   :  { %5024 = shalt.err (!%p5021_p4)
}
   0xd   :  { %s5134_s21 = smov 1024   ;;  %s5135_s22 = smov 64  }
   0xe   :  { %37 = dma.hbm_to_vmem [thread:$0]  %s7697_s1, 16384, %s32_s19, [#allocation7], %s5134_s21, %s5134_s21, %s5135_s22  }
   0xf   :  { %s5136_s25 = smov [#allocation9]   ;;  %s5137_s27 = smov [#allocation3]  }
  0x10   :  { %s55_s26 = sshll.u32 %s5136_s25, 4  ;;  %s19_s28 = sshll.u32 %s5137_s27, 4  ;;  %s56_s26 = int_to_ptr.vmem [resolvable:$true] %s55_s26  ;;  %s20_s28 = int_to_ptr.vmem [resolvable:$true] %s19_s28 }
  0x11   :  { %s5033_s29 = scalar_lea.vmem %s56_s26, 8192  ;;  %p5038_p6 = scmp.lt.s32.totalorder %s56_s26, %s56_s26 }
  0x12   :  { %p5034_p5 = scmp.ne.s32.totalorder %s56_s26, %s5033_s29  ;;  %p5039_p7 = scmp.lt.s32.totalorder %s5033_s29, %s5033_s29 }
  0x14   :  { %p5040_p8 = por %p5039_p7, %p5038_p6 }
  0x16   :  { %p5041_p9 = pnand %p5040_p8, %p5034_p5 }
  0x18   :  { %5044 = shalt.err (!%p5041_p9)
}
  0x19   :  { %s5138_s30 = smov 512   ;;  %s5139_s6 = smov 32  }
  0x1a   :  { %61 = dma.hbm_to_vmem [thread:$0]  %s7699_s3, 8192, %s56_s26, [#allocation10], %s5138_s30, %s5138_s30, %s5139_s6  }
  0x1b   :  { %s5053_s1 = scalar_lea.vmem %s20_s28, 1024  ;;  %p5058_p11 = scmp.lt.s32.totalorder %s20_s28, %s20_s28 }
  0x1c   :  { %p5054_p10 = scmp.ne.s32.totalorder %s20_s28, %s5053_s1  ;;  %p5059_p12 = scmp.lt.s32.totalorder %s5053_s1, %s5053_s1 }
  0x1e   :  { %p5060_p13 = por %p5059_p12, %p5058_p11 }
  0x20   :  { %p5061_p0 = pnand %p5060_p13, %p5054_p10 }
  0x22   :  { %5064 = shalt.err (!%p5061_p0)
}
  0x23   :  { %s5140_s9 = smov 128   ;;  %s5141_s10 = smov 8  }
  0x24   :  { %25 = dma.hbm_to_vmem [thread:$0]  %s7696_s0, 1024, %s20_s28, [#allocation4], %s5140_s9, %s5140_s9, %s5141_s10  }
  0x25   :  { %s5142_s13 = smov [#allocation8]   ;;  %s5143_s15 = smov [#allocation11]  }
  0x26   :  { %s43_s14 = sshll.u32 %s5142_s13, 4  ;;  %s68_s16 = sshll.u32 %s5143_s15, 4  ;;  %s44_s14 = int_to_ptr.vmem [resolvable:$true] %s43_s14  ;;  %s69_s16 = int_to_ptr.vmem [resolvable:$true] %s68_s16 }
  0x27   :  { %s5073_s3 = scalar_lea.vmem %s44_s14, 8192  ;;  %p5078_p2 = scmp.lt.s32.totalorder %s44_s14, %s44_s14 }
  0x28   :  { %p5074_p1 = scmp.ne.s32.totalorder %s44_s14, %s5073_s3  ;;  %p5079_p3 = scmp.lt.s32.totalorder %s5073_s3, %s5073_s3 }
  0x2a   :  { %p5080_p4 = por %p5079_p3, %p5078_p2 }
  0x2c   :  { %p5081_p5 = pnand %p5080_p4, %p5074_p1 }
  0x2e   :  { %5084 = shalt.err (!%p5081_p5)
}
  0x2f   :  { %49 = dma.hbm_to_vmem [thread:$0]  %s7698_s2, 8192, %s44_s14, [#allocation7], %s5138_s30, %s5138_s30, %s5139_s6  }
  0x30   :  { %s5093_s19 = scalar_lea.vmem %s69_s16, 128  ;;  %p5098_p7 = scmp.lt.s32.totalorder %s69_s16, %s69_s16 }
  0x31   :  { %p5094_p6 = scmp.ne.s32.totalorder %s69_s16, %s5093_s19  ;;  %p5099_p8 = scmp.lt.s32.totalorder %s5093_s19, %s5093_s19 }
  0x33   :  { %p5100_p9 = por %p5099_p8, %p5098_p7 }
  0x35   :  { %p5101_p10 = pnand %p5100_p9, %p5094_p6 }
  0x37   :  { %5104 = shalt.err (!%p5101_p10)
}
  0x38   :  { %71 = dma.hbm_to_vmem [thread:$0]  %s7700_s4, 128, %s69_s16, [#allocation10]  }
  0x39   :  { %5125 = dma.done.wait [#allocation4], 1024  }
  0x3a   :  { %5126 = vsyncadd [#allocation4], 4294966272 }
  0x3b   :  { %5127 = dma.done.wait [#allocation7], 24576  }
  0x3c   :  { %5128 = vsyncadd [#allocation7], 4294942720 }
  0x3d   :  { %5129 = dma.done.wait [#allocation10], 8320  }
  0x3e   :  { %5130 = vsyncadd [#allocation10], 4294958976  ;;  %v7702_v0 = vmov 0.0   ;;  %v216_v1 = vld [vmem:[#allocation6 + $0x3c8] sm:$0xff]  ;;  %v218_v2 = vld [vmem:[#allocation6 + $0x3d8] sm:$0xff]  ;;  %s5145_s2 = smov [#allocation12]  }
  0x3f   :  { %329 = vmatprep.mubr.f32.mxu0 %v7702_v0  ;;  %442 = vmatprep.mubr.f32.mxu1 %v7702_v0  ;;  %v215_v3 = vld [vmem:[#allocation6 + $0x3c0] sm:$0xff]  ;;  %v217_v4 = vld [vmem:[#allocation6 + $0x3d0] sm:$0xff]  ;;  %v208_v5 = vld [vmem:[#allocation6 + $0x388] sm:$0xff]  ;;  %s4658_s4 = sshll.u32 %s5145_s2, 4  ;;  %s4659_s4 = int_to_ptr.vmem [resolvable:$true] %s4658_s4 }
  0x40   :  { %265 = vmatprep.subr.mxu0 %v216_v1  ;;  %378 = vmatprep.subr.mxu1 %v218_v2  ;;  %v210_v6 = vld [vmem:[#allocation6 + $0x398] sm:$0xff]  ;;  %v207_v7 = vld [vmem:[#allocation6 + $0x380] sm:$0xff]  ;;  %v209_v8 = vld [vmem:[#allocation6 + $0x390] sm:$0xff]  ;;  %s5105_s21 = scalar_lea.vmem %s4659_s4, 2048  ;;  %p5110_p12 = scmp.lt.s32.totalorder %s4659_s4, %s4659_s4 }
  0x41   :  { %266 = vmatpush1.msra.mxu0 %v215_v3  ;;  %379 = vmatpush1.msra.mxu1 %v217_v4  ;;  %v200_v9 = vld [vmem:[#allocation6 + $0x348] sm:$0xff]  ;;  %v202_v10 = vld [vmem:[#allocation6 + $0x358] sm:$0xff]  ;;  %v199_v11 = vld [vmem:[#allocation6 + $0x340] sm:$0xff]  ;;  %p5106_p11 = scmp.ne.s32.totalorder %s4659_s4, %s5105_s21  ;;  %p5111_p13 = scmp.lt.s32.totalorder %s5105_s21, %s5105_s21 }
  0x42   :  { %267 = vmatprep.subr.mxu0 %v208_v5  ;;  %380 = vmatprep.subr.mxu1 %v210_v6  ;;  %v201_v12 = vld [vmem:[#allocation6 + $0x350] sm:$0xff]  ;;  %v192_v13 = vld [vmem:[#allocation6 + $0x308] sm:$0xff]  ;;  %v194_v14 = vld [vmem:[#allocation6 + $0x318] sm:$0xff] }
  0x43   :  { %268 = vmatpush1.msra.mxu0 %v207_v7  ;;  %381 = vmatpush1.msra.mxu1 %v209_v8  ;;  %v191_v15 = vld [vmem:[#allocation6 + $0x300] sm:$0xff]  ;;  %v193_v16 = vld [vmem:[#allocation6 + $0x310] sm:$0xff]  ;;  %v184_v17 = vld [vmem:[#allocation6 + $0x2c8] sm:$0xff]  ;;  %p5112_p0 = por %p5111_p13, %p5110_p12 }
  0x44   :  { %269 = vmatprep.subr.mxu0 %v200_v9  ;;  %382 = vmatprep.subr.mxu1 %v202_v10  ;;  %v186_v18 = vld [vmem:[#allocation6 + $0x2d8] sm:$0xff]  ;;  %v183_v19 = vld [vmem:[#allocation6 + $0x2c0] sm:$0xff]  ;;  %v185_v20 = vld [vmem:[#allocation6 + $0x2d0] sm:$0xff] }
  0x45   :  { %270 = vmatpush1.msra.mxu0 %v199_v11  ;;  %383 = vmatpush1.msra.mxu1 %v201_v12  ;;  %v176_v21 = vld [vmem:[#allocation6 + $0x288] sm:$0xff]  ;;  %v178_v22 = vld [vmem:[#allocation6 + $0x298] sm:$0xff]  ;;  %v175_v23 = vld [vmem:[#allocation6 + $0x280] sm:$0xff]  ;;  %p5113_p1 = pnand %p5112_p0, %p5106_p11 }
  0x46   :  { %271 = vmatprep.subr.mxu0 %v192_v13  ;;  %384 = vmatprep.subr.mxu1 %v194_v14  ;;  %v177_v24 = vld [vmem:[#allocation6 + $0x290] sm:$0xff]  ;;  %v168_v25 = vld [vmem:[#allocation6 + $0x248] sm:$0xff]  ;;  %v170_v26 = vld [vmem:[#allocation6 + $0x258] sm:$0xff] }
  0x47   :  { %272 = vmatpush1.msra.mxu0 %v191_v15  ;;  %385 = vmatpush1.msra.mxu1 %v193_v16  ;;  %v167_v27 = vld [vmem:[#allocation6 + $0x240] sm:$0xff]  ;;  %v169_v28 = vld [vmem:[#allocation6 + $0x250] sm:$0xff]  ;;  %v160_v29 = vld [vmem:[#allocation6 + $0x208] sm:$0xff] }
  0x48   :  { %273 = vmatprep.subr.mxu0 %v184_v17  ;;  %386 = vmatprep.subr.mxu1 %v186_v18  ;;  %v162_v30 = vld [vmem:[#allocation6 + $0x218] sm:$0xff]  ;;  %v159_v31 = vld [vmem:[#allocation6 + $0x200] sm:$0xff]  ;;  %v161_v32 = vld [vmem:[#allocation6 + $0x210] sm:$0xff] }
  0x49   :  { %274 = vmatpush1.msra.mxu0 %v183_v19  ;;  %387 = vmatpush1.msra.mxu1 %v185_v20  ;;  %v152_v33 = vld [vmem:[#allocation6 + $0x1c8] sm:$0xff]  ;;  %v154_v34 = vld [vmem:[#allocation6 + $0x1d8] sm:$0xff]  ;;  %v151_v35 = vld [vmem:[#allocation6 + $0x1c0] sm:$0xff] }
  0x4a   :  { %275 = vmatprep.subr.mxu0 %v176_v21  ;;  %388 = vmatprep.subr.mxu1 %v178_v22  ;;  %v153_v36 = vld [vmem:[#allocation6 + $0x1d0] sm:$0xff]  ;;  %v144_v37 = vld [vmem:[#allocation6 + $0x188] sm:$0xff]  ;;  %v146_v38 = vld [vmem:[#allocation6 + $0x198] sm:$0xff] }
  0x4b   :  { %276 = vmatpush1.msra.mxu0 %v175_v23  ;;  %389 = vmatpush1.msra.mxu1 %v177_v24  ;;  %v143_v39 = vld [vmem:[#allocation6 + $0x180] sm:$0xff]  ;;  %v145_v40 = vld [vmem:[#allocation6 + $0x190] sm:$0xff]  ;;  %v136_v41 = vld [vmem:[#allocation6 + $0x148] sm:$0xff] }
  0x4c   :  { %277 = vmatprep.subr.mxu0 %v168_v25  ;;  %390 = vmatprep.subr.mxu1 %v170_v26  ;;  %v138_v42 = vld [vmem:[#allocation6 + $0x158] sm:$0xff]  ;;  %v135_v43 = vld [vmem:[#allocation6 + $0x140] sm:$0xff]  ;;  %v137_v44 = vld [vmem:[#allocation6 + $0x150] sm:$0xff] }
  0x4d   :  { %278 = vmatpush1.msra.mxu0 %v167_v27  ;;  %391 = vmatpush1.msra.mxu1 %v169_v28  ;;  %v128_v45 = vld [vmem:[#allocation6 + $0x108] sm:$0xff]  ;;  %v130_v46 = vld [vmem:[#allocation6 + $0x118] sm:$0xff]  ;;  %v127_v47 = vld [vmem:[#allocation6 + $0x100] sm:$0xff] }
  0x4e   :  { %279 = vmatprep.subr.mxu0 %v160_v29  ;;  %392 = vmatprep.subr.mxu1 %v162_v30  ;;  %v129_v48 = vld [vmem:[#allocation6 + $0x110] sm:$0xff]  ;;  %v120_v49 = vld [vmem:[#allocation6 + $0xc8] sm:$0xff]  ;;  %v122_v50 = vld [vmem:[#allocation6 + $0xd8] sm:$0xff] }
  0x4f   :  { %280 = vmatpush1.msra.mxu0 %v159_v31  ;;  %393 = vmatpush1.msra.mxu1 %v161_v32  ;;  %v119_v51 = vld [vmem:[#allocation6 + $0xc0] sm:$0xff]  ;;  %v121_v52 = vld [vmem:[#allocation6 + $0xd0] sm:$0xff]  ;;  %v112_v53 = vld [vmem:[#allocation6 + $0x88] sm:$0xff] }
  0x50   :  { %281 = vmatprep.subr.mxu0 %v152_v33  ;;  %394 = vmatprep.subr.mxu1 %v154_v34  ;;  %v114_v54 = vld [vmem:[#allocation6 + $0x98] sm:$0xff]  ;;  %v111_v55 = vld [vmem:[#allocation6 + $0x80] sm:$0xff]  ;;  %v113_v56 = vld [vmem:[#allocation6 + $0x90] sm:$0xff] }
  0x51   :  { %282 = vmatpush1.msra.mxu0 %v151_v35  ;;  %395 = vmatpush1.msra.mxu1 %v153_v36  ;;  %v104_v57 = vld [vmem:[#allocation6 + $0x48] sm:$0xff]  ;;  %v106_v58 = vld [vmem:[#allocation6 + $0x58] sm:$0xff]  ;;  %v103_v59 = vld [vmem:[#allocation6 + $0x40] sm:$0xff] }
  0x52   :  { %283 = vmatprep.subr.mxu0 %v144_v37  ;;  %396 = vmatprep.subr.mxu1 %v146_v38  ;;  %v105_v60 = vld [vmem:[#allocation6 + $0x50] sm:$0xff]  ;;  %v96_v61 = vld [vmem:[#allocation6 + $0x8] sm:$0xff]  ;;  %v98_v62 = vld [vmem:[#allocation6 + $0x18] sm:$0xff] }
  0x53   :  { %284 = vmatpush1.msra.mxu0 %v143_v39  ;;  %397 = vmatpush1.msra.mxu1 %v145_v40  ;;  %v95_v63 = vld [vmem:[#allocation6] sm:$0xff]  ;;  %v97_v1 = vld [vmem:[#allocation6 + $0x10] sm:$0xff]  ;;  %v220_v3 = vld [vmem:[#allocation6 + $0x3e8] sm:$0xff] }
  0x54   :  { %285 = vmatprep.subr.mxu0 %v136_v41  ;;  %398 = vmatprep.subr.mxu1 %v138_v42  ;;  %v5195_v2 = vld [vmem:[#allocation3] sm:$0xff]  ;;  %v222_v4 = vld [vmem:[#allocation6 + $0x3f8] sm:$0xff]  ;;  %v221_v6 = vld [vmem:[#allocation6 + $0x3f0] sm:$0xff] }
  0x55   :  { %286 = vmatpush1.msra.mxu0 %v135_v43  ;;  %399 = vmatpush1.msra.mxu1 %v137_v44  ;;  %v219_v5 = vld [vmem:[#allocation6 + $0x3e0] sm:$0xff]  ;;  %v212_v7 = vld [vmem:[#allocation6 + $0x3a8] sm:$0xff]  ;;  %v214_v8 = vld [vmem:[#allocation6 + $0x3b8] sm:$0xff] }
  0x56   :  { %287 = vmatprep.subr.mxu0 %v128_v45  ;;  %400 = vmatprep.subr.mxu1 %v130_v46  ;;  %v211_v9 = vld [vmem:[#allocation6 + $0x3a0] sm:$0xff]  ;;  %v213_v10 = vld [vmem:[#allocation6 + $0x3b0] sm:$0xff]  ;;  %v5199_v11 = vld [vmem:[#allocation3 + $0x8] sm:$0xff] }
  0x57   :  { %288 = vmatpush1.msra.mxu0 %v127_v47  ;;  %401 = vmatpush1.msra.mxu1 %v129_v48  ;;  %v204_v12 = vld [vmem:[#allocation6 + $0x368] sm:$0xff]  ;;  %v206_v13 = vld [vmem:[#allocation6 + $0x378] sm:$0xff]  ;;  %v203_v14 = vld [vmem:[#allocation6 + $0x360] sm:$0xff] }
  0x58   :  { %289 = vmatprep.subr.mxu0 %v120_v49  ;;  %402 = vmatprep.subr.mxu1 %v122_v50  ;;  %v205_v15 = vld [vmem:[#allocation6 + $0x370] sm:$0xff]  ;;  %v196_v16 = vld [vmem:[#allocation6 + $0x328] sm:$0xff]  ;;  %v198_v17 = vld [vmem:[#allocation6 + $0x338] sm:$0xff] }
  0x59   :  { %290 = vmatpush1.msra.mxu0 %v119_v51  ;;  %403 = vmatpush1.msra.mxu1 %v121_v52  ;;  %v195_v18 = vld [vmem:[#allocation6 + $0x320] sm:$0xff]  ;;  %v197_v19 = vld [vmem:[#allocation6 + $0x330] sm:$0xff]  ;;  %v188_v21 = vld [vmem:[#allocation6 + $0x2e8] sm:$0xff] }
  0x5a   :  { %291 = vmatprep.subr.mxu0 %v112_v53  ;;  %404 = vmatprep.subr.mxu1 %v114_v54  ;;  %v5205_v20 = vld [vmem:[#allocation3 + $0x10] sm:$0xff]  ;;  %v190_v22 = vld [vmem:[#allocation6 + $0x2f8] sm:$0xff]  ;;  %v187_v23 = vld [vmem:[#allocation6 + $0x2e0] sm:$0xff] }
  0x5b   :  { %292 = vmatpush1.msra.mxu0 %v111_v55  ;;  %405 = vmatpush1.msra.mxu1 %v113_v56  ;;  %v189_v24 = vld [vmem:[#allocation6 + $0x2f0] sm:$0xff]  ;;  %v180_v25 = vld [vmem:[#allocation6 + $0x2a8] sm:$0xff]  ;;  %v182_v26 = vld [vmem:[#allocation6 + $0x2b8] sm:$0xff] }
  0x5c   :  { %293 = vmatprep.subr.mxu0 %v104_v57  ;;  %406 = vmatprep.subr.mxu1 %v106_v58  ;;  %v179_v27 = vld [vmem:[#allocation6 + $0x2a0] sm:$0xff]  ;;  %v181_v28 = vld [vmem:[#allocation6 + $0x2b0] sm:$0xff]  ;;  %v5211_v29 = vld [vmem:[#allocation3 + $0x18] sm:$0xff] }
  0x5d   :  { %294 = vmatpush1.msra.mxu0 %v103_v59  ;;  %407 = vmatpush1.msra.mxu1 %v105_v60  ;;  %v172_v30 = vld [vmem:[#allocation6 + $0x268] sm:$0xff]  ;;  %v174_v31 = vld [vmem:[#allocation6 + $0x278] sm:$0xff]  ;;  %v171_v32 = vld [vmem:[#allocation6 + $0x260] sm:$0xff] }
  0x5e   :  { %295 = vmatprep.subr.mxu0 %v96_v61  ;;  %408 = vmatprep.subr.mxu1 %v98_v62  ;;  %v173_v33 = vld [vmem:[#allocation6 + $0x270] sm:$0xff]  ;;  %v164_v34 = vld [vmem:[#allocation6 + $0x228] sm:$0xff]  ;;  %v166_v35 = vld [vmem:[#allocation6 + $0x238] sm:$0xff] }
  0x5f   :  { %296 = vmatpush1.msra.mxu0 %v95_v63  ;;  %409 = vmatpush1.msra.mxu1 %v97_v1  ;;  %v163_v36 = vld [vmem:[#allocation6 + $0x220] sm:$0xff]  ;;  %v165_v37 = vld [vmem:[#allocation6 + $0x230] sm:$0xff]  ;;  %v156_v39 = vld [vmem:[#allocation6 + $0x1e8] sm:$0xff] }
  0x60   :  { %330 = vmatmul.mubr.f32.vlgmr.msra.gmra.mxu0 %v5195_v2  ;;  %443 = vmatmul.mubr.f32.vlgmr.msra.gmra.mxu1 %v5195_v2  ;;  %v5217_v38 = vld [vmem:[#allocation3 + $0x20] sm:$0xff]  ;;  %v158_v40 = vld [vmem:[#allocation6 + $0x1f8] sm:$0xff]  ;;  %v157_v42 = vld [vmem:[#allocation6 + $0x1f0] sm:$0xff] }
  0x61   :  { %491 = vmatprep.subr.mxu0 %v220_v3  ;;  %604 = vmatprep.subr.mxu1 %v222_v4  ;;  %v155_v41 = vld [vmem:[#allocation6 + $0x1e0] sm:$0xff]  ;;  %v148_v43 = vld [vmem:[#allocation6 + $0x1a8] sm:$0xff]  ;;  %v150_v44 = vld [vmem:[#allocation6 + $0x1b8] sm:$0xff] }
  0x62   :  { %492 = vmatpush1.msra.mxu0 %v219_v5  ;;  %605 = vmatpush1.msra.mxu1 %v221_v6  ;;  %v147_v45 = vld [vmem:[#allocation6 + $0x1a0] sm:$0xff]  ;;  %v149_v46 = vld [vmem:[#allocation6 + $0x1b0] sm:$0xff]  ;;  %v5223_v47 = vld [vmem:[#allocation3 + $0x28] sm:$0xff] }
  0x63   :  { %493 = vmatprep.subr.mxu0 %v212_v7  ;;  %606 = vmatprep.subr.mxu1 %v214_v8  ;;  %v140_v48 = vld [vmem:[#allocation6 + $0x168] sm:$0xff]  ;;  %v142_v49 = vld [vmem:[#allocation6 + $0x178] sm:$0xff]  ;;  %v139_v50 = vld [vmem:[#allocation6 + $0x160] sm:$0xff] }
  0x64   :  { %335 = vmatprep.mubr.f32.mxu0 %v7702_v0  ;;  %448 = vmatprep.mubr.f32.mxu1 %v7702_v0  ;;  %v141_v51 = vld [vmem:[#allocation6 + $0x170] sm:$0xff]  ;;  %v132_v52 = vld [vmem:[#allocation6 + $0x128] sm:$0xff]  ;;  %v134_v53 = vld [vmem:[#allocation6 + $0x138] sm:$0xff] }
  0x65   :  { %494 = vmatpush1.msra.mxu0 %v211_v9  ;;  %607 = vmatpush1.msra.mxu1 %v213_v10  ;;  %v131_v54 = vld [vmem:[#allocation6 + $0x120] sm:$0xff]  ;;  %v133_v55 = vld [vmem:[#allocation6 + $0x130] sm:$0xff]  ;;  %v124_v57 = vld [vmem:[#allocation6 + $0xe8] sm:$0xff] }
  0x66   :  { %336 = vmatmul.mubr.f32.gmra.mxu0 %v5199_v11  ;;  %449 = vmatmul.mubr.f32.gmra.mxu1 %v5199_v11  ;;  %v5229_v56 = vld [vmem:[#allocation3 + $0x30] sm:$0xff]  ;;  %v126_v58 = vld [vmem:[#allocation6 + $0xf8] sm:$0xff]  ;;  %v123_v59 = vld [vmem:[#allocation6 + $0xe0] sm:$0xff] }
  0x67   :  { %495 = vmatprep.subr.mxu0 %v204_v12  ;;  %608 = vmatprep.subr.mxu1 %v206_v13  ;;  %v125_v60 = vld [vmem:[#allocation6 + $0xf0] sm:$0xff]  ;;  %v116_v61 = vld [vmem:[#allocation6 + $0xa8] sm:$0xff]  ;;  %v118_v62 = vld [vmem:[#allocation6 + $0xb8] sm:$0xff] }
  0x68   :  { %496 = vmatpush1.msra.mxu0 %v203_v14  ;;  %609 = vmatpush1.msra.mxu1 %v205_v15  ;;  %v115_v63 = vld [vmem:[#allocation6 + $0xa0] sm:$0xff]  ;;  %v117_v1 = vld [vmem:[#allocation6 + $0xb0] sm:$0xff]  ;;  %v5235_v3 = vld [vmem:[#allocation3 + $0x38] sm:$0xff] }
  0x69   :  { %497 = vmatprep.subr.mxu0 %v196_v16  ;;  %610 = vmatprep.subr.mxu1 %v198_v17  ;;  %v108_v4 = vld [vmem:[#allocation6 + $0x68] sm:$0xff]  ;;  %v110_v5 = vld [vmem:[#allocation6 + $0x78] sm:$0xff]  ;;  %v107_v6 = vld [vmem:[#allocation6 + $0x60] sm:$0xff] }
  0x6a   :  { %341 = vmatprep.mubr.f32.mxu0 %v7702_v0  ;;  %454 = vmatprep.mubr.f32.mxu1 %v7702_v0  ;;  %v109_v7 = vld [vmem:[#allocation6 + $0x70] sm:$0xff]  ;;  %v100_v8 = vld [vmem:[#allocation6 + $0x28] sm:$0xff]  ;;  %v102_v9 = vld [vmem:[#allocation6 + $0x38] sm:$0xff] }
  0x6b   :  { %498 = vmatpush1.msra.mxu0 %v195_v18  ;;  %611 = vmatpush1.msra.mxu1 %v197_v19  ;;  %v99_v10 = vld [vmem:[#allocation6 + $0x20] sm:$0xff]  ;;  %v101_v12 = vld [vmem:[#allocation6 + $0x30] sm:$0xff]  ;;  %v5242_v13 = vld [vmem:[#allocation8 + $0x1e8] sm:$0xff] }
  0x6c   :  { %342 = vmatmul.mubr.f32.gmra.mxu0 %v5205_v20  ;;  %455 = vmatmul.mubr.f32.gmra.mxu1 %v5205_v20  ;;  %v5244_v14 = vld [vmem:[#allocation8 + $0x1f8] sm:$0xff]  ;;  %v5247_v15 = vld [vmem:[#allocation8 + $0x1e0] sm:$0xff]  ;;  %v5249_v16 = vld [vmem:[#allocation8 + $0x1f0] sm:$0xff] }
  0x6d   :  { %499 = vmatprep.subr.mxu0 %v188_v21  ;;  %612 = vmatprep.subr.mxu1 %v190_v22  ;;  %v5253_v17 = vld [vmem:[#allocation8 + $0x1c8] sm:$0xff]  ;;  %v5255_v18 = vld [vmem:[#allocation8 + $0x1d8] sm:$0xff]  ;;  %v5261_v19 = vld [vmem:[#allocation8 + $0x1c0] sm:$0xff] }
  0x6e   :  { %500 = vmatpush1.msra.mxu0 %v187_v23  ;;  %613 = vmatpush1.msra.mxu1 %v189_v24  ;;  %v5263_v21 = vld [vmem:[#allocation8 + $0x1d0] sm:$0xff]  ;;  %v5271_v22 = vld [vmem:[#allocation8 + $0x1b8] sm:$0xff]  ;;  %v5275_v23 = vld [vmem:[#allocation8 + $0x1a0] sm:$0xff] }
  0x6f   :  { %501 = vmatprep.subr.mxu0 %v180_v25  ;;  %614 = vmatprep.subr.mxu1 %v182_v26  ;;  %v5277_v24 = vld [vmem:[#allocation8 + $0x1b0] sm:$0xff]  ;;  %v5281_v25 = vld [vmem:[#allocation8 + $0x188] sm:$0xff]  ;;  %v5283_v26 = vld [vmem:[#allocation8 + $0x198] sm:$0xff] }
  0x70   :  { %347 = vmatprep.mubr.f32.mxu0 %v7702_v0  ;;  %460 = vmatprep.mubr.f32.mxu1 %v7702_v0 }
  0x71   :  { %502 = vmatpush1.msra.mxu0 %v179_v27  ;;  %615 = vmatpush1.msra.mxu1 %v181_v28  ;;  %v5289_v27 = vld [vmem:[#allocation8 + $0x180] sm:$0xff]  ;;  %v5291_v28 = vld [vmem:[#allocation8 + $0x190] sm:$0xff] }
  0x72   :  { %348 = vmatmul.mubr.f32.gmra.mxu0 %v5211_v29  ;;  %461 = vmatmul.mubr.f32.gmra.mxu1 %v5211_v29 }
  0x73   :  { %503 = vmatprep.subr.mxu0 %v172_v30  ;;  %616 = vmatprep.subr.mxu1 %v174_v31  ;;  %v5299_v30 = vld [vmem:[#allocation8 + $0x178] sm:$0xff]  ;;  %v5303_v31 = vld [vmem:[#allocation8 + $0x160] sm:$0xff] }
  0x74   :  { %504 = vmatpush1.msra.mxu0 %v171_v32  ;;  %617 = vmatpush1.msra.mxu1 %v173_v33  ;;  %v5305_v32 = vld [vmem:[#allocation8 + $0x170] sm:$0xff]  ;;  %v5309_v33 = vld [vmem:[#allocation8 + $0x148] sm:$0xff] }
  0x75   :  { %505 = vmatprep.subr.mxu0 %v164_v34  ;;  %618 = vmatprep.subr.mxu1 %v166_v35  ;;  %v5311_v34 = vld [vmem:[#allocation8 + $0x158] sm:$0xff]  ;;  %v5317_v35 = vld [vmem:[#allocation8 + $0x140] sm:$0xff] }
  0x76   :  { %353 = vmatprep.mubr.f32.mxu0 %v7702_v0  ;;  %466 = vmatprep.mubr.f32.mxu1 %v7702_v0 }
  0x77   :  { %506 = vmatpush1.msra.mxu0 %v163_v36  ;;  %619 = vmatpush1.msra.mxu1 %v165_v37  ;;  %v5319_v36 = vld [vmem:[#allocation8 + $0x150] sm:$0xff]  ;;  %v5327_v37 = vld [vmem:[#allocation8 + $0x138] sm:$0xff] }
  0x78   :  { %354 = vmatmul.mubr.f32.gmra.mxu0 %v5217_v38  ;;  %467 = vmatmul.mubr.f32.gmra.mxu1 %v5217_v38 }
  0x79   :  { %507 = vmatprep.subr.mxu0 %v156_v39  ;;  %620 = vmatprep.subr.mxu1 %v158_v40  ;;  %v5331_v39 = vld [vmem:[#allocation8 + $0x120] sm:$0xff]  ;;  %v5333_v40 = vld [vmem:[#allocation8 + $0x130] sm:$0xff] }
  0x7a   :  { %508 = vmatpush1.msra.mxu0 %v155_v41  ;;  %621 = vmatpush1.msra.mxu1 %v157_v42  ;;  %v5337_v41 = vld [vmem:[#allocation8 + $0x108] sm:$0xff]  ;;  %v5339_v42 = vld [vmem:[#allocation8 + $0x118] sm:$0xff] }
  0x7b   :  { %509 = vmatprep.subr.mxu0 %v148_v43  ;;  %622 = vmatprep.subr.mxu1 %v150_v44  ;;  %v5345_v43 = vld [vmem:[#allocation8 + $0x100] sm:$0xff]  ;;  %v5347_v44 = vld [vmem:[#allocation8 + $0x110] sm:$0xff] }
  0x7c   :  { %359 = vmatprep.mubr.f32.mxu0 %v7702_v0  ;;  %472 = vmatprep.mubr.f32.mxu1 %v7702_v0 }
  0x7d   :  { %510 = vmatpush1.msra.mxu0 %v147_v45  ;;  %623 = vmatpush1.msra.mxu1 %v149_v46  ;;  %v5355_v45 = vld [vmem:[#allocation8 + $0xf8] sm:$0xff]  ;;  %v5359_v46 = vld [vmem:[#allocation8 + $0xe0] sm:$0xff] }
  0x7e   :  { %360 = vmatmul.mubr.f32.gmra.mxu0 %v5223_v47  ;;  %473 = vmatmul.mubr.f32.gmra.mxu1 %v5223_v47 }
  0x7f   :  { %511 = vmatprep.subr.mxu0 %v140_v48  ;;  %624 = vmatprep.subr.mxu1 %v142_v49  ;;  %v5361_v48 = vld [vmem:[#allocation8 + $0xf0] sm:$0xff]  ;;  %v5365_v49 = vld [vmem:[#allocation8 + $0xc8] sm:$0xff] }
  0x80   :  { %512 = vmatpush1.msra.mxu0 %v139_v50  ;;  %625 = vmatpush1.msra.mxu1 %v141_v51  ;;  %v5367_v50 = vld [vmem:[#allocation8 + $0xd8] sm:$0xff]  ;;  %v5373_v51 = vld [vmem:[#allocation8 + $0xc0] sm:$0xff] }
  0x81   :  { %513 = vmatprep.subr.mxu0 %v132_v52  ;;  %626 = vmatprep.subr.mxu1 %v134_v53  ;;  %v5375_v52 = vld [vmem:[#allocation8 + $0xd0] sm:$0xff]  ;;  %v5383_v53 = vld [vmem:[#allocation8 + $0xb8] sm:$0xff] }
  0x82   :  { %365 = vmatprep.mubr.f32.mxu0 %v7702_v0  ;;  %478 = vmatprep.mubr.f32.mxu1 %v7702_v0 }
  0x83   :  { %514 = vmatpush1.msra.mxu0 %v131_v54  ;;  %627 = vmatpush1.msra.mxu1 %v133_v55  ;;  %v5387_v54 = vld [vmem:[#allocation8 + $0xa0] sm:$0xff]  ;;  %v5389_v55 = vld [vmem:[#allocation8 + $0xb0] sm:$0xff] }
  0x84   :  { %366 = vmatmul.mubr.f32.gmra.mxu0 %v5229_v56  ;;  %479 = vmatmul.mubr.f32.gmra.mxu1 %v5229_v56 }
  0x85   :  { %515 = vmatprep.subr.mxu0 %v124_v57  ;;  %628 = vmatprep.subr.mxu1 %v126_v58  ;;  %v5393_v57 = vld [vmem:[#allocation8 + $0x88] sm:$0xff]  ;;  %v5395_v58 = vld [vmem:[#allocation8 + $0x98] sm:$0xff] }
  0x86   :  { %516 = vmatpush1.msra.mxu0 %v123_v59  ;;  %629 = vmatpush1.msra.mxu1 %v125_v60  ;;  %v5401_v59 = vld [vmem:[#allocation8 + $0x80] sm:$0xff]  ;;  %v5403_v60 = vld [vmem:[#allocation8 + $0x90] sm:$0xff] }
  0x87   :  { %517 = vmatprep.subr.mxu0 %v116_v61  ;;  %630 = vmatprep.subr.mxu1 %v118_v62  ;;  %v5411_v61 = vld [vmem:[#allocation8 + $0x78] sm:$0xff]  ;;  %v5415_v62 = vld [vmem:[#allocation8 + $0x60] sm:$0xff] }
  0x88   :  { %371 = vmatprep.mubr.f32.mxu0 %v7702_v0  ;;  %484 = vmatprep.mubr.f32.mxu1 %v7702_v0 }
  0x89   :  { %518 = vmatpush1.msra.mxu0 %v115_v63  ;;  %631 = vmatpush1.msra.mxu1 %v117_v1  ;;  %v5417_v63 = vld [vmem:[#allocation8 + $0x70] sm:$0xff]  ;;  %v5421_v1 = vld [vmem:[#allocation8 + $0x48] sm:$0xff] }
  0x8a   :  { %372 = vmatmul.mubr.f32.gmra.mxu0 %v5235_v3  ;;  %485 = vmatmul.mubr.f32.gmra.mxu1 %v5235_v3  ;;  %7979 = vst [vmem:[#allocation17_spill] sm:$0xff] %v5421_v1 }
  0x8b   :  { %519 = vmatprep.subr.mxu0 %v108_v4  ;;  %632 = vmatprep.subr.mxu1 %v110_v5  ;;  %v5423_v4 = vld [vmem:[#allocation8 + $0x58] sm:$0xff]  ;;  %v5429_v5 = vld [vmem:[#allocation8 + $0x40] sm:$0xff] }
  0x8c   :  { %520 = vmatpush1.msra.mxu0 %v107_v6  ;;  %633 = vmatpush1.msra.mxu1 %v109_v7  ;;  %7980 = vst [vmem:[#allocation18_spill] sm:$0xff] %v5423_v4  ;;  %7981 = vst [vmem:[#allocation19_spill] sm:$0xff] %v5429_v5  ;;  %v5431_v6 = vld [vmem:[#allocation8 + $0x50] sm:$0xff]  ;;  %v5439_v7 = vld [vmem:[#allocation8 + $0x38] sm:$0xff] }
  0x8d   :  { %521 = vmatprep.subr.mxu0 %v100_v8  ;;  %634 = vmatprep.subr.mxu1 %v102_v9  ;;  %7982 = vst [vmem:[#allocation20_spill] sm:$0xff] %v5431_v6  ;;  %7984 = vst [vmem:[#allocation22_spill] sm:$0xff] %v5439_v7  ;;  %v5443_v8 = vld [vmem:[#allocation8 + $0x20] sm:$0xff]  ;;  %v5445_v9 = vld [vmem:[#allocation8 + $0x30] sm:$0xff] }
  0x8e   :  { %522 = vmatpush1.msra.mxu0 %v99_v10  ;;  %555 = vmatprep.mubr.f32.mxu0 %v7702_v0  ;;  %7985 = vst [vmem:[#allocation23_spill] sm:$0xff] %v5443_v8  ;;  %7986 = vst [vmem:[#allocation24_spill] sm:$0xff] %v5445_v9  ;;  %v5449_v10 = vld [vmem:[#allocation8 + $0x8] sm:$0xff] }
  0x8f   :  { %635 = vmatpush1.msra.mxu1 %v101_v12  ;;  %668 = vmatprep.mubr.f32.mxu1 %v7702_v0  ;;  %7987 = vst [vmem:[#allocation25_spill] sm:$0xff] %v5449_v10  ;;  %v5451_v12 = vld [vmem:[#allocation8 + $0x18] sm:$0xff] }
  0x90   :  { %556 = vmatmul.mubr.f32.vlgmr.msra.gmra.mxu0 %v5195_v2  ;;  %669 = vmatmul.mubr.f32.vlgmr.msra.gmra.mxu1 %v5195_v2  ;;  %v5269_v2 = vld [vmem:[#allocation8 + $0x1a8] sm:$0xff]  ;;  %7988 = vst [vmem:[#allocation26_spill] sm:$0xff] %v5451_v12 }
  0x91   :  { %852 = vmatprep.subr.mxu0 %v5242_v13  ;;  %923 = vmatprep.subr.mxu1 %v5244_v14 }
  0x92   :  { %853 = vmatpush1.msra.mxu0 %v5247_v15  ;;  %924 = vmatpush1.msra.mxu1 %v5249_v16 }
  0x93   :  { %854 = vmatprep.subr.mxu0 %v5253_v17  ;;  %925 = vmatprep.subr.mxu1 %v5255_v18 }
  0x94   :  { %561 = vmatprep.mubr.f32.mxu0 %v7702_v0  ;;  %674 = vmatprep.mubr.f32.mxu1 %v7702_v0 }
  0x95   :  { %855 = vmatpush1.msra.mxu0 %v5261_v19  ;;  %926 = vmatpush1.msra.mxu1 %v5263_v21 }
  0x96   :  { %562 = vmatmul.mubr.f32.gmra.mxu0 %v5199_v11  ;;  %675 = vmatmul.mubr.f32.gmra.mxu1 %v5199_v11  ;;  %v5297_v11 = vld [vmem:[#allocation8 + $0x168] sm:$0xff] }
  0x97   :  { %856 = vmatprep.subr.mxu0 %v5269_v2  ;;  %927 = vmatprep.subr.mxu1 %v5271_v22 }
  0x98   :  { %857 = vmatpush1.msra.mxu0 %v5275_v23  ;;  %928 = vmatpush1.msra.mxu1 %v5277_v24 }
  0x99   :  { %858 = vmatprep.subr.mxu0 %v5281_v25  ;;  %929 = vmatprep.subr.mxu1 %v5283_v26 }
  0x9a   :  { %567 = vmatprep.mubr.f32.mxu0 %v7702_v0  ;;  %680 = vmatprep.mubr.f32.mxu1 %v7702_v0 }
  0x9b   :  { %859 = vmatpush1.msra.mxu0 %v5289_v27  ;;  %930 = vmatpush1.msra.mxu1 %v5291_v28 }
  0x9c   :  { %568 = vmatmul.mubr.f32.gmra.mxu0 %v5205_v20  ;;  %681 = vmatmul.mubr.f32.gmra.mxu1 %v5205_v20  ;;  %v5325_v20 = vld [vmem:[#allocation8 + $0x128] sm:$0xff] }
  0x9d   :  { %860 = vmatprep.subr.mxu0 %v5297_v11  ;;  %931 = vmatprep.subr.mxu1 %v5299_v30 }
  0x9e   :  { %861 = vmatpush1.msra.mxu0 %v5303_v31  ;;  %932 = vmatpush1.msra.mxu1 %v5305_v32 }
  0x9f   :  { %862 = vmatprep.subr.mxu0 %v5309_v33  ;;  %933 = vmatprep.subr.mxu1 %v5311_v34 }
  0xa0   :  { %573 = vmatprep.mubr.f32.mxu0 %v7702_v0  ;;  %686 = vmatprep.mubr.f32.mxu1 %v7702_v0 }
  0xa1   :  { %863 = vmatpush1.msra.mxu0 %v5317_v35  ;;  %934 = vmatpush1.msra.mxu1 %v5319_v36 }
  0xa2   :  { %574 = vmatmul.mubr.f32.gmra.mxu0 %v5211_v29  ;;  %687 = vmatmul.mubr.f32.gmra.mxu1 %v5211_v29  ;;  %v5353_v29 = vld [vmem:[#allocation8 + $0xe8] sm:$0xff] }
  0xa3   :  { %864 = vmatprep.subr.mxu0 %v5325_v20  ;;  %935 = vmatprep.subr.mxu1 %v5327_v37 }
  0xa4   :  { %865 = vmatpush1.msra.mxu0 %v5331_v39  ;;  %936 = vmatpush1.msra.mxu1 %v5333_v40 }
  0xa5   :  { %866 = vmatprep.subr.mxu0 %v5337_v41  ;;  %937 = vmatprep.subr.mxu1 %v5339_v42 }
  0xa6   :  { %579 = vmatprep.mubr.f32.mxu0 %v7702_v0  ;;  %692 = vmatprep.mubr.f32.mxu1 %v7702_v0 }
  0xa7   :  { %867 = vmatpush1.msra.mxu0 %v5345_v43  ;;  %938 = vmatpush1.msra.mxu1 %v5347_v44 }
  0xa8   :  { %580 = vmatmul.mubr.f32.gmra.mxu0 %v5217_v38  ;;  %693 = vmatmul.mubr.f32.gmra.mxu1 %v5217_v38  ;;  %v5381_v38 = vld [vmem:[#allocation8 + $0xa8] sm:$0xff] }
  0xa9   :  { %868 = vmatprep.subr.mxu0 %v5353_v29  ;;  %939 = vmatprep.subr.mxu1 %v5355_v45 }
  0xaa   :  { %869 = vmatpush1.msra.mxu0 %v5359_v46  ;;  %940 = vmatpush1.msra.mxu1 %v5361_v48 }
  0xab   :  { %870 = vmatprep.subr.mxu0 %v5365_v49  ;;  %941 = vmatprep.subr.mxu1 %v5367_v50 }
  0xac   :  { %585 = vmatprep.mubr.f32.mxu0 %v7702_v0  ;;  %698 = vmatprep.mubr.f32.mxu1 %v7702_v0 }
  0xad   :  { %871 = vmatpush1.msra.mxu0 %v5373_v51  ;;  %942 = vmatpush1.msra.mxu1 %v5375_v52 }
  0xae   :  { %586 = vmatmul.mubr.f32.gmra.mxu0 %v5223_v47  ;;  %699 = vmatmul.mubr.f32.gmra.mxu1 %v5223_v47  ;;  %v5409_v47 = vld [vmem:[#allocation8 + $0x68] sm:$0xff] }
  0xaf   :  { %872 = vmatprep.subr.mxu0 %v5381_v38  ;;  %943 = vmatprep.subr.mxu1 %v5383_v53 }
  0xb0   :  { %873 = vmatpush1.msra.mxu0 %v5387_v54  ;;  %944 = vmatpush1.msra.mxu1 %v5389_v55 }
  0xb1   :  { %874 = vmatprep.subr.mxu0 %v5393_v57  ;;  %945 = vmatprep.subr.mxu1 %v5395_v58 }
  0xb2   :  { %591 = vmatprep.mubr.f32.mxu0 %v7702_v0  ;;  %704 = vmatprep.mubr.f32.mxu1 %v7702_v0 }
  0xb3   :  { %875 = vmatpush1.msra.mxu0 %v5401_v59  ;;  %946 = vmatpush1.msra.mxu1 %v5403_v60 }
  0xb4   :  { %592 = vmatmul.mubr.f32.gmra.mxu0 %v5229_v56  ;;  %705 = vmatmul.mubr.f32.gmra.mxu1 %v5229_v56  ;;  %v5437_v56 = vld [vmem:[#allocation8 + $0x28] sm:$0xff] }
  0xb5   :  { %876 = vmatprep.subr.mxu0 %v5409_v47  ;;  %947 = vmatprep.subr.mxu1 %v5411_v61  ;;  %7983 = vst [vmem:[#allocation21_spill] sm:$0xff] %v5437_v56 }
  0xb6   :  { %877 = vmatpush1.msra.mxu0 %v5415_v62  ;;  %948 = vmatpush1.msra.mxu1 %v5417_v63 }
  0xb7   :  { %878 = vmatprep.subr.mxu0 %v5421_v1  ;;  %949 = vmatprep.subr.mxu1 %v5423_v4  ;;  %v5491_v4 = vld [vmem:[#allocation9 + $0x1b8] sm:$0xff]  ;;  %v5495_v1 = vld [vmem:[#allocation9 + $0x1a0] sm:$0xff] }
  0xb8   :  { %597 = vmatprep.mubr.f32.mxu0 %v7702_v0  ;;  %710 = vmatprep.mubr.f32.mxu1 %v7702_v0  ;;  %v5455_v0 = vld [vmem:[#allocation8] sm:$0xff]  ;;  %8001 = vst [vmem:[#allocation38_spill] sm:$0xff] %v5491_v4  ;;  %8002 = vst [vmem:[#allocation39_spill] sm:$0xff] %v5495_v1 }
  0xb9   :  { %879 = vmatpush1.msra.mxu0 %v5429_v5  ;;  %950 = vmatpush1.msra.mxu1 %v5431_v6  ;;  %7989 = vst [vmem:[#allocation27_spill] sm:$0xff] %v5455_v0  ;;  %v5459_v6 = vld [vmem:[#allocation8 + $0x10] sm:$0xff]  ;;  %v5465_v5 = vld [vmem:[#allocation9 + $0x1e8] sm:$0xff] }
  0xba   :  { %598 = vmatmul.mubr.f32.gmra.mxu0 %v5235_v3  ;;  %711 = vmatmul.mubr.f32.gmra.mxu1 %v5235_v3  ;;  %7990 = vst [vmem:[#allocation28_spill] sm:$0xff] %v5459_v6  ;;  %v7991_v3 = vmov 0.0   ;;  %7992 = vst [vmem:[#allocation29_spill] sm:$0xff] %v5465_v5 }
  0xbb   :  { %880 = vmatprep.subr.mxu0 %v5437_v56  ;;  %951 = vmatprep.subr.mxu1 %v5439_v7  ;;  %v5467_v56 = vld [vmem:[#allocation9 + $0x1f8] sm:$0xff]  ;;  %v5489_v7 = vld [vmem:[#allocation9 + $0x1a8] sm:$0xff] }
  0xbc   :  { %881 = vmatpush1.msra.mxu0 %v5443_v8  ;;  %952 = vmatpush1.msra.mxu1 %v5445_v9  ;;  %7993 = vst [vmem:[#allocation30_spill] sm:$0xff] %v5467_v56  ;;  %v5471_v8 = vld [vmem:[#allocation9 + $0x1e0] sm:$0xff]  ;;  %v5473_v9 = vld [vmem:[#allocation9 + $0x1f0] sm:$0xff]  ;;  %8000 = vst [vmem:[#allocation37_spill] sm:$0xff] %v5489_v7 }
  0xbd   :  { %882 = vmatprep.subr.mxu0 %v5449_v10  ;;  %953 = vmatprep.subr.mxu1 %v5451_v12  ;;  %7994 = vst [vmem:[#allocation31_spill] sm:$0xff] %v5471_v8  ;;  %7995 = vst [vmem:[#allocation32_spill] sm:$0xff] %v5473_v9  ;;  %v5477_v12 = vld [vmem:[#allocation9 + $0x1c8] sm:$0xff]  ;;  %v5483_v10 = vld [vmem:[#allocation9 + $0x1c0] sm:$0xff] }
  0xbe   :  { %883 = vmatpush1.msra.mxu0 %v5455_v0  ;;  %916 = vmatprep.mubr.f32.mxu0 %v7991_v3  ;;  %7996 = vst [vmem:[#allocation33_spill] sm:$0xff] %v5477_v12  ;;  %v5479_v0 = vld [vmem:[#allocation9 + $0x1d8] sm:$0xff]  ;;  %7998 = vst [vmem:[#allocation35_spill] sm:$0xff] %v5483_v10 }
  0xbf   :  { %954 = vmatpush1.msra.mxu1 %v5459_v6  ;;  %987 = vmatprep.mubr.f32.mxu1 %v7991_v3  ;;  %7997 = vst [vmem:[#allocation34_spill] sm:$0xff] %v5479_v0  ;;  %v5485_v6 = vld [vmem:[#allocation9 + $0x1d0] sm:$0xff] }
  0xc0   :  { %917 = vmatmul.mubr.f32.vlgmr.msra.gmra.mxu0 %v7991_v3  ;;  %988 = vmatmul.mubr.f32.vlgmr.msra.gmra.mxu1 %v7991_v3  ;;  %7999 = vst [vmem:[#allocation36_spill] sm:$0xff] %v5485_v6 }
  0xc1   :  { %1069 = vmatprep.subr.mxu0 %v5465_v5  ;;  %1140 = vmatprep.subr.mxu1 %v5467_v56  ;;  %v5497_v5 = vld [vmem:[#allocation9 + $0x1b0] sm:$0xff]  ;;  %v5501_v56 = vld [vmem:[#allocation9 + $0x188] sm:$0xff] }
  0xc2   :  { %1070 = vmatpush1.msra.mxu0 %v5471_v8  ;;  %1141 = vmatpush1.msra.mxu1 %v5473_v9  ;;  %8003 = vst [vmem:[#allocation40_spill] sm:$0xff] %v5497_v5  ;;  %8004 = vst [vmem:[#allocation41_spill] sm:$0xff] %v5501_v56  ;;  %v5503_v8 = vld [vmem:[#allocation9 + $0x198] sm:$0xff]  ;;  %v5507_v9 = vld [vmem:[#allocation9 + $0x180] sm:$0xff] }
  0xc3   :  { %1071 = vmatprep.subr.mxu0 %v5477_v12  ;;  %1142 = vmatprep.subr.mxu1 %v5479_v0  ;;  %8005 = vst [vmem:[#allocation42_spill] sm:$0xff] %v5503_v8  ;;  %8006 = vst [vmem:[#allocation43_spill] sm:$0xff] %v5507_v9  ;;  %v5509_v12 = vld [vmem:[#allocation9 + $0x190] sm:$0xff]  ;;  %v5513_v0 = vld [vmem:[#allocation9 + $0x168] sm:$0xff] }
  0xc4   :  { %1072 = vmatpush1.msra.mxu0 %v5483_v10  ;;  %1143 = vmatpush1.msra.mxu1 %v5485_v6  ;;  %8007 = vst [vmem:[#allocation44_spill] sm:$0xff] %v5509_v12  ;;  %8008 = vst [vmem:[#allocation45_spill] sm:$0xff] %v5513_v0  ;;  %v5515_v10 = vld [vmem:[#allocation9 + $0x178] sm:$0xff]  ;;  %v5519_v6 = vld [vmem:[#allocation9 + $0x160] sm:$0xff] }
  0xc5   :  { %1073 = vmatprep.subr.mxu0 %v5489_v7  ;;  %1144 = vmatprep.subr.mxu1 %v5491_v4  ;;  %8009 = vst [vmem:[#allocation46_spill] sm:$0xff] %v5515_v10  ;;  %8010 = vst [vmem:[#allocation47_spill] sm:$0xff] %v5519_v6  ;;  %v5521_v7 = vld [vmem:[#allocation9 + $0x170] sm:$0xff]  ;;  %v5525_v4 = vld [vmem:[#allocation9 + $0x148] sm:$0xff] }
  0xc6   :  { %1074 = vmatpush1.msra.mxu0 %v5495_v1  ;;  %1145 = vmatpush1.msra.mxu1 %v5497_v5  ;;  %8011 = vst [vmem:[#allocation48_spill] sm:$0xff] %v5521_v7  ;;  %8012 = vst [vmem:[#allocation49_spill] sm:$0xff] %v5525_v4  ;;  %v5527_v1 = vld [vmem:[#allocation9 + $0x158] sm:$0xff]  ;;  %v5531_v5 = vld [vmem:[#allocation9 + $0x140] sm:$0xff] }
  0xc7   :  { %1075 = vmatprep.subr.mxu0 %v5501_v56  ;;  %1146 = vmatprep.subr.mxu1 %v5503_v8  ;;  %8013 = vst [vmem:[#allocation50_spill] sm:$0xff] %v5527_v1  ;;  %8014 = vst [vmem:[#allocation51_spill] sm:$0xff] %v5531_v5  ;;  %v5533_v56 = vld [vmem:[#allocation9 + $0x150] sm:$0xff]  ;;  %v5537_v8 = vld [vmem:[#allocation9 + $0x128] sm:$0xff] }
  0xc8   :  { %1076 = vmatpush1.msra.mxu0 %v5507_v9  ;;  %1147 = vmatpush1.msra.mxu1 %v5509_v12  ;;  %8015 = vst [vmem:[#allocation52_spill] sm:$0xff] %v5533_v56  ;;  %8016 = vst [vmem:[#allocation53_spill] sm:$0xff] %v5537_v8  ;;  %v5539_v9 = vld [vmem:[#allocation9 + $0x138] sm:$0xff]  ;;  %v5543_v12 = vld [vmem:[#allocation9 + $0x120] sm:$0xff] }
  0xc9   :  { %1077 = vmatprep.subr.mxu0 %v5513_v0  ;;  %1148 = vmatprep.subr.mxu1 %v5515_v10  ;;  %8017 = vst [vmem:[#allocation54_spill] sm:$0xff] %v5539_v9  ;;  %8018 = vst [vmem:[#allocation55_spill] sm:$0xff] %v5543_v12  ;;  %v5545_v0 = vld [vmem:[#allocation9 + $0x130] sm:$0xff]  ;;  %v5549_v10 = vld [vmem:[#allocation9 + $0x108] sm:$0xff] }
  0xca   :  { %1078 = vmatpush1.msra.mxu0 %v5519_v6  ;;  %1149 = vmatpush1.msra.mxu1 %v5521_v7  ;;  %8019 = vst [vmem:[#allocation56_spill] sm:$0xff] %v5545_v0  ;;  %8020 = vst [vmem:[#allocation57_spill] sm:$0xff] %v5549_v10  ;;  %v5551_v6 = vld [vmem:[#allocation9 + $0x118] sm:$0xff]  ;;  %v5555_v7 = vld [vmem:[#allocation9 + $0x100] sm:$0xff] }
  0xcb   :  { %1079 = vmatprep.subr.mxu0 %v5525_v4  ;;  %1150 = vmatprep.subr.mxu1 %v5527_v1  ;;  %8021 = vst [vmem:[#allocation58_spill] sm:$0xff] %v5551_v6  ;;  %8022 = vst [vmem:[#allocation59_spill] sm:$0xff] %v5555_v7  ;;  %v5557_v4 = vld [vmem:[#allocation9 + $0x110] sm:$0xff]  ;;  %v5561_v1 = vld [vmem:[#allocation9 + $0xe8] sm:$0xff] }
  0xcc   :  { %1080 = vmatpush1.msra.mxu0 %v5531_v5  ;;  %1151 = vmatpush1.msra.mxu1 %v5533_v56  ;;  %8023 = vst [vmem:[#allocation60_spill] sm:$0xff] %v5557_v4  ;;  %8024 = vst [vmem:[#allocation61_spill] sm:$0xff] %v5561_v1  ;;  %v5563_v5 = vld [vmem:[#allocation9 + $0xf8] sm:$0xff]  ;;  %v5567_v56 = vld [vmem:[#allocation9 + $0xe0] sm:$0xff] }
  0xcd   :  { %1081 = vmatprep.subr.mxu0 %v5537_v8  ;;  %1152 = vmatprep.subr.mxu1 %v5539_v9  ;;  %8025 = vst [vmem:[#allocation62_spill] sm:$0xff] %v5563_v5  ;;  %8026 = vst [vmem:[#allocation63_spill] sm:$0xff] %v5567_v56  ;;  %v5569_v8 = vld [vmem:[#allocation9 + $0xf0] sm:$0xff]  ;;  %v5573_v9 = vld [vmem:[#allocation9 + $0xc8] sm:$0xff] }
  0xce   :  { %1082 = vmatpush1.msra.mxu0 %v5543_v12  ;;  %1153 = vmatpush1.msra.mxu1 %v5545_v0  ;;  %8027 = vst [vmem:[#allocation64_spill] sm:$0xff] %v5569_v8  ;;  %8028 = vst [vmem:[#allocation65_spill] sm:$0xff] %v5573_v9  ;;  %v5575_v12 = vld [vmem:[#allocation9 + $0xd8] sm:$0xff]  ;;  %v5579_v0 = vld [vmem:[#allocation9 + $0xc0] sm:$0xff] }
  0xcf   :  { %1083 = vmatprep.subr.mxu0 %v5549_v10  ;;  %1154 = vmatprep.subr.mxu1 %v5551_v6  ;;  %8029 = vst [vmem:[#allocation66_spill] sm:$0xff] %v5575_v12  ;;  %8030 = vst [vmem:[#allocation67_spill] sm:$0xff] %v5579_v0  ;;  %v5581_v10 = vld [vmem:[#allocation9 + $0xd0] sm:$0xff]  ;;  %v5585_v6 = vld [vmem:[#allocation9 + $0xa8] sm:$0xff] }
  0xd0   :  { %1084 = vmatpush1.msra.mxu0 %v5555_v7  ;;  %1155 = vmatpush1.msra.mxu1 %v5557_v4  ;;  %8031 = vst [vmem:[#allocation68_spill] sm:$0xff] %v5581_v10  ;;  %8032 = vst [vmem:[#allocation69_spill] sm:$0xff] %v5585_v6  ;;  %v5587_v7 = vld [vmem:[#allocation9 + $0xb8] sm:$0xff]  ;;  %v5591_v4 = vld [vmem:[#allocation9 + $0xa0] sm:$0xff] }
  0xd1   :  { %1085 = vmatprep.subr.mxu0 %v5561_v1  ;;  %1156 = vmatprep.subr.mxu1 %v5563_v5  ;;  %8033 = vst [vmem:[#allocation70_spill] sm:$0xff] %v5587_v7  ;;  %8034 = vst [vmem:[#allocation71_spill] sm:$0xff] %v5591_v4  ;;  %v5593_v1 = vld [vmem:[#allocation9 + $0xb0] sm:$0xff]  ;;  %v5597_v5 = vld [vmem:[#allocation9 + $0x88] sm:$0xff] }
  0xd2   :  { %1086 = vmatpush1.msra.mxu0 %v5567_v56  ;;  %1157 = vmatpush1.msra.mxu1 %v5569_v8  ;;  %8035 = vst [vmem:[#allocation72_spill] sm:$0xff] %v5593_v1  ;;  %8036 = vst [vmem:[#allocation73_spill] sm:$0xff] %v5597_v5  ;;  %v5599_v56 = vld [vmem:[#allocation9 + $0x98] sm:$0xff]  ;;  %v5603_v8 = vld [vmem:[#allocation9 + $0x80] sm:$0xff] }
  0xd3   :  { %1087 = vmatprep.subr.mxu0 %v5573_v9  ;;  %1158 = vmatprep.subr.mxu1 %v5575_v12  ;;  %8037 = vst [vmem:[#allocation74_spill] sm:$0xff] %v5599_v56  ;;  %8038 = vst [vmem:[#allocation75_spill] sm:$0xff] %v5603_v8  ;;  %v5605_v9 = vld [vmem:[#allocation9 + $0x90] sm:$0xff]  ;;  %v5609_v12 = vld [vmem:[#allocation9 + $0x68] sm:$0xff] }
  0xd4   :  { %1088 = vmatpush1.msra.mxu0 %v5579_v0  ;;  %1159 = vmatpush1.msra.mxu1 %v5581_v10  ;;  %8039 = vst [vmem:[#allocation76_spill] sm:$0xff] %v5605_v9  ;;  %8040 = vst [vmem:[#allocation77_spill] sm:$0xff] %v5609_v12  ;;  %v5611_v0 = vld [vmem:[#allocation9 + $0x78] sm:$0xff]  ;;  %v5615_v10 = vld [vmem:[#allocation9 + $0x60] sm:$0xff] }
  0xd5   :  { %1089 = vmatprep.subr.mxu0 %v5585_v6  ;;  %1160 = vmatprep.subr.mxu1 %v5587_v7  ;;  %8041 = vst [vmem:[#allocation78_spill] sm:$0xff] %v5611_v0  ;;  %8042 = vst [vmem:[#allocation79_spill] sm:$0xff] %v5615_v10  ;;  %v5617_v6 = vld [vmem:[#allocation9 + $0x70] sm:$0xff]  ;;  %v5621_v7 = vld [vmem:[#allocation9 + $0x48] sm:$0xff] }
  0xd6   :  { %1090 = vmatpush1.msra.mxu0 %v5591_v4  ;;  %1161 = vmatpush1.msra.mxu1 %v5593_v1  ;;  %8043 = vst [vmem:[#allocation80_spill] sm:$0xff] %v5617_v6  ;;  %v5623_v4 = vld [vmem:[#allocation9 + $0x58] sm:$0xff]  ;;  %v5627_v1 = vld [vmem:[#allocation9 + $0x40] sm:$0xff] }
  0xd7   :  { %1091 = vmatprep.subr.mxu0 %v5597_v5  ;;  %1162 = vmatprep.subr.mxu1 %v5599_v56  ;;  %8044 = vst [vmem:[#allocation81_spill] sm:$0xff] %v5623_v4  ;;  %v5629_v5 = vld [vmem:[#allocation9 + $0x50] sm:$0xff]  ;;  %v5633_v56 = vld [vmem:[#allocation9 + $0x28] sm:$0xff] }
  0xd8   :  { %1092 = vmatpush1.msra.mxu0 %v5603_v8  ;;  %1163 = vmatpush1.msra.mxu1 %v5605_v9  ;;  %v5635_v8 = vld [vmem:[#allocation9 + $0x38] sm:$0xff]  ;;  %v5639_v9 = vld [vmem:[#allocation9 + $0x20] sm:$0xff] }
  0xd9   :  { %1093 = vmatprep.subr.mxu0 %v5609_v12  ;;  %1164 = vmatprep.subr.mxu1 %v5611_v0  ;;  %v5641_v12 = vld [vmem:[#allocation9 + $0x30] sm:$0xff]  ;;  %v5645_v0 = vld [vmem:[#allocation9 + $0x8] sm:$0xff] }
  0xda   :  { %1094 = vmatpush1.msra.mxu0 %v5615_v10  ;;  %1165 = vmatpush1.msra.mxu1 %v5617_v6  ;;  %v5647_v10 = vld [vmem:[#allocation9 + $0x18] sm:$0xff]  ;;  %v5651_v6 = vld [vmem:[#allocation9] sm:$0xff] }
  0xdb   :  { %1095 = vmatprep.subr.mxu0 %v5621_v7  ;;  %1166 = vmatprep.subr.mxu1 %v5623_v4  ;;  %v5655_v4 = vld [vmem:[#allocation9 + $0x10] sm:$0xff] }
  0xdc   :  { %1096 = vmatpush1.msra.mxu0 %v5627_v1  ;;  %1167 = vmatpush1.msra.mxu1 %v5629_v5 }
  0xdd   :  { %1097 = vmatprep.subr.mxu0 %v5633_v56  ;;  %1168 = vmatprep.subr.mxu1 %v5635_v8 }
  0xde   :  { %1098 = vmatpush1.msra.mxu0 %v5639_v9  ;;  %1169 = vmatpush1.msra.mxu1 %v5641_v12 }
  0xdf   :  { %1099 = vmatprep.subr.mxu0 %v5645_v0  ;;  %1170 = vmatprep.subr.mxu1 %v5647_v10 }
  0xe0   :  { %1100 = vmatpush1.msra.mxu0 %v5651_v6  ;;  %1133 = vmatprep.mubr.f32.mxu0 %v7991_v3 }
  0xe1   :  { %1171 = vmatpush1.msra.mxu1 %v5655_v4  ;;  %1204 = vmatprep.mubr.f32.mxu1 %v7991_v3 }
  0xe2   :  { %1134 = vmatmul.mubr.f32.vlgmr.msra.gmra.mxu0 %v7991_v3  ;;  %1205 = vmatmul.mubr.f32.vlgmr.msra.gmra.mxu1 %v7991_v3 }
  0xe3   :  { %1342 = vmatprep.subr.mxu0 %v5242_v13  ;;  %1413 = vmatprep.subr.mxu1 %v5244_v14  ;;  %v8045_v13 = vld [vmem:[#allocation17_spill] sm:$0xff]  ;;  %v8046_v14 = vld [vmem:[#allocation18_spill] sm:$0xff] }
  0xe4   :  { %1343 = vmatpush1.msra.mxu0 %v5247_v15  ;;  %1414 = vmatpush1.msra.mxu1 %v5249_v16  ;;  %v8047_v15 = vld [vmem:[#allocation19_spill] sm:$0xff]  ;;  %v8048_v16 = vld [vmem:[#allocation20_spill] sm:$0xff] }
  0xe5   :  { %1344 = vmatprep.subr.mxu0 %v5253_v17  ;;  %1415 = vmatprep.subr.mxu1 %v5255_v18  ;;  %v8049_v17 = vld [vmem:[#allocation21_spill] sm:$0xff]  ;;  %v8050_v18 = vld [vmem:[#allocation22_spill] sm:$0xff] }
  0xe6   :  { %1345 = vmatpush1.msra.mxu0 %v5261_v19  ;;  %1416 = vmatpush1.msra.mxu1 %v5263_v21  ;;  %v8051_v19 = vld [vmem:[#allocation23_spill] sm:$0xff]  ;;  %v8052_v21 = vld [vmem:[#allocation24_spill] sm:$0xff] }
  0xe7   :  { %1346 = vmatprep.subr.mxu0 %v5269_v2  ;;  %1417 = vmatprep.subr.mxu1 %v5271_v22  ;;  %v8053_v2 = vld [vmem:[#allocation25_spill] sm:$0xff]  ;;  %v8054_v22 = vld [vmem:[#allocation26_spill] sm:$0xff] }
  0xe8   :  { %1347 = vmatpush1.msra.mxu0 %v5275_v23  ;;  %1418 = vmatpush1.msra.mxu1 %v5277_v24  ;;  %v8055_v23 = vld [vmem:[#allocation27_spill] sm:$0xff]  ;;  %v8056_v24 = vld [vmem:[#allocation28_spill] sm:$0xff] }
  0xe9   :  { %1348 = vmatprep.subr.mxu0 %v5281_v25  ;;  %1419 = vmatprep.subr.mxu1 %v5283_v26  ;;  %v8057_v25 = vld [vmem:[#allocation29_spill] sm:$0xff]  ;;  %v8058_v26 = vld [vmem:[#allocation30_spill] sm:$0xff] }
  0xea   :  { %1349 = vmatpush1.msra.mxu0 %v5289_v27  ;;  %1420 = vmatpush1.msra.mxu1 %v5291_v28  ;;  %v225_v27 = vlaneseq }
  0xeb   :  { %1350 = vmatprep.subr.mxu0 %v5297_v11  ;;  %1421 = vmatprep.subr.mxu1 %v5299_v30 }
  0xec   :  { %1351 = vmatpush1.msra.mxu0 %v5303_v31  ;;  %1422 = vmatpush1.msra.mxu1 %v5305_v32  ;;  %v5733_v28 = vshrl.u32 %v225_v27, 7 }
  0xed   :  { %1352 = vmatprep.subr.mxu0 %v5309_v33  ;;  %1423 = vmatprep.subr.mxu1 %v5311_v34  ;;  %v5741_v33 = vld [vmem:[#allocation11] sm:$0xff] }
  0xee   :  { %1353 = vmatpush1.msra.mxu0 %v5317_v35  ;;  %1424 = vmatpush1.msra.mxu1 %v5319_v36  ;;  %v227_v31 = vsub.s32 0, %v5733_v28  ;;  %v235_v32 = vsub.s32 2, %v5733_v28  ;;  %v231_v36 = vsub.s32 1, %v5733_v28 }
  0xef   :  { %1354 = vmatprep.subr.mxu0 %v5325_v20  ;;  %1425 = vmatprep.subr.mxu1 %v5327_v37  ;;  %v239_v20 = vsub.s32 3, %v5733_v28 }
  0xf0   :  { %1355 = vmatpush1.msra.mxu0 %v5331_v39  ;;  %1426 = vmatpush1.msra.mxu1 %v5333_v40  ;;  %v5750_v37 = vrot.slane %v5741_v33, %v227_v31  ;;  %v5753_v39 = vrot.slane %v5741_v33, %v235_v32 }
  0xf1   :  { %1356 = vmatprep.subr.mxu0 %v5337_v41  ;;  %1427 = vmatprep.subr.mxu1 %v5339_v42  ;;  %v5756_v42 = vrot.slane %v5741_v33, %v231_v36 }
  0xf2   :  { %1357 = vmatpush1.msra.mxu0 %v5345_v43  ;;  %1428 = vmatpush1.msra.mxu1 %v5347_v44  ;;  %v5759_v43 = vrot.slane %v5741_v33, %v239_v20 }
  0xf3   :  { %1358 = vmatprep.subr.mxu0 %v5353_v29  ;;  %1429 = vmatprep.subr.mxu1 %v5355_v45 }
  0xf4   :  { %1359 = vmatpush1.msra.mxu0 %v5359_v46  ;;  %1430 = vmatpush1.msra.mxu1 %v5361_v48 }
  0xf5   :  { %1360 = vmatprep.subr.mxu0 %v5365_v49  ;;  %1431 = vmatprep.subr.mxu1 %v5367_v50 }
  0xf6   :  { %1361 = vmatpush1.msra.mxu0 %v5373_v51  ;;  %1432 = vmatpush1.msra.mxu1 %v5375_v52 }
  0xf7   :  { %1362 = vmatprep.subr.mxu0 %v5381_v38  ;;  %1433 = vmatprep.subr.mxu1 %v5383_v53 }
  0xf8   :  { %1363 = vmatpush1.msra.mxu0 %v5387_v54  ;;  %1434 = vmatpush1.msra.mxu1 %v5389_v55 }
  0xf9   :  { %1364 = vmatprep.subr.mxu0 %v5393_v57  ;;  %1435 = vmatprep.subr.mxu1 %v5395_v58 }
  0xfa   :  { %1365 = vmatpush1.msra.mxu0 %v5401_v59  ;;  %1436 = vmatpush1.msra.mxu1 %v5403_v60 }
  0xfb   :  { %1366 = vmatprep.subr.mxu0 %v5409_v47  ;;  %1437 = vmatprep.subr.mxu1 %v5411_v61 }
  0xfc   :  { %1367 = vmatpush1.msra.mxu0 %v5415_v62  ;;  %1438 = vmatpush1.msra.mxu1 %v5417_v63 }
  0xfd   :  { %1368 = vmatprep.subr.mxu0 %v8045_v13  ;;  %1439 = vmatprep.subr.mxu1 %v8046_v14 }
  0xfe   :  { %1369 = vmatpush1.msra.mxu0 %v8047_v15  ;;  %1440 = vmatpush1.msra.mxu1 %v8048_v16 }
  0xff   :  { %1370 = vmatprep.subr.mxu0 %v8049_v17  ;;  %1441 = vmatprep.subr.mxu1 %v8050_v18 }
 0x100   :  { %1371 = vmatpush1.msra.mxu0 %v8051_v19  ;;  %1442 = vmatpush1.msra.mxu1 %v8052_v21 }
 0x101   :  { %1372 = vmatprep.subr.mxu0 %v8053_v2  ;;  %1443 = vmatprep.subr.mxu1 %v8054_v22 }
 0x102   :  { %1373 = vmatpush1.msra.mxu0 %v8055_v23  ;;  %1406 = vmatprep.mubr.f32.mxu0 %v7991_v3 }
 0x103   :  { %1444 = vmatpush1.msra.mxu1 %v8056_v24  ;;  %1477 = vmatprep.mubr.f32.mxu1 %v7991_v3 }
 0x104   :  { %1559 = vmatprep.subr.mxu0 %v8057_v25  ;;  %1630 = vmatprep.subr.mxu1 %v8058_v26 }
 0x120   :  { %v5735_v11 = vpop.f32.mrf.mxu0  ;;  %v5737_v30 = vpop.f32.mrf.mxu1 }
 0x122   :  { %v5743_v34 = vpop.f32.mrf.mxu0  ;;  %v5745_v35 = vpop.f32.mrf.mxu1 }
 0x126   :  { %v337_v40 = vpop.f32.mrf.mxu0  ;;  %v450_v41 = vpop.f32.mrf.mxu1 }
 0x127   :  { %v5762_v44 = vadd.f32 %v337_v40, %v5750_v37  ;;  %v5765_v29 = vadd.f32 %v450_v41, %v5753_v39 }
 0x128   :  { %v339_v45 = vpop.f32.mrf.mxu0  ;;  %v452_v46 = vpop.f32.mrf.mxu1 }
 0x129   :  { %v5768_v48 = vadd.f32 %v339_v45, %v5756_v42  ;;  %v5771_v49 = vadd.f32 %v452_v46, %v5759_v43 }
 0x12c   :  { %v343_v50 = vpop.f32.mrf.mxu0  ;;  %v456_v51 = vpop.f32.mrf.mxu1 }
 0x12d   :  { %v5774_v52 = vadd.f32 %v343_v50, %v5750_v37  ;;  %v5777_v38 = vadd.f32 %v456_v51, %v5753_v39 }
 0x12e   :  { %v345_v53 = vpop.f32.mrf.mxu0  ;;  %v458_v54 = vpop.f32.mrf.mxu1 }
 0x12f   :  { %8059 = vst [vmem:[#allocation17_spill] sm:$0xff] %v5774_v52  ;;  %8060 = vst [vmem:[#allocation18_spill] sm:$0xff] %v5777_v38  ;;  %v5780_v55 = vadd.f32 %v345_v53, %v5756_v42  ;;  %v5783_v57 = vadd.f32 %v458_v54, %v5759_v43  ;;  %v243_v53 = vsub.s32 4, %v5733_v28  ;;  %v251_v54 = vsub.s32 6, %v5733_v28  ;;  %v6179_v38 = vld [vmem:[#allocation8 + $0x60] sm:$0xff]  ;;  %v6185_v52 = vld [vmem:[#allocation8 + $0x48] sm:$0xff] }
 0x131   :  { %8061 = vst [vmem:[#allocation19_spill] sm:$0xff] %v5780_v55  ;;  %8062 = vst [vmem:[#allocation20_spill] sm:$0xff] %v5783_v57  ;;  %v6175_v57 = vld [vmem:[#allocation8 + $0x78] sm:$0xff]  ;;  %v6181_v55 = vld [vmem:[#allocation8 + $0x70] sm:$0xff] }
 0x132   :  { %v349_v58 = vpop.f32.mrf.mxu0  ;;  %v462_v59 = vpop.f32.mrf.mxu1 }
 0x133   :  { %v5786_v60 = vadd.f32 %v349_v58, %v5750_v37  ;;  %v5789_v47 = vadd.f32 %v462_v59, %v5753_v39 }
 0x134   :  { %v351_v61 = vpop.f32.mrf.mxu0  ;;  %v464_v62 = vpop.f32.mrf.mxu1 }
 0x135   :  { %8063 = vst [vmem:[#allocation21_spill] sm:$0xff] %v5786_v60  ;;  %8064 = vst [vmem:[#allocation22_spill] sm:$0xff] %v5789_v47  ;;  %v5792_v63 = vadd.f32 %v351_v61, %v5756_v42  ;;  %v5795_v13 = vadd.f32 %v464_v62, %v5759_v43  ;;  %v6155_v47 = vld [vmem:[#allocation8 + $0xa0] sm:$0xff]  ;;  %v6161_v60 = vld [vmem:[#allocation8 + $0x88] sm:$0xff] }
 0x137   :  { %8065 = vst [vmem:[#allocation23_spill] sm:$0xff] %v5792_v63  ;;  %8066 = vst [vmem:[#allocation24_spill] sm:$0xff] %v5795_v13  ;;  %v6151_v13 = vld [vmem:[#allocation8 + $0xb8] sm:$0xff]  ;;  %v6157_v63 = vld [vmem:[#allocation8 + $0xb0] sm:$0xff] }
 0x138   :  { %v355_v14 = vpop.f32.mrf.mxu0  ;;  %v468_v15 = vpop.f32.mrf.mxu1 }
 0x139   :  { %v5798_v16 = vadd.f32 %v355_v14, %v5750_v37  ;;  %v5801_v17 = vadd.f32 %v468_v15, %v5753_v39  ;;  %v247_v14 = vsub.s32 5, %v5733_v28  ;;  %v255_v15 = vsub.s32 7, %v5733_v28 }
 0x13a   :  { %v357_v18 = vpop.f32.mrf.mxu0  ;;  %v470_v19 = vpop.f32.mrf.mxu1 }
 0x13b   :  { %8067 = vst [vmem:[#allocation25_spill] sm:$0xff] %v5798_v16  ;;  %8068 = vst [vmem:[#allocation26_spill] sm:$0xff] %v5801_v17  ;;  %v5804_v21 = vadd.f32 %v357_v18, %v5756_v42  ;;  %v5807_v2 = vadd.f32 %v470_v19, %v5759_v43  ;;  %v445_v17 = vadd.f32 %v5737_v30, %v5753_v39 }
 0x13d   :  { %8069 = vst [vmem:[#allocation27_spill] sm:$0xff] %v5804_v21  ;;  %8070 = vst [vmem:[#allocation28_spill] sm:$0xff] %v5807_v2 }
 0x13e   :  { %v361_v22 = vpop.f32.mrf.mxu0  ;;  %v474_v23 = vpop.f32.mrf.mxu1 }
 0x13f   :  { %v5810_v24 = vadd.f32 %v361_v22, %v5750_v37  ;;  %v5813_v25 = vadd.f32 %v474_v23, %v5753_v39 }
 0x140   :  { %v363_v26 = vpop.f32.mrf.mxu0  ;;  %v476_v27 = vpop.f32.mrf.mxu1 }
 0x141   :  { %8071 = vst [vmem:[#allocation29_spill] sm:$0xff] %v5810_v24  ;;  %8072 = vst [vmem:[#allocation30_spill] sm:$0xff] %v5813_v25  ;;  %v5816_v31 = vadd.f32 %v363_v26, %v5756_v42  ;;  %v5819_v32 = vadd.f32 %v476_v27, %v5759_v43  ;;  %v5850_v26 = vrot.slane %v5741_v33, %v243_v53 }
 0x142   :  { %v5853_v27 = vrot.slane %v5741_v33, %v251_v54 }
 0x143   :  { %8073 = vst [vmem:[#allocation82_spill] sm:$0xff] %v5816_v31  ;;  %8074 = vst [vmem:[#allocation83_spill] sm:$0xff] %v5819_v32 }
 0x144   :  { %v367_v36 = vpop.f32.mrf.mxu0  ;;  %v480_v20 = vpop.f32.mrf.mxu1 }
 0x145   :  { %v5822_v40 = vadd.f32 %v367_v36, %v5750_v37  ;;  %v5825_v41 = vadd.f32 %v480_v20, %v5753_v39  ;;  %v5856_v36 = vrot.slane %v5741_v33, %v247_v14  ;;  %v5859_v20 = vrot.slane %v5741_v33, %v255_v15 }
 0x146   :  { %v369_v45 = vpop.f32.mrf.mxu0  ;;  %v482_v46 = vpop.f32.mrf.mxu1 }
 0x147   :  { %8075 = vst [vmem:[#allocation84_spill] sm:$0xff] %v5822_v40  ;;  %8076 = vst [vmem:[#allocation85_spill] sm:$0xff] %v5825_v41  ;;  %v5828_v50 = vadd.f32 %v369_v45, %v5756_v42  ;;  %v5831_v51 = vadd.f32 %v482_v46, %v5759_v43 }
 0x149   :  { %8077 = vst [vmem:[#allocation86_spill] sm:$0xff] %v5828_v50  ;;  %8078 = vst [vmem:[#allocation87_spill] sm:$0xff] %v5831_v51 }
 0x14a   :  { %v373_v58 = vpop.f32.mrf.mxu0  ;;  %v486_v59 = vpop.f32.mrf.mxu1 }
 0x14b   :  { %v5836_v61 = vadd.f32 %v373_v58, %v5750_v37  ;;  %v5839_v62 = vadd.f32 %v486_v59, %v5753_v39 }
 0x14c   :  { %v375_v18 = vpop.f32.mrf.mxu0  ;;  %v488_v19 = vpop.f32.mrf.mxu1 }
 0x14d   :  { %8079 = vst [vmem:[#allocation88_spill] sm:$0xff] %v5836_v61  ;;  %8080 = vst [vmem:[#allocation89_spill] sm:$0xff] %v5839_v62  ;;  %v5844_v22 = vadd.f32 %v375_v18, %v5756_v42  ;;  %v5847_v23 = vadd.f32 %v488_v19, %v5759_v43 }
 0x14f   :  { %8081 = vst [vmem:[#allocation90_spill] sm:$0xff] %v5844_v22  ;;  %8082 = vst [vmem:[#allocation91_spill] sm:$0xff] %v5847_v23 }
 0x150   :  { %v557_v28 = vpop.f32.mrf.mxu0  ;;  %v670_v45 = vpop.f32.mrf.mxu1 }
 0x151   :  { %v5862_v46 = vadd.f32 %v557_v28, %v5850_v26  ;;  %v5865_v58 = vadd.f32 %v670_v45, %v5853_v27 }
 0x152   :  { %v559_v59 = vpop.f32.mrf.mxu0  ;;  %v672_v53 = vpop.f32.mrf.mxu1 }
 0x153   :  { %8083 = vst [vmem:[#allocation92_spill] sm:$0xff] %v5862_v46  ;;  %8084 = vst [vmem:[#allocation93_spill] sm:$0xff] %v5865_v58  ;;  %v5868_v18 = vadd.f32 %v559_v59, %v5856_v36  ;;  %v5871_v54 = vadd.f32 %v672_v53, %v5859_v20 }
 0x155   :  { %8085 = vst [vmem:[#allocation94_spill] sm:$0xff] %v5868_v18  ;;  %8086 = vst [vmem:[#allocation95_spill] sm:$0xff] %v5871_v54 }
 0x156   :  { %v563_v14 = vpop.f32.mrf.mxu0  ;;  %v676_v19 = vpop.f32.mrf.mxu1 }
 0x157   :  { %v5874_v33 = vadd.f32 %v563_v14, %v5850_v26  ;;  %v5877_v15 = vadd.f32 %v676_v19, %v5853_v27 }
 0x158   :  { %v565_v28 = vpop.f32.mrf.mxu0  ;;  %v678_v46 = vpop.f32.mrf.mxu1 }
 0x159   :  { %8087 = vst [vmem:[#allocation96_spill] sm:$0xff] %v5874_v33  ;;  %8088 = vst [vmem:[#allocation97_spill] sm:$0xff] %v5877_v15  ;;  %v5880_v45 = vadd.f32 %v565_v28, %v5856_v36  ;;  %v5883_v58 = vadd.f32 %v678_v46, %v5859_v20 }
 0x15b   :  { %8089 = vst [vmem:[#allocation98_spill] sm:$0xff] %v5880_v45  ;;  %8090 = vst [vmem:[#allocation99_spill] sm:$0xff] %v5883_v58 }
 0x15c   :  { %v569_v59 = vpop.f32.mrf.mxu0  ;;  %v682_v18 = vpop.f32.mrf.mxu1 }
 0x15d   :  { %v5886_v53 = vadd.f32 %v569_v59, %v5850_v26  ;;  %v5889_v54 = vadd.f32 %v682_v18, %v5853_v27 }
 0x15e   :  { %v571_v14 = vpop.f32.mrf.mxu0  ;;  %v684_v23 = vpop.f32.mrf.mxu1 }
 0x15f   :  { %8091 = vst [vmem:[#allocation100_spill] sm:$0xff] %v5886_v53  ;;  %8092 = vst [vmem:[#allocation101_spill] sm:$0xff] %v5889_v54  ;;  %v5892_v19 = vadd.f32 %v571_v14, %v5856_v36  ;;  %v5895_v62 = vadd.f32 %v684_v23, %v5859_v20 }
 0x161   :  { %8093 = vst [vmem:[#allocation102_spill] sm:$0xff] %v5892_v19  ;;  %8094 = vst [vmem:[#allocation103_spill] sm:$0xff] %v5895_v62 }
 0x162   :  { %v575_v28 = vpop.f32.mrf.mxu0  ;;  %v688_v22 = vpop.f32.mrf.mxu1 }
 0x163   :  { %v5898_v46 = vadd.f32 %v575_v28, %v5850_v26  ;;  %v5901_v61 = vadd.f32 %v688_v22, %v5853_v27 }
 0x164   :  { %v577_v59 = vpop.f32.mrf.mxu0  ;;  %v690_v58 = vpop.f32.mrf.mxu1 }
 0x165   :  { %8095 = vst [vmem:[#allocation104_spill] sm:$0xff] %v5898_v46  ;;  %8096 = vst [vmem:[#allocation105_spill] sm:$0xff] %v5901_v61  ;;  %v5904_v18 = vadd.f32 %v577_v59, %v5856_v36  ;;  %v5907_v15 = vadd.f32 %v690_v58, %v5859_v20 }
 0x167   :  { %8097 = vst [vmem:[#allocation106_spill] sm:$0xff] %v5904_v18  ;;  %8098 = vst [vmem:[#allocation107_spill] sm:$0xff] %v5907_v15 }
 0x168   :  { %v581_v14 = vpop.f32.mrf.mxu0  ;;  %v694_v45 = vpop.f32.mrf.mxu1 }
 0x169   :  { %v5910_v23 = vadd.f32 %v581_v14, %v5850_v26  ;;  %v5913_v33 = vadd.f32 %v694_v45, %v5853_v27 }
 0x16a   :  { %v583_v28 = vpop.f32.mrf.mxu0  ;;  %v696_v51 = vpop.f32.mrf.mxu1 }
 0x16b   :  { %8099 = vst [vmem:[#allocation108_spill] sm:$0xff] %v5910_v23  ;;  %8100 = vst [vmem:[#allocation109_spill] sm:$0xff] %v5913_v33  ;;  %v5916_v22 = vadd.f32 %v583_v28, %v5856_v36  ;;  %v5919_v41 = vadd.f32 %v696_v51, %v5859_v20  ;;  %v6143_v33 = vld [vmem:[#allocation8 + $0xc0] sm:$0xff]  ;;  %v6149_v23 = vld [vmem:[#allocation8 + $0xa8] sm:$0xff] }
 0x16d   :  { %8101 = vst [vmem:[#allocation110_spill] sm:$0xff] %v5916_v22  ;;  %8102 = vst [vmem:[#allocation111_spill] sm:$0xff] %v5919_v41  ;;  %v6139_v41 = vld [vmem:[#allocation8 + $0xd8] sm:$0xff]  ;;  %v6145_v22 = vld [vmem:[#allocation8 + $0xd0] sm:$0xff] }
 0x16e   :  { %v587_v59 = vpop.f32.mrf.mxu0  ;;  %v700_v50 = vpop.f32.mrf.mxu1 }
 0x16f   :  { %v5922_v58 = vadd.f32 %v587_v59, %v5850_v26  ;;  %v5925_v40 = vadd.f32 %v700_v50, %v5853_v27 }
 0x170   :  { %v589_v14 = vpop.f32.mrf.mxu0  ;;  %v702_v62 = vpop.f32.mrf.mxu1 }
 0x171   :  { %8103 = vst [vmem:[#allocation112_spill] sm:$0xff] %v5922_v58  ;;  %8104 = vst [vmem:[#allocation113_spill] sm:$0xff] %v5925_v40  ;;  %v5928_v45 = vadd.f32 %v589_v14, %v5856_v36  ;;  %v5931_v54 = vadd.f32 %v702_v62, %v5859_v20  ;;  %v332_v62 = vadd.f32 %v5735_v11, %v5750_v37  ;;  %v6167_v40 = vld [vmem:[#allocation8 + $0x80] sm:$0xff]  ;;  %v6173_v58 = vld [vmem:[#allocation8 + $0x68] sm:$0xff] }
 0x172   :  { %v447_v11 = vadd.f32 %v5745_v35, %v5759_v43 }
 0x173   :  { %8105 = vst [vmem:[#allocation114_spill] sm:$0xff] %v5928_v45  ;;  %8106 = vst [vmem:[#allocation115_spill] sm:$0xff] %v5931_v54  ;;  %v6163_v54 = vld [vmem:[#allocation8 + $0x98] sm:$0xff]  ;;  %v6169_v45 = vld [vmem:[#allocation8 + $0x90] sm:$0xff] }
 0x174   :  { %v593_v28 = vpop.f32.mrf.mxu0  ;;  %v706_v19 = vpop.f32.mrf.mxu1 }
 0x175   :  { %v5934_v51 = vadd.f32 %v593_v28, %v5850_v26  ;;  %v5937_v53 = vadd.f32 %v706_v19, %v5853_v27  ;;  %v334_v28 = vadd.f32 %v5743_v34, %v5756_v42 }
 0x176   :  { %v595_v59 = vpop.f32.mrf.mxu0  ;;  %v708_v32 = vpop.f32.mrf.mxu1 }
 0x177   :  { %v5940_v50 = vadd.f32 %v595_v59, %v5856_v36  ;;  %v5943_v25 = vadd.f32 %v708_v32, %v5859_v20 }
 0x17a   :  { %v599_v14 = vpop.f32.mrf.mxu0  ;;  %v712_v15 = vpop.f32.mrf.mxu1 }
 0x17c   :  { %v601_v31 = vpop.f32.mrf.mxu0  ;;  %v714_v2 = vpop.f32.mrf.mxu1 }
 0x180   :  { %v918_v24 = vpop.f32.mrf.mxu0  ;;  %v989_v32 = vpop.f32.mrf.mxu1 }
 0x181   :  { %v994_v19 = vadd.f32 %v918_v24, %v332_v62  ;;  %v996_v21 = vadd.f32 %v989_v32, %v445_v17  ;;  %v602_v17 = vadd.f32 %v601_v31, %v5856_v36 }
 0x182   :  { %v920_v61 = vpop.f32.mrf.mxu0  ;;  %v991_v16 = vpop.f32.mrf.mxu1 }
 0x183   :  { %v4686_v18 = vmul.f32 -1.442695, %v994_v19  ;;  %v995_v46 = vadd.f32 %v920_v61, %v334_v28  ;;  %v4688_v37 = vmul.f32 -1.442695, %v996_v21  ;;  %v997_v42 = vadd.f32 %v991_v16, %v447_v11 }
 0x185   :  { %4749 = vpow2.f32 %v4686_v18  ;;  %v4687_v59 = vmul.f32 -1.442695, %v995_v46  ;;  %v600_v18 = vadd.f32 %v599_v14, %v5850_v26  ;;  %v713_v14 = vadd.f32 %v712_v15, %v5853_v27  ;;  %v8107_v27 = vld [vmem:[#allocation31_spill] sm:$0xff]  ;;  %v8108_v15 = vld [vmem:[#allocation32_spill] sm:$0xff] }
 0x186   :  { %8158 = vst [vmem:[#allocation31_spill] sm:$0xff] %v6145_v22  ;;  %8159 = vst [vmem:[#allocation32_spill] sm:$0xff] %v6149_v23 }
 0x187   :  { %4751 = vpow2.f32 %v4687_v59 }
 0x188   :  { %4753 = vpow2.f32 %v4688_v37 }
 0x192   :  { %v4750_v34 = vpop.eup %4749 }
 0x193   :  { %v1224_v24 = vadd.f32 1.0, %v4750_v34 }
 0x194   :  { %v4752_v62 = vpop.eup %4751 }
 0x195   :  { %4755 = vrcp.f32 %v1224_v24  ;;  %v1225_v61 = vadd.f32 1.0, %v4752_v62  ;;  %v4754_v46 = vpop.eup %4753 }
 0x196   :  { %4757 = vtanh.f32 %v997_v42  ;;  %v1226_v43 = vadd.f32 1.0, %v4754_v46  ;;  %v715_v42 = vadd.f32 %v714_v2, %v5859_v20  ;;  %v8109_v2 = vld [vmem:[#allocation33_spill] sm:$0xff]  ;;  %v8110_v20 = vld [vmem:[#allocation34_spill] sm:$0xff] }
 0x197   :  { %4759 = vrcp.f32 %v1225_v61  ;;  %8160 = vst [vmem:[#allocation33_spill] sm:$0xff] %v6151_v13  ;;  %8161 = vst [vmem:[#allocation34_spill] sm:$0xff] %v6155_v47 }
 0x1a2   :  { %v4756_v28 = vpop.eup %4755  ;;  %v1135_v30 = vpop.f32.mrf.mxu0 }
 0x1a3   :  { %v4758_v39 = vpop.eup %4757  ;;  %v1211_v19 = vadd.f32 %v1135_v30, %v600_v18  ;;  %v1206_v26 = vpop.f32.mrf.mxu1 }
 0x1a4   :  { %v4760_v35 = vpop.eup %4759  ;;  %v1137_v21 = vpop.f32.mrf.mxu0  ;;  %v1254_v59 = vmul.f32 %v4758_v39, %v4756_v28  ;;  %v1213_v31 = vadd.f32 %v1206_v26, %v713_v14  ;;  %v8120_v26 = vld [vmem:[#allocation44_spill] sm:$0xff]  ;;  %v8121_v14 = vld [vmem:[#allocation45_spill] sm:$0xff] }
 0x1a5   :  { %v1253_v16 = vmul.f32 0.0, %v4760_v35  ;;  %v4689_v32 = vmul.f32 -1.442695, %v1211_v19  ;;  %v1212_v11 = vadd.f32 %v1137_v21, %v602_v17  ;;  %v1208_v36 = vpop.f32.mrf.mxu1  ;;  %v8111_v19 = vld [vmem:[#allocation35_spill] sm:$0xff]  ;;  %v8112_v35 = vld [vmem:[#allocation36_spill] sm:$0xff]  ;;  %v8114_v21 = vld [vmem:[#allocation38_spill] sm:$0xff] }
 0x1a6   :  { %v4691_v24 = vmul.f32 -1.442695, %v1213_v31  ;;  %v1214_v18 = vadd.f32 %v1208_v36, %v715_v42  ;;  %v8122_v31 = vld [vmem:[#allocation46_spill] sm:$0xff]  ;;  %v8123_v36 = vld [vmem:[#allocation47_spill] sm:$0xff]  ;;  %v8124_v42 = vld [vmem:[#allocation48_spill] sm:$0xff]  ;;  %8162 = vst [vmem:[#allocation35_spill] sm:$0xff] %v6157_v63 }
 0x1a7   :  { %v5955_v37 = vadd.f32 %v1254_v59, %v1253_v16  ;;  %4761 = vpow2.f32 %v4689_v32  ;;  %v4690_v34 = vmul.f32 -1.442695, %v1212_v11  ;;  %v8115_v16 = vld [vmem:[#allocation39_spill] sm:$0xff]  ;;  %v8116_v59 = vld [vmem:[#allocation40_spill] sm:$0xff]  ;;  %v8117_v32 = vld [vmem:[#allocation41_spill] sm:$0xff]  ;;  %8163 = vst [vmem:[#allocation36_spill] sm:$0xff] %v6161_v60 }
 0x1a8   :  { %4763 = vrcp.f32 %v1226_v43  ;;  %v8113_v43 = vld [vmem:[#allocation37_spill] sm:$0xff]  ;;  %v8118_v11 = vld [vmem:[#allocation42_spill] sm:$0xff]  ;;  %8165 = vst [vmem:[#allocation38_spill] sm:$0xff] %v6167_v40  ;;  %8166 = vst [vmem:[#allocation39_spill] sm:$0xff] %v6169_v45 }
 0x1a9   :  { %4765 = vtanh.f32 %v5955_v37  ;;  %8164 = vst [vmem:[#allocation37_spill] sm:$0xff] %v6163_v54  ;;  %8167 = vst [vmem:[#allocation40_spill] sm:$0xff] %v6173_v58 }
 0x1aa   :  { %4767 = vpow2.f32 %v4690_v34  ;;  %v8119_v34 = vld [vmem:[#allocation43_spill] sm:$0xff]  ;;  %8168 = vst [vmem:[#allocation41_spill] sm:$0xff] %v6175_v57  ;;  %8169 = vst [vmem:[#allocation42_spill] sm:$0xff] %v6179_v38 }
 0x1ab   :  { %4769 = vpow2.f32 %v4691_v24  ;;  %v8125_v24 = vld [vmem:[#allocation49_spill] sm:$0xff]  ;;  %8170 = vst [vmem:[#allocation43_spill] sm:$0xff] %v6181_v55  ;;  %8171 = vst [vmem:[#allocation44_spill] sm:$0xff] %v6185_v52 }
 0x1b4   :  { %v4762_v62 = vpop.eup %4761 }
 0x1b5   :  { %v4764_v61 = vpop.eup %4763  ;;  %v1243_v46 = vadd.f32 1.0, %v4762_v62  ;;  %v8126_v62 = vld [vmem:[#allocation50_spill] sm:$0xff] }
 0x1b6   :  { %v4766_v28 = vpop.eup %4765 }
 0x1b7   :  { %v4768_v30 = vpop.eup %4767  ;;  %v1260_v39 = vmul.f32 %v4766_v28, %v4764_v61  ;;  %4771 = vrcp.f32 %v1243_v46  ;;  %v8127_v46 = vld [vmem:[#allocation51_spill] sm:$0xff] }
 0x1b8   :  { %v1244_v17 = vadd.f32 1.0, %v4768_v30  ;;  %4773 = vtanh.f32 %v1214_v18  ;;  %v4770_v61 = vpop.eup %4769  ;;  %v8128_v18 = vld [vmem:[#allocation52_spill] sm:$0xff]  ;;  %v8129_v30 = vld [vmem:[#allocation53_spill] sm:$0xff] }
 0x1b9   :  { %1266 = vst [vmem:[#allocation12] sm:$0xff] %v1260_v39  ;;  %1407 = vmatmul.mubr.f32.vlgmr.msra.gmra.mxu0 %v1260_v39  ;;  %1478 = vmatmul.mubr.f32.vlgmr.msra.gmra.mxu1 %v1260_v39  ;;  %v8130_v39 = vld [vmem:[#allocation54_spill] sm:$0xff] }
 0x1ba   :  { %4775 = vrcp.f32 %v1244_v17  ;;  %1560 = vmatpush1.msra.mxu0 %v8107_v27  ;;  %1631 = vmatpush1.msra.mxu1 %v8108_v15  ;;  %v8131_v27 = vld [vmem:[#allocation55_spill] sm:$0xff]  ;;  %v8132_v15 = vld [vmem:[#allocation56_spill] sm:$0xff] }
 0x1bb   :  { %1561 = vmatprep.subr.mxu0 %v8109_v2  ;;  %1632 = vmatprep.subr.mxu1 %v8110_v20  ;;  %v1245_v20 = vadd.f32 1.0, %v4770_v61  ;;  %v8146_v61 = vld [vmem:[#allocation70_spill] sm:$0xff] }
 0x1bc   :  { %1562 = vmatpush1.msra.mxu0 %v8111_v19  ;;  %1633 = vmatpush1.msra.mxu1 %v8112_v35  ;;  %v8133_v19 = vld [vmem:[#allocation57_spill] sm:$0xff]  ;;  %v8134_v35 = vld [vmem:[#allocation58_spill] sm:$0xff] }
 0x1bd   :  { %1563 = vmatprep.subr.mxu0 %v8113_v43  ;;  %1634 = vmatprep.subr.mxu1 %v8114_v21  ;;  %4777 = vrcp.f32 %v1245_v20  ;;  %v8156_v20 = vld [vmem:[#allocation80_spill] sm:$0xff] }
 0x1be   :  { %1564 = vmatpush1.msra.mxu0 %v8115_v16  ;;  %1635 = vmatpush1.msra.mxu1 %v8116_v59  ;;  %v8135_v16 = vld [vmem:[#allocation59_spill] sm:$0xff]  ;;  %v8136_v59 = vld [vmem:[#allocation60_spill] sm:$0xff] }
 0x1bf   :  { %1565 = vmatprep.subr.mxu0 %v8117_v32  ;;  %1636 = vmatprep.subr.mxu1 %v8118_v11  ;;  %v8137_v32 = vld [vmem:[#allocation61_spill] sm:$0xff]  ;;  %v8138_v11 = vld [vmem:[#allocation62_spill] sm:$0xff] }
 0x1c0   :  { %1566 = vmatpush1.msra.mxu0 %v8119_v34  ;;  %1637 = vmatpush1.msra.mxu1 %v8120_v26  ;;  %v8139_v26 = vld [vmem:[#allocation63_spill] sm:$0xff] }
 0x1c1   :  { %1567 = vmatprep.subr.mxu0 %v8121_v14  ;;  %1638 = vmatprep.subr.mxu1 %v8122_v31  ;;  %v8140_v14 = vld [vmem:[#allocation64_spill] sm:$0xff]  ;;  %v8141_v31 = vld [vmem:[#allocation65_spill] sm:$0xff] }
 0x1c2   :  { %1568 = vmatpush1.msra.mxu0 %v8123_v36  ;;  %1639 = vmatpush1.msra.mxu1 %v8124_v42  ;;  %v8142_v36 = vld [vmem:[#allocation66_spill] sm:$0xff]  ;;  %v8143_v42 = vld [vmem:[#allocation67_spill] sm:$0xff] }
 0x1c3   :  { %1569 = vmatprep.subr.mxu0 %v8125_v24  ;;  %1640 = vmatprep.subr.mxu1 %v8126_v62  ;;  %v8144_v24 = vld [vmem:[#allocation68_spill] sm:$0xff]  ;;  %v8145_v62 = vld [vmem:[#allocation69_spill] sm:$0xff] }
 0x1c4   :  { %1570 = vmatpush1.msra.mxu0 %v8127_v46  ;;  %1641 = vmatpush1.msra.mxu1 %v8128_v18  ;;  %v4772_v28 = vpop.eup %4771  ;;  %v8147_v46 = vld [vmem:[#allocation71_spill] sm:$0xff]  ;;  %v8148_v18 = vld [vmem:[#allocation72_spill] sm:$0xff] }
 0x1c5   :  { %1571 = vmatprep.subr.mxu0 %v8129_v30  ;;  %1642 = vmatprep.subr.mxu1 %v8130_v39  ;;  %v4774_v17 = vpop.eup %4773  ;;  %v8150_v30 = vld [vmem:[#allocation74_spill] sm:$0xff]  ;;  %v8151_v39 = vld [vmem:[#allocation75_spill] sm:$0xff] }
 0x1c6   :  { %1572 = vmatpush1.msra.mxu0 %v8131_v27  ;;  %1643 = vmatpush1.msra.mxu1 %v8132_v15  ;;  %v1257_v21 = vmul.f32 %v4774_v17, %v4772_v28  ;;  %v8149_v28 = vld [vmem:[#allocation73_spill] sm:$0xff]  ;;  %v8152_v17 = vld [vmem:[#allocation76_spill] sm:$0xff]  ;;  %v8154_v15 = vld [vmem:[#allocation78_spill] sm:$0xff] }
 0x1c7   :  { %v4776_v2 = vpop.eup %4775  ;;  %1573 = vmatprep.subr.mxu0 %v8133_v19  ;;  %1644 = vmatprep.subr.mxu1 %v8134_v35  ;;  %v8153_v27 = vld [vmem:[#allocation77_spill] sm:$0xff] }
 0x1c8   :  { %v1256_v43 = vmul.f32 0.0, %v4776_v2  ;;  %1574 = vmatpush1.msra.mxu0 %v8135_v16  ;;  %1645 = vmatpush1.msra.mxu1 %v8136_v59  ;;  %v8155_v2 = vld [vmem:[#allocation79_spill] sm:$0xff]  ;;  %v8157_v19 = vld [vmem:[#allocation81_spill] sm:$0xff]  ;;  %v6061_v16 = vld [vmem:[#allocation8 + $0x1b0] sm:$0xff] }
 0x1c9   :  { %1575 = vmatprep.subr.mxu0 %v8137_v32  ;;  %1646 = vmatprep.subr.mxu1 %v8138_v11  ;;  %v6065_v59 = vld [vmem:[#allocation8 + $0x188] sm:$0xff]  ;;  %v6067_v32 = vld [vmem:[#allocation8 + $0x198] sm:$0xff]  ;;  %v6071_v11 = vld [vmem:[#allocation8 + $0x180] sm:$0xff] }
 0x1ca   :  { %v5992_v34 = vadd.f32 %v1257_v21, %v1256_v43  ;;  %1576 = vmatpush1.msra.mxu0 %v8139_v26  ;;  %1647 = vmatpush1.msra.mxu1 %v8140_v14  ;;  %v4778_v35 = vpop.eup %4777  ;;  %v6055_v43 = vld [vmem:[#allocation8 + $0x1b8] sm:$0xff]  ;;  %v6059_v21 = vld [vmem:[#allocation8 + $0x1a0] sm:$0xff]  ;;  %v6073_v26 = vld [vmem:[#allocation8 + $0x190] sm:$0xff] }
 0x1cb   :  { %1577 = vmatprep.subr.mxu0 %v8141_v31  ;;  %1648 = vmatprep.subr.mxu1 %v8142_v36  ;;  %v6077_v14 = vld [vmem:[#allocation8 + $0x168] sm:$0xff]  ;;  %v6079_v31 = vld [vmem:[#allocation8 + $0x178] sm:$0xff]  ;;  %v6083_v36 = vld [vmem:[#allocation8 + $0x160] sm:$0xff] }
 0x1cc   :  { %4779 = vtanh.f32 %v5992_v34  ;;  %1578 = vmatpush1.msra.mxu0 %v8143_v42  ;;  %1649 = vmatpush1.msra.mxu1 %v8144_v24  ;;  %v6085_v42 = vld [vmem:[#allocation8 + $0x170] sm:$0xff]  ;;  %v6089_v24 = vld [vmem:[#allocation8 + $0x148] sm:$0xff] }
 0x1cd   :  { %1579 = vmatprep.subr.mxu0 %v8145_v62  ;;  %1650 = vmatprep.subr.mxu1 %v8146_v61  ;;  %v6091_v62 = vld [vmem:[#allocation8 + $0x158] sm:$0xff]  ;;  %v6095_v61 = vld [vmem:[#allocation8 + $0x140] sm:$0xff] }
 0x1ce   :  { %1580 = vmatpush1.msra.mxu0 %v8147_v46  ;;  %1651 = vmatpush1.msra.mxu1 %v8148_v18  ;;  %v6097_v46 = vld [vmem:[#allocation8 + $0x150] sm:$0xff]  ;;  %v6101_v18 = vld [vmem:[#allocation8 + $0x128] sm:$0xff] }
 0x1cf   :  { %1581 = vmatprep.subr.mxu0 %v8149_v28  ;;  %1652 = vmatprep.subr.mxu1 %v8150_v30  ;;  %v6103_v28 = vld [vmem:[#allocation8 + $0x138] sm:$0xff]  ;;  %v6107_v30 = vld [vmem:[#allocation8 + $0x120] sm:$0xff] }
 0x1d0   :  { %1582 = vmatpush1.msra.mxu0 %v8151_v39  ;;  %1653 = vmatpush1.msra.mxu1 %v8152_v17  ;;  %v6109_v39 = vld [vmem:[#allocation8 + $0x130] sm:$0xff]  ;;  %v6113_v17 = vld [vmem:[#allocation8 + $0x108] sm:$0xff] }
 0x1d1   :  { %1583 = vmatprep.subr.mxu0 %v8153_v27  ;;  %1654 = vmatprep.subr.mxu1 %v8154_v15  ;;  %v6115_v27 = vld [vmem:[#allocation8 + $0x118] sm:$0xff]  ;;  %v6119_v15 = vld [vmem:[#allocation8 + $0x100] sm:$0xff] }
 0x1d2   :  { %1584 = vmatpush1.msra.mxu0 %v8155_v2  ;;  %1655 = vmatpush1.msra.mxu1 %v8156_v20  ;;  %v6121_v2 = vld [vmem:[#allocation8 + $0x110] sm:$0xff]  ;;  %v6125_v20 = vld [vmem:[#allocation8 + $0xe8] sm:$0xff] }
 0x1d3   :  { %1585 = vmatprep.subr.mxu0 %v5621_v7  ;;  %1656 = vmatprep.subr.mxu1 %v8157_v19  ;;  %v6041_v7 = vld [vmem:[#allocation8 + $0x1c8] sm:$0xff]  ;;  %v6127_v19 = vld [vmem:[#allocation8 + $0xf8] sm:$0xff] }
 0x1d4   :  { %1586 = vmatpush1.msra.mxu0 %v5627_v1  ;;  %1657 = vmatpush1.msra.mxu1 %v5629_v5 }
 0x1d5   :  { %1587 = vmatprep.subr.mxu0 %v5633_v56  ;;  %1658 = vmatprep.subr.mxu1 %v5635_v8  ;;  %v6031_v56 = vld [vmem:[#allocation8 + $0x1f8] sm:$0xff] }
 0x1d6   :  { %1588 = vmatpush1.msra.mxu0 %v5639_v9  ;;  %1659 = vmatpush1.msra.mxu1 %v5641_v12  ;;  %v6043_v8 = vld [vmem:[#allocation8 + $0x1d8] sm:$0xff]  ;;  %v6047_v9 = vld [vmem:[#allocation8 + $0x1c0] sm:$0xff]  ;;  %v6053_v12 = vld [vmem:[#allocation8 + $0x1a8] sm:$0xff] }
 0x1d7   :  { %1589 = vmatprep.subr.mxu0 %v5645_v0  ;;  %1660 = vmatprep.subr.mxu1 %v5647_v10  ;;  %v6029_v0 = vld [vmem:[#allocation8 + $0x1e8] sm:$0xff]  ;;  %v6049_v10 = vld [vmem:[#allocation8 + $0x1d0] sm:$0xff] }
 0x1d8   :  { %1590 = vmatpush1.msra.mxu0 %v5651_v6  ;;  %1623 = vmatprep.mubr.f32.mxu0 %v7991_v3  ;;  %v6035_v6 = vld [vmem:[#allocation8 + $0x1e0] sm:$0xff] }
 0x1d9   :  { %v4780_v1 = vpop.eup %4779  ;;  %1661 = vmatpush1.msra.mxu1 %v5655_v4  ;;  %1694 = vmatprep.mubr.f32.mxu1 %v7991_v3  ;;  %v6037_v4 = vld [vmem:[#allocation8 + $0x1f0] sm:$0xff] }
 0x1da   :  { %v1262_v5 = vmul.f32 %v4780_v1, %v4778_v35  ;;  %1832 = vmatprep.subr.mxu0 %v6029_v0  ;;  %1903 = vmatprep.subr.mxu1 %v6031_v56  ;;  %v6131_v35 = vld [vmem:[#allocation8 + $0xe0] sm:$0xff]  ;;  %v6133_v1 = vld [vmem:[#allocation8 + $0xf0] sm:$0xff] }
 0x1dc   :  { %1270 = vst [vmem:[#allocation12 + $0x78] sm:$0xff] %v1262_v5  ;;  %1624 = vmatmul.mubr.f32.vlgmr.msra.gmra.mxu0 %v1262_v5  ;;  %1695 = vmatmul.mubr.f32.vlgmr.msra.gmra.mxu1 %v1262_v5  ;;  %v6137_v5 = vld [vmem:[#allocation8 + $0xc8] sm:$0xff] }
 0x1dd   :  { %1896 = vmatprep.mubr.f32.mxu0 %v7991_v3  ;;  %1967 = vmatprep.mubr.f32.mxu1 %v7991_v3 }
 0x1de   :  { %1833 = vmatpush1.msra.mxu0 %v6035_v6  ;;  %1904 = vmatpush1.msra.mxu1 %v6037_v4 }
 0x1df   :  { %1834 = vmatprep.subr.mxu0 %v6041_v7  ;;  %1905 = vmatprep.subr.mxu1 %v6043_v8 }
 0x1e0   :  { %1835 = vmatpush1.msra.mxu0 %v6047_v9  ;;  %1906 = vmatpush1.msra.mxu1 %v6049_v10 }
 0x1e1   :  { %1836 = vmatprep.subr.mxu0 %v6053_v12  ;;  %1907 = vmatprep.subr.mxu1 %v6055_v43 }
 0x1e2   :  { %1837 = vmatpush1.msra.mxu0 %v6059_v21  ;;  %1908 = vmatpush1.msra.mxu1 %v6061_v16 }
 0x1e3   :  { %1838 = vmatprep.subr.mxu0 %v6065_v59  ;;  %1909 = vmatprep.subr.mxu1 %v6067_v32 }
 0x1e4   :  { %1839 = vmatpush1.msra.mxu0 %v6071_v11  ;;  %1910 = vmatpush1.msra.mxu1 %v6073_v26 }
 0x1e5   :  { %1840 = vmatprep.subr.mxu0 %v6077_v14  ;;  %1911 = vmatprep.subr.mxu1 %v6079_v31 }
 0x1e6   :  { %1841 = vmatpush1.msra.mxu0 %v6083_v36  ;;  %1912 = vmatpush1.msra.mxu1 %v6085_v42 }
 0x1e7   :  { %1842 = vmatprep.subr.mxu0 %v6089_v24  ;;  %1913 = vmatprep.subr.mxu1 %v6091_v62 }
 0x1e8   :  { %1843 = vmatpush1.msra.mxu0 %v6095_v61  ;;  %1914 = vmatpush1.msra.mxu1 %v6097_v46 }
 0x1e9   :  { %1844 = vmatprep.subr.mxu0 %v6101_v18  ;;  %1915 = vmatprep.subr.mxu1 %v6103_v28 }
 0x1ea   :  { %1845 = vmatpush1.msra.mxu0 %v6107_v30  ;;  %1916 = vmatpush1.msra.mxu1 %v6109_v39 }
 0x1eb   :  { %1846 = vmatprep.subr.mxu0 %v6113_v17  ;;  %1917 = vmatprep.subr.mxu1 %v6115_v27 }
 0x1ec   :  { %1847 = vmatpush1.msra.mxu0 %v6119_v15  ;;  %1918 = vmatpush1.msra.mxu1 %v6121_v2 }
 0x1ed   :  { %1848 = vmatprep.subr.mxu0 %v6125_v20  ;;  %1919 = vmatprep.subr.mxu1 %v6127_v19 }
 0x1ee   :  { %1849 = vmatpush1.msra.mxu0 %v6131_v35  ;;  %1920 = vmatpush1.msra.mxu1 %v6133_v1 }
 0x1ef   :  { %1850 = vmatprep.subr.mxu0 %v6137_v5  ;;  %1921 = vmatprep.subr.mxu1 %v6139_v41 }
 0x1f0   :  { %1851 = vmatpush1.msra.mxu0 %v6143_v33  ;;  %1922 = vmatpush1.msra.mxu1 %v6145_v22 }
 0x1f1   :  { %1852 = vmatprep.subr.mxu0 %v6149_v23  ;;  %1923 = vmatprep.subr.mxu1 %v6151_v13 }
 0x1f2   :  { %1853 = vmatpush1.msra.mxu0 %v6155_v47  ;;  %1924 = vmatpush1.msra.mxu1 %v6157_v63 }
 0x1f3   :  { %1854 = vmatprep.subr.mxu0 %v6161_v60  ;;  %1925 = vmatprep.subr.mxu1 %v6163_v54 }
 0x1f4   :  { %1855 = vmatpush1.msra.mxu0 %v6167_v40  ;;  %1926 = vmatpush1.msra.mxu1 %v6169_v45  ;;  %v6187_v40 = vld [vmem:[#allocation8 + $0x58] sm:$0xff]  ;;  %v6191_v45 = vld [vmem:[#allocation8 + $0x40] sm:$0xff] }
 0x1f5   :  { %1856 = vmatprep.subr.mxu0 %v6173_v58  ;;  %1927 = vmatprep.subr.mxu1 %v6175_v57  ;;  %8172 = vst [vmem:[#allocation45_spill] sm:$0xff] %v6187_v40  ;;  %8173 = vst [vmem:[#allocation46_spill] sm:$0xff] %v6191_v45  ;;  %v6193_v58 = vld [vmem:[#allocation8 + $0x50] sm:$0xff]  ;;  %v6197_v57 = vld [vmem:[#allocation8 + $0x28] sm:$0xff] }
 0x1f6   :  { %1857 = vmatpush1.msra.mxu0 %v6179_v38  ;;  %1928 = vmatpush1.msra.mxu1 %v6181_v55  ;;  %8174 = vst [vmem:[#allocation47_spill] sm:$0xff] %v6193_v58  ;;  %8175 = vst [vmem:[#allocation48_spill] sm:$0xff] %v6197_v57  ;;  %v6199_v38 = vld [vmem:[#allocation8 + $0x38] sm:$0xff]  ;;  %v6203_v55 = vld [vmem:[#allocation8 + $0x20] sm:$0xff] }
 0x1f7   :  { %1858 = vmatprep.subr.mxu0 %v6185_v52  ;;  %1929 = vmatprep.subr.mxu1 %v6187_v40  ;;  %8176 = vst [vmem:[#allocation49_spill] sm:$0xff] %v6199_v38  ;;  %8177 = vst [vmem:[#allocation50_spill] sm:$0xff] %v6203_v55  ;;  %v6205_v52 = vld [vmem:[#allocation8 + $0x30] sm:$0xff]  ;;  %v6209_v40 = vld [vmem:[#allocation8 + $0x8] sm:$0xff] }
 0x1f8   :  { %1859 = vmatpush1.msra.mxu0 %v6191_v45  ;;  %1930 = vmatpush1.msra.mxu1 %v6193_v58  ;;  %8178 = vst [vmem:[#allocation51_spill] sm:$0xff] %v6205_v52  ;;  %8179 = vst [vmem:[#allocation52_spill] sm:$0xff] %v6209_v40  ;;  %v6211_v45 = vld [vmem:[#allocation8 + $0x18] sm:$0xff]  ;;  %v6215_v58 = vld [vmem:[#allocation8] sm:$0xff] }
 0x1f9   :  { %1860 = vmatprep.subr.mxu0 %v6197_v57  ;;  %1931 = vmatprep.subr.mxu1 %v6199_v38  ;;  %8180 = vst [vmem:[#allocation53_spill] sm:$0xff] %v6211_v45  ;;  %8181 = vst [vmem:[#allocation54_spill] sm:$0xff] %v6215_v58  ;;  %v6217_v57 = vld [vmem:[#allocation8 + $0x10] sm:$0xff]  ;;  %v6221_v38 = vld [vmem:[#allocation9 + $0x1e8] sm:$0xff] }
 0x1fa   :  { %1861 = vmatpush1.msra.mxu0 %v6203_v55  ;;  %1932 = vmatpush1.msra.mxu1 %v6205_v52  ;;  %8182 = vst [vmem:[#allocation55_spill] sm:$0xff] %v6217_v57  ;;  %8183 = vst [vmem:[#allocation56_spill] sm:$0xff] %v6221_v38  ;;  %v6223_v55 = vld [vmem:[#allocation9 + $0x1f8] sm:$0xff] }
 0x1fb   :  { %1862 = vmatprep.subr.mxu0 %v6209_v40  ;;  %1933 = vmatprep.subr.mxu1 %v6211_v45  ;;  %8184 = vst [vmem:[#allocation57_spill] sm:$0xff] %v6223_v55 }
 0x1fc   :  { %1863 = vmatpush1.msra.mxu0 %v6215_v58  ;;  %1934 = vmatpush1.msra.mxu1 %v6217_v57 }
 0x1fd   :  { %2049 = vmatprep.subr.mxu0 %v6221_v38  ;;  %2120 = vmatprep.subr.mxu1 %v6223_v55 }
 0x279   :  { %v1408_v52 = vpop.f32.mrf.mxu0  ;;  %v1479_v58 = vpop.f32.mrf.mxu1 }
 0x27a   :  { %v1484_v40 = vadd.f32 %v1408_v52, %v5762_v44  ;;  %v1486_v57 = vadd.f32 %v1479_v58, %v5765_v29 }
 0x27b   :  { %v1410_v45 = vpop.f32.mrf.mxu0  ;;  %v1481_v47 = vpop.f32.mrf.mxu1 }
 0x27c   :  { %v4692_v54 = vmul.f32 -1.442695, %v1484_v40  ;;  %v1485_v60 = vadd.f32 %v1410_v45, %v5768_v48  ;;  %v4694_v13 = vmul.f32 -1.442695, %v1486_v57  ;;  %v1487_v23 = vadd.f32 %v1481_v47, %v5771_v49 }
 0x27e   :  { %4781 = vpow2.f32 %v4692_v54  ;;  %v4693_v63 = vmul.f32 -1.442695, %v1485_v60 }
 0x280   :  { %4783 = vpow2.f32 %v4693_v63 }
 0x281   :  { %4785 = vpow2.f32 %v4694_v13 }
 0x282   :  { %4787 = vtanh.f32 %v1487_v23 }
 0x28b   :  { %v4782_v38 = vpop.eup %4781 }
 0x28c   :  { %v1714_v22 = vadd.f32 1.0, %v4782_v38 }
 0x28d   :  { %v4784_v55 = vpop.eup %4783 }
 0x28e   :  { %4789 = vrcp.f32 %v1714_v22  ;;  %v1715_v44 = vadd.f32 1.0, %v4784_v55  ;;  %v4786_v52 = vpop.eup %4785 }
 0x28f   :  { %v4788_v48 = vpop.eup %4787  ;;  %v1716_v60 = vadd.f32 1.0, %v4786_v52 }
 0x290   :  { %4791 = vrcp.f32 %v1715_v44 }
 0x291   :  { %4793 = vrcp.f32 %v1716_v60  ;;  %v6239_v60 = vld [vmem:[#allocation9 + $0x1e0] sm:$0xff] }
 0x29b   :  { %v4790_v40 = vpop.eup %4789 }
 0x29c   :  { %v1744_v63 = vmul.f32 %v4790_v40, %v4788_v48  ;;  %v1625_v54 = vpop.f32.mrf.mxu0  ;;  %v1696_v23 = vpop.f32.mrf.mxu1 }
 0x29d   :  { %v4792_v45 = vpop.eup %4791  ;;  %v1701_v29 = vadd.f32 %v1625_v54, %v5934_v51  ;;  %v1703_v22 = vadd.f32 %v1696_v23, %v5937_v53  ;;  %v6245_v53 = vld [vmem:[#allocation9 + $0x1d8] sm:$0xff]  ;;  %v6265_v23 = vld [vmem:[#allocation9 + $0x188] sm:$0xff] }
 0x29e   :  { %v1743_v57 = vmul.f32 %v4792_v45, %v5955_v37  ;;  %v1627_v49 = vpop.f32.mrf.mxu0  ;;  %v1698_v58 = vpop.f32.mrf.mxu1  ;;  %v6243_v45 = vld [vmem:[#allocation9 + $0x1c8] sm:$0xff]  ;;  %8189 = vst [vmem:[#allocation62_spill] sm:$0xff] %v6265_v23 }
 0x29f   :  { %v4695_v47 = vmul.f32 -1.442695, %v1701_v29  ;;  %v1702_v38 = vadd.f32 %v1627_v49, %v5940_v50  ;;  %v4697_v44 = vmul.f32 -1.442695, %v1703_v22  ;;  %v1704_v51 = vadd.f32 %v1698_v58, %v5943_v25  ;;  %v4794_v37 = vpop.eup %4793  ;;  %v6247_v25 = vld [vmem:[#allocation9 + $0x1c0] sm:$0xff]  ;;  %v6253_v49 = vld [vmem:[#allocation9 + $0x1a8] sm:$0xff] }
 0x2a0   :  { %v6234_v13 = vadd.f32 %v1744_v63, %v1743_v57  ;;  %v6241_v63 = vld [vmem:[#allocation9 + $0x1f0] sm:$0xff]  ;;  %8185 = vst [vmem:[#allocation58_spill] sm:$0xff] %v6253_v49  ;;  %v6267_v22 = vld [vmem:[#allocation9 + $0x198] sm:$0xff]  ;;  %v6271_v58 = vld [vmem:[#allocation9 + $0x180] sm:$0xff] }
 0x2a1   :  { %4795 = vpow2.f32 %v4695_v47  ;;  %v4696_v55 = vmul.f32 -1.442695, %v1702_v38  ;;  %v6249_v57 = vld [vmem:[#allocation9 + $0x1d0] sm:$0xff]  ;;  %v6255_v47 = vld [vmem:[#allocation9 + $0x1b8] sm:$0xff]  ;;  %v6259_v38 = vld [vmem:[#allocation9 + $0x1a0] sm:$0xff]  ;;  %8190 = vst [vmem:[#allocation63_spill] sm:$0xff] %v6267_v22 }
 0x2a2   :  { %4797 = vtanh.f32 %v6234_v13  ;;  %8186 = vst [vmem:[#allocation59_spill] sm:$0xff] %v6255_v47  ;;  %8187 = vst [vmem:[#allocation60_spill] sm:$0xff] %v6259_v38 }
 0x2a3   :  { %4799 = vpow2.f32 %v4696_v55  ;;  %v6261_v55 = vld [vmem:[#allocation9 + $0x1b0] sm:$0xff]  ;;  %8191 = vst [vmem:[#allocation64_spill] sm:$0xff] %v6271_v58 }
 0x2a4   :  { %4801 = vpow2.f32 %v4697_v44  ;;  %8188 = vst [vmem:[#allocation61_spill] sm:$0xff] %v6261_v55  ;;  %v6273_v44 = vld [vmem:[#allocation9 + $0x190] sm:$0xff] }
 0x2a5   :  { %4803 = vtanh.f32 %v1704_v51  ;;  %8192 = vst [vmem:[#allocation65_spill] sm:$0xff] %v6273_v44  ;;  %v6277_v51 = vld [vmem:[#allocation9 + $0x168] sm:$0xff] }
 0x2a6   :  { %8193 = vst [vmem:[#allocation66_spill] sm:$0xff] %v6277_v51 }
 0x2ae   :  { %v4796_v52 = vpop.eup %4795 }
 0x2af   :  { %v4798_v48 = vpop.eup %4797  ;;  %v1733_v40 = vadd.f32 1.0, %v4796_v52  ;;  %v6283_v52 = vld [vmem:[#allocation9 + $0x160] sm:$0xff] }
 0x2b0   :  { %v1750_v50 = vmul.f32 %v4798_v48, %v4794_v37  ;;  %v4800_v54 = vpop.eup %4799  ;;  %v6279_v37 = vld [vmem:[#allocation9 + $0x178] sm:$0xff]  ;;  %8195 = vst [vmem:[#allocation68_spill] sm:$0xff] %v6283_v52  ;;  %v6285_v48 = vld [vmem:[#allocation9 + $0x170] sm:$0xff] }
 0x2b1   :  { %4805 = vrcp.f32 %v1733_v40  ;;  %v1734_v29 = vadd.f32 1.0, %v4800_v54  ;;  %8194 = vst [vmem:[#allocation67_spill] sm:$0xff] %v6279_v37  ;;  %8196 = vst [vmem:[#allocation69_spill] sm:$0xff] %v6285_v48  ;;  %v6289_v40 = vld [vmem:[#allocation9 + $0x148] sm:$0xff]  ;;  %v6295_v54 = vld [vmem:[#allocation9 + $0x140] sm:$0xff] }
 0x2b2   :  { %1756 = vst [vmem:[#allocation12 + $0x10] sm:$0xff] %v1750_v50  ;;  %1897 = vmatmul.mubr.f32.vlgmr.msra.gmra.mxu0 %v1750_v50  ;;  %1968 = vmatmul.mubr.f32.vlgmr.msra.gmra.mxu1 %v1750_v50  ;;  %8197 = vst [vmem:[#allocation70_spill] sm:$0xff] %v6289_v40  ;;  %v6291_v50 = vld [vmem:[#allocation9 + $0x158] sm:$0xff] }
 0x2b3   :  { %2050 = vmatpush1.msra.mxu0 %v6239_v60  ;;  %2121 = vmatpush1.msra.mxu1 %v6241_v63  ;;  %4807 = vrcp.f32 %v1734_v29  ;;  %8198 = vst [vmem:[#allocation71_spill] sm:$0xff] %v6291_v50  ;;  %8199 = vst [vmem:[#allocation72_spill] sm:$0xff] %v6295_v54  ;;  %v6297_v29 = vld [vmem:[#allocation9 + $0x150] sm:$0xff] }
 0x2b4   :  { %2051 = vmatprep.subr.mxu0 %v6243_v45  ;;  %2122 = vmatprep.subr.mxu1 %v6245_v53  ;;  %8200 = vst [vmem:[#allocation73_spill] sm:$0xff] %v6297_v29 }
 0x2b5   :  { %2052 = vmatpush1.msra.mxu0 %v6247_v25  ;;  %2123 = vmatpush1.msra.mxu1 %v6249_v57 }
 0x2b6   :  { %2053 = vmatprep.subr.mxu0 %v6253_v49  ;;  %2124 = vmatprep.subr.mxu1 %v6255_v47 }
 0x2b7   :  { %2054 = vmatpush1.msra.mxu0 %v6259_v38  ;;  %2125 = vmatpush1.msra.mxu1 %v6261_v55 }
 0x2b8   :  { %2055 = vmatprep.subr.mxu0 %v6265_v23  ;;  %2126 = vmatprep.subr.mxu1 %v6267_v22  ;;  %v6301_v22 = vld [vmem:[#allocation9 + $0x128] sm:$0xff] }
 0x2b9   :  { %2056 = vmatpush1.msra.mxu0 %v6271_v58  ;;  %2127 = vmatpush1.msra.mxu1 %v6273_v44  ;;  %8201 = vst [vmem:[#allocation74_spill] sm:$0xff] %v6301_v22  ;;  %v6303_v58 = vld [vmem:[#allocation9 + $0x138] sm:$0xff]  ;;  %v4802_v44 = vpop.eup %4801 }
 0x2ba   :  { %2057 = vmatprep.subr.mxu0 %v6277_v51  ;;  %2128 = vmatprep.subr.mxu1 %v6279_v37  ;;  %8202 = vst [vmem:[#allocation75_spill] sm:$0xff] %v6303_v58  ;;  %v6307_v51 = vld [vmem:[#allocation9 + $0x120] sm:$0xff]  ;;  %v6309_v37 = vld [vmem:[#allocation9 + $0x130] sm:$0xff]  ;;  %v4804_v23 = vpop.eup %4803  ;;  %v1735_v49 = vadd.f32 1.0, %v4802_v44  ;;  %v6350_v44 = vld [vmem:[#allocation9 + $0xa8] sm:$0xff] }
 0x2bb   :  { %2058 = vmatpush1.msra.mxu0 %v6283_v52  ;;  %2129 = vmatpush1.msra.mxu1 %v6285_v48  ;;  %8203 = vst [vmem:[#allocation76_spill] sm:$0xff] %v6309_v37  ;;  %v6313_v52 = vld [vmem:[#allocation9 + $0x108] sm:$0xff]  ;;  %v6315_v48 = vld [vmem:[#allocation9 + $0x118] sm:$0xff]  ;;  %8212 = vst [vmem:[#allocation119_spill] sm:$0xff] %v6350_v44 }
 0x2bc   :  { %2059 = vmatprep.subr.mxu0 %v6289_v40  ;;  %2130 = vmatprep.subr.mxu1 %v6291_v50  ;;  %8204 = vst [vmem:[#allocation77_spill] sm:$0xff] %v6313_v52  ;;  %8205 = vst [vmem:[#allocation78_spill] sm:$0xff] %v6315_v48  ;;  %v6319_v40 = vld [vmem:[#allocation9 + $0x100] sm:$0xff]  ;;  %v6321_v50 = vld [vmem:[#allocation9 + $0x110] sm:$0xff]  ;;  %4809 = vrcp.f32 %v1735_v49 }
 0x2bd   :  { %2060 = vmatpush1.msra.mxu0 %v6295_v54  ;;  %2131 = vmatpush1.msra.mxu1 %v6297_v29  ;;  %8206 = vst [vmem:[#allocation79_spill] sm:$0xff] %v6319_v40  ;;  %8207 = vst [vmem:[#allocation80_spill] sm:$0xff] %v6321_v50  ;;  %v6325_v54 = vld [vmem:[#allocation9 + $0xe8] sm:$0xff]  ;;  %v6327_v29 = vld [vmem:[#allocation9 + $0xf8] sm:$0xff] }
 0x2be   :  { %v4806_v55 = vpop.eup %4805  ;;  %2061 = vmatprep.subr.mxu0 %v6301_v22  ;;  %2132 = vmatprep.subr.mxu1 %v6303_v58  ;;  %v6331_v22 = vld [vmem:[#allocation9 + $0xe0] sm:$0xff]  ;;  %v6333_v58 = vld [vmem:[#allocation9 + $0xf0] sm:$0xff]  ;;  %v6377_v49 = vld [vmem:[#allocation9 + $0x68] sm:$0xff] }
 0x2bf   :  { %v1747_v38 = vmul.f32 %v4806_v55, %v4804_v23  ;;  %2062 = vmatpush1.msra.mxu0 %v6307_v51  ;;  %2133 = vmatpush1.msra.mxu1 %v6309_v37  ;;  %8208 = vst [vmem:[#allocation81_spill] sm:$0xff] %v6331_v22  ;;  %8209 = vst [vmem:[#allocation116_spill] sm:$0xff] %v6333_v58  ;;  %v6337_v55 = vld [vmem:[#allocation9 + $0xc8] sm:$0xff]  ;;  %v6339_v23 = vld [vmem:[#allocation9 + $0xd8] sm:$0xff] }
 0x2c0   :  { %2063 = vmatprep.subr.mxu0 %v6313_v52  ;;  %2134 = vmatprep.subr.mxu1 %v6315_v48  ;;  %v4808_v47 = vpop.eup %4807  ;;  %v6344_v48 = vld [vmem:[#allocation9 + $0xc0] sm:$0xff]  ;;  %v6346_v52 = vld [vmem:[#allocation9 + $0xd0] sm:$0xff]  ;;  %8220 = vst [vmem:[#allocation127_spill] sm:$0xff] %v6377_v49 }
 0x2c1   :  { %2064 = vmatpush1.msra.mxu0 %v6319_v40  ;;  %2135 = vmatpush1.msra.mxu1 %v6321_v50  ;;  %v1746_v37 = vmul.f32 %v4808_v47, %v5992_v34  ;;  %8210 = vst [vmem:[#allocation117_spill] sm:$0xff] %v6344_v48  ;;  %8211 = vst [vmem:[#allocation118_spill] sm:$0xff] %v6346_v52  ;;  %v6352_v50 = vld [vmem:[#allocation9 + $0xb8] sm:$0xff]  ;;  %v6358_v34 = vld [vmem:[#allocation9 + $0xa0] sm:$0xff] }
 0x2c2   :  { %2065 = vmatprep.subr.mxu0 %v6325_v54  ;;  %2136 = vmatprep.subr.mxu1 %v6327_v29  ;;  %8213 = vst [vmem:[#allocation120_spill] sm:$0xff] %v6352_v50  ;;  %8214 = vst [vmem:[#allocation121_spill] sm:$0xff] %v6358_v34  ;;  %v6360_v47 = vld [vmem:[#allocation9 + $0xb0] sm:$0xff] }
 0x2c3   :  { %2066 = vmatpush1.msra.mxu0 %v6331_v22  ;;  %2137 = vmatpush1.msra.mxu1 %v6333_v58  ;;  %v6354_v40 = vadd.f32 %v1747_v38, %v1746_v37  ;;  %8215 = vst [vmem:[#allocation122_spill] sm:$0xff] %v6360_v47  ;;  %v6364_v58 = vld [vmem:[#allocation9 + $0x88] sm:$0xff]  ;;  %v6366_v22 = vld [vmem:[#allocation9 + $0x98] sm:$0xff]  ;;  %v6371_v38 = vld [vmem:[#allocation9 + $0x80] sm:$0xff] }
 0x2c4   :  { %2067 = vmatprep.subr.mxu0 %v6337_v55  ;;  %2138 = vmatprep.subr.mxu1 %v6339_v23  ;;  %8216 = vst [vmem:[#allocation123_spill] sm:$0xff] %v6364_v58  ;;  %8217 = vst [vmem:[#allocation124_spill] sm:$0xff] %v6366_v22  ;;  %v6373_v37 = vld [vmem:[#allocation9 + $0x90] sm:$0xff] }
 0x2c5   :  { %2068 = vmatpush1.msra.mxu0 %v6344_v48  ;;  %2139 = vmatpush1.msra.mxu1 %v6346_v52  ;;  %4811 = vtanh.f32 %v6354_v40  ;;  %8218 = vst [vmem:[#allocation125_spill] sm:$0xff] %v6371_v38  ;;  %8219 = vst [vmem:[#allocation126_spill] sm:$0xff] %v6373_v37  ;;  %v6379_v52 = vld [vmem:[#allocation9 + $0x78] sm:$0xff]  ;;  %v6383_v48 = vld [vmem:[#allocation9 + $0x60] sm:$0xff] }
 0x2c6   :  { %2069 = vmatprep.subr.mxu0 %v6350_v44  ;;  %2140 = vmatprep.subr.mxu1 %v6352_v50  ;;  %8221 = vst [vmem:[#allocation128_spill] sm:$0xff] %v6379_v52  ;;  %8222 = vst [vmem:[#allocation129_spill] sm:$0xff] %v6383_v48  ;;  %v6385_v44 = vld [vmem:[#allocation9 + $0x70] sm:$0xff]  ;;  %v6389_v50 = vld [vmem:[#allocation9 + $0x48] sm:$0xff] }
 0x2c7   :  { %2070 = vmatpush1.msra.mxu0 %v6358_v34  ;;  %2141 = vmatpush1.msra.mxu1 %v6360_v47  ;;  %8223 = vst [vmem:[#allocation130_spill] sm:$0xff] %v6385_v44  ;;  %v6391_v34 = vld [vmem:[#allocation9 + $0x58] sm:$0xff]  ;;  %v6395_v47 = vld [vmem:[#allocation9 + $0x40] sm:$0xff] }
 0x2c8   :  { %2071 = vmatprep.subr.mxu0 %v6364_v58  ;;  %2142 = vmatprep.subr.mxu1 %v6366_v22  ;;  %8224 = vst [vmem:[#allocation131_spill] sm:$0xff] %v6391_v34  ;;  %v6397_v58 = vld [vmem:[#allocation9 + $0x50] sm:$0xff]  ;;  %v6401_v22 = vld [vmem:[#allocation9 + $0x28] sm:$0xff] }
 0x2c9   :  { %2072 = vmatpush1.msra.mxu0 %v6371_v38  ;;  %2143 = vmatpush1.msra.mxu1 %v6373_v37  ;;  %8225 = vst [vmem:[#allocation132_spill] sm:$0xff] %v6397_v58  ;;  %v6403_v38 = vld [vmem:[#allocation9 + $0x38] sm:$0xff]  ;;  %v6407_v37 = vld [vmem:[#allocation9 + $0x20] sm:$0xff] }
 0x2ca   :  { %2073 = vmatprep.subr.mxu0 %v6377_v49  ;;  %2144 = vmatprep.subr.mxu1 %v6379_v52  ;;  %8226 = vst [vmem:[#allocation133_spill] sm:$0xff] %v6403_v38  ;;  %v6409_v49 = vld [vmem:[#allocation9 + $0x30] sm:$0xff]  ;;  %v6413_v52 = vld [vmem:[#allocation9 + $0x8] sm:$0xff] }
 0x2cb   :  { %2074 = vmatpush1.msra.mxu0 %v6383_v48  ;;  %2145 = vmatpush1.msra.mxu1 %v6385_v44  ;;  %8227 = vst [vmem:[#allocation134_spill] sm:$0xff] %v6409_v49  ;;  %v6415_v48 = vld [vmem:[#allocation9 + $0x18] sm:$0xff]  ;;  %v6419_v44 = vld [vmem:[#allocation9] sm:$0xff] }
 0x2cc   :  { %2075 = vmatprep.subr.mxu0 %v6389_v50  ;;  %2146 = vmatprep.subr.mxu1 %v6391_v34  ;;  %v6423_v34 = vld [vmem:[#allocation9 + $0x10] sm:$0xff] }
 0x2cd   :  { %2076 = vmatpush1.msra.mxu0 %v6395_v47  ;;  %2147 = vmatpush1.msra.mxu1 %v6397_v58  ;;  %v4810_v58 = vpop.eup %4809 }
 0x2ce   :  { %2077 = vmatprep.subr.mxu0 %v6401_v22  ;;  %2148 = vmatprep.subr.mxu1 %v6403_v38 }
 0x2cf   :  { %2078 = vmatpush1.msra.mxu0 %v6407_v37  ;;  %2149 = vmatpush1.msra.mxu1 %v6409_v49 }
 0x2d0   :  { %2079 = vmatprep.subr.mxu0 %v6413_v52  ;;  %2150 = vmatprep.subr.mxu1 %v6415_v48 }
 0x2d1   :  { %2080 = vmatpush1.msra.mxu0 %v6419_v44  ;;  %2113 = vmatprep.mubr.f32.mxu0 %v7991_v3 }
 0x2d2   :  { %2151 = vmatpush1.msra.mxu1 %v6423_v34  ;;  %2184 = vmatprep.mubr.f32.mxu1 %v7991_v3  ;;  %v4812_v38 = vpop.eup %4811 }
 0x2d3   :  { %2322 = vmatprep.subr.mxu0 %v6029_v0  ;;  %2393 = vmatprep.subr.mxu1 %v6031_v56  ;;  %v1752_v49 = vmul.f32 %v4812_v38, %v4810_v58  ;;  %v8228_v0 = vld [vmem:[#allocation31_spill] sm:$0xff]  ;;  %v8229_v56 = vld [vmem:[#allocation32_spill] sm:$0xff] }
 0x2d4   :  { %v8258_v38 = vld [vmem:[#allocation20_spill] sm:$0xff] }
 0x2d5   :  { %1760 = vst [vmem:[#allocation12 + $0x68] sm:$0xff] %v1752_v49  ;;  %2114 = vmatmul.mubr.f32.vlgmr.msra.gmra.mxu0 %v1752_v49  ;;  %2185 = vmatmul.mubr.f32.vlgmr.msra.gmra.mxu1 %v1752_v49 }
 0x2d6   :  { %2323 = vmatpush1.msra.mxu0 %v6035_v6  ;;  %2394 = vmatpush1.msra.mxu1 %v6037_v4  ;;  %v8230_v6 = vld [vmem:[#allocation33_spill] sm:$0xff]  ;;  %v8231_v4 = vld [vmem:[#allocation34_spill] sm:$0xff] }
 0x2d7   :  { %2324 = vmatprep.subr.mxu0 %v6041_v7  ;;  %2395 = vmatprep.subr.mxu1 %v6043_v8  ;;  %v8232_v7 = vld [vmem:[#allocation35_spill] sm:$0xff]  ;;  %v8233_v8 = vld [vmem:[#allocation36_spill] sm:$0xff] }
 0x2d8   :  { %2325 = vmatpush1.msra.mxu0 %v6047_v9  ;;  %2396 = vmatpush1.msra.mxu1 %v6049_v10  ;;  %v8234_v9 = vld [vmem:[#allocation37_spill] sm:$0xff]  ;;  %v8235_v10 = vld [vmem:[#allocation38_spill] sm:$0xff] }
 0x2d9   :  { %2326 = vmatprep.subr.mxu0 %v6053_v12  ;;  %2397 = vmatprep.subr.mxu1 %v6055_v43  ;;  %v8236_v12 = vld [vmem:[#allocation39_spill] sm:$0xff]  ;;  %v8239_v43 = vld [vmem:[#allocation42_spill] sm:$0xff] }
 0x2da   :  { %2327 = vmatpush1.msra.mxu0 %v6059_v21  ;;  %2398 = vmatpush1.msra.mxu1 %v6061_v16  ;;  %v8240_v21 = vld [vmem:[#allocation43_spill] sm:$0xff]  ;;  %v8241_v16 = vld [vmem:[#allocation44_spill] sm:$0xff] }
 0x2db   :  { %2328 = vmatprep.subr.mxu0 %v6065_v59  ;;  %2399 = vmatprep.subr.mxu1 %v6067_v32  ;;  %v8242_v59 = vld [vmem:[#allocation45_spill] sm:$0xff]  ;;  %v8243_v32 = vld [vmem:[#allocation46_spill] sm:$0xff] }
 0x2dc   :  { %2329 = vmatpush1.msra.mxu0 %v6071_v11  ;;  %2400 = vmatpush1.msra.mxu1 %v6073_v26  ;;  %v8244_v11 = vld [vmem:[#allocation47_spill] sm:$0xff]  ;;  %v8245_v26 = vld [vmem:[#allocation48_spill] sm:$0xff] }
 0x2dd   :  { %2330 = vmatprep.subr.mxu0 %v6077_v14  ;;  %2401 = vmatprep.subr.mxu1 %v6079_v31  ;;  %v8246_v14 = vld [vmem:[#allocation49_spill] sm:$0xff]  ;;  %v8247_v31 = vld [vmem:[#allocation50_spill] sm:$0xff] }
 0x2de   :  { %2331 = vmatpush1.msra.mxu0 %v6083_v36  ;;  %2402 = vmatpush1.msra.mxu1 %v6085_v42  ;;  %v8248_v36 = vld [vmem:[#allocation51_spill] sm:$0xff]  ;;  %v8249_v42 = vld [vmem:[#allocation52_spill] sm:$0xff] }
 0x2df   :  { %2332 = vmatprep.subr.mxu0 %v6089_v24  ;;  %2403 = vmatprep.subr.mxu1 %v6091_v62  ;;  %v8250_v24 = vld [vmem:[#allocation53_spill] sm:$0xff]  ;;  %v8251_v62 = vld [vmem:[#allocation54_spill] sm:$0xff] }
 0x2e0   :  { %2333 = vmatpush1.msra.mxu0 %v6095_v61  ;;  %2404 = vmatpush1.msra.mxu1 %v6097_v46  ;;  %v8252_v61 = vld [vmem:[#allocation55_spill] sm:$0xff]  ;;  %v8253_v46 = vld [vmem:[#allocation56_spill] sm:$0xff] }
 0x2e1   :  { %2334 = vmatprep.subr.mxu0 %v6101_v18  ;;  %2405 = vmatprep.subr.mxu1 %v6103_v28  ;;  %v8254_v18 = vld [vmem:[#allocation57_spill] sm:$0xff] }
 0x2e2   :  { %2335 = vmatpush1.msra.mxu0 %v6107_v30  ;;  %2406 = vmatpush1.msra.mxu1 %v6109_v39  ;;  %v8255_v30 = vld [vmem:[#allocation17_spill] sm:$0xff] }
 0x2e3   :  { %2336 = vmatprep.subr.mxu0 %v6113_v17  ;;  %2407 = vmatprep.subr.mxu1 %v6115_v27 }
 0x2e4   :  { %2337 = vmatpush1.msra.mxu0 %v6119_v15  ;;  %2408 = vmatpush1.msra.mxu1 %v6121_v2  ;;  %v8256_v15 = vld [vmem:[#allocation19_spill] sm:$0xff] }
 0x2e5   :  { %2338 = vmatprep.subr.mxu0 %v6125_v20  ;;  %2409 = vmatprep.subr.mxu1 %v6127_v19 }
 0x2e6   :  { %2339 = vmatpush1.msra.mxu0 %v6131_v35  ;;  %2410 = vmatpush1.msra.mxu1 %v6133_v1  ;;  %v8257_v35 = vld [vmem:[#allocation18_spill] sm:$0xff] }
 0x2e7   :  { %2340 = vmatprep.subr.mxu0 %v6137_v5  ;;  %2411 = vmatprep.subr.mxu1 %v6139_v41  ;;  %v8237_v41 = vld [vmem:[#allocation40_spill] sm:$0xff] }
 0x2e8   :  { %2341 = vmatpush1.msra.mxu0 %v6143_v33  ;;  %2412 = vmatpush1.msra.mxu1 %v8228_v0  ;;  %v8238_v33 = vld [vmem:[#allocation41_spill] sm:$0xff] }
 0x2e9   :  { %2342 = vmatprep.subr.mxu0 %v8229_v56  ;;  %2413 = vmatprep.subr.mxu1 %v8230_v6 }
 0x2ea   :  { %2343 = vmatpush1.msra.mxu0 %v8231_v4  ;;  %2414 = vmatpush1.msra.mxu1 %v8232_v7 }
 0x2eb   :  { %2344 = vmatprep.subr.mxu0 %v8233_v8  ;;  %2415 = vmatprep.subr.mxu1 %v8234_v9 }
 0x2ec   :  { %2345 = vmatpush1.msra.mxu0 %v8235_v10  ;;  %2416 = vmatpush1.msra.mxu1 %v8236_v12 }
 0x2ed   :  { %2346 = vmatprep.subr.mxu0 %v8237_v41  ;;  %2417 = vmatprep.subr.mxu1 %v8238_v33 }
 0x2ee   :  { %2347 = vmatpush1.msra.mxu0 %v8239_v43  ;;  %2418 = vmatpush1.msra.mxu1 %v8240_v21  ;;  %v8259_v21 = vld [vmem:[#allocation112_spill] sm:$0xff] }
 0x2ef   :  { %2348 = vmatprep.subr.mxu0 %v8241_v16  ;;  %2419 = vmatprep.subr.mxu1 %v8242_v59 }
 0x2f0   :  { %2349 = vmatpush1.msra.mxu0 %v8243_v32  ;;  %2420 = vmatpush1.msra.mxu1 %v8244_v11 }
 0x2f1   :  { %2350 = vmatprep.subr.mxu0 %v8245_v26  ;;  %2421 = vmatprep.subr.mxu1 %v8246_v14  ;;  %v8260_v26 = vld [vmem:[#allocation114_spill] sm:$0xff] }
 0x2f2   :  { %2351 = vmatpush1.msra.mxu0 %v8247_v31  ;;  %2422 = vmatpush1.msra.mxu1 %v8248_v36 }
 0x2f3   :  { %2352 = vmatprep.subr.mxu0 %v8249_v42  ;;  %2423 = vmatprep.subr.mxu1 %v8250_v24  ;;  %v8261_v42 = vld [vmem:[#allocation113_spill] sm:$0xff] }
 0x2f4   :  { %2353 = vmatpush1.msra.mxu0 %v8251_v62  ;;  %2386 = vmatprep.mubr.f32.mxu0 %v7991_v3 }
 0x2f5   :  { %2424 = vmatpush1.msra.mxu1 %v8252_v61  ;;  %2457 = vmatprep.mubr.f32.mxu1 %v7991_v3 }
 0x2f6   :  { %2539 = vmatprep.subr.mxu0 %v8253_v46  ;;  %2610 = vmatprep.subr.mxu1 %v8254_v18  ;;  %v8262_v46 = vld [vmem:[#allocation115_spill] sm:$0xff] }
 0x372   :  { %v1898_v28 = vpop.f32.mrf.mxu0  ;;  %v1969_v19 = vpop.f32.mrf.mxu1 }
 0x373   :  { %v1974_v39 = vadd.f32 %v1898_v28, %v8255_v30  ;;  %v1976_v1 = vadd.f32 %v1969_v19, %v8257_v35  ;;  %v8265_v19 = vld [vmem:[#allocation60_spill] sm:$0xff]  ;;  %v8266_v35 = vld [vmem:[#allocation61_spill] sm:$0xff] }
 0x374   :  { %v1900_v17 = vpop.f32.mrf.mxu0  ;;  %v1971_v5 = vpop.f32.mrf.mxu1 }
 0x375   :  { %v4698_v27 = vmul.f32 -1.442695, %v1974_v39  ;;  %v1975_v2 = vadd.f32 %v1900_v17, %v8256_v15  ;;  %v4700_v58 = vmul.f32 -1.442695, %v1976_v1  ;;  %v1977_v49 = vadd.f32 %v1971_v5, %v8258_v38  ;;  %v8271_v1 = vld [vmem:[#allocation66_spill] sm:$0xff]  ;;  %v8274_v5 = vld [vmem:[#allocation69_spill] sm:$0xff] }
 0x376   :  { %v8276_v38 = vld [vmem:[#allocation71_spill] sm:$0xff] }
 0x377   :  { %4813 = vpow2.f32 %v4698_v27  ;;  %v4699_v20 = vmul.f32 -1.442695, %v1975_v2  ;;  %v8263_v2 = vld [vmem:[#allocation58_spill] sm:$0xff] }
 0x379   :  { %4815 = vpow2.f32 %v4699_v20  ;;  %v8264_v20 = vld [vmem:[#allocation59_spill] sm:$0xff] }
 0x37a   :  { %4817 = vpow2.f32 %v4700_v58  ;;  %v8275_v58 = vld [vmem:[#allocation70_spill] sm:$0xff] }
 0x37b   :  { %4819 = vtanh.f32 %v1977_v49  ;;  %v8277_v49 = vld [vmem:[#allocation72_spill] sm:$0xff] }
 0x384   :  { %v4814_v0 = vpop.eup %4813 }
 0x385   :  { %v2204_v56 = vadd.f32 1.0, %v4814_v0  ;;  %v8278_v0 = vld [vmem:[#allocation73_spill] sm:$0xff] }
 0x386   :  { %v4816_v6 = vpop.eup %4815 }
 0x387   :  { %4821 = vrcp.f32 %v2204_v56  ;;  %v2205_v4 = vadd.f32 1.0, %v4816_v6  ;;  %v4818_v7 = vpop.eup %4817  ;;  %v8279_v6 = vld [vmem:[#allocation74_spill] sm:$0xff] }
 0x388   :  { %v4820_v8 = vpop.eup %4819  ;;  %v2206_v41 = vadd.f32 1.0, %v4818_v7 }
 0x389   :  { %4823 = vrcp.f32 %v2205_v4  ;;  %v8280_v4 = vld [vmem:[#allocation75_spill] sm:$0xff] }
 0x38a   :  { %4825 = vrcp.f32 %v2206_v41 }
 0x394   :  { %v4822_v9 = vpop.eup %4821 }
 0x395   :  { %v2234_v10 = vmul.f32 %v4822_v9, %v4820_v8  ;;  %v2115_v33 = vpop.f32.mrf.mxu0  ;;  %v2186_v36 = vpop.f32.mrf.mxu1  ;;  %v8281_v8 = vld [vmem:[#allocation76_spill] sm:$0xff] }
 0x396   :  { %v4824_v12 = vpop.eup %4823  ;;  %v2191_v16 = vadd.f32 %v2115_v33, %v8259_v21  ;;  %v2193_v24 = vadd.f32 %v2186_v36, %v8261_v42  ;;  %v8284_v33 = vld [vmem:[#allocation79_spill] sm:$0xff]  ;;  %v8293_v36 = vld [vmem:[#allocation122_spill] sm:$0xff]  ;;  %v8296_v42 = vld [vmem:[#allocation125_spill] sm:$0xff] }
 0x397   :  { %v2233_v43 = vmul.f32 %v4824_v12, %v6234_v13  ;;  %v2117_v59 = vpop.f32.mrf.mxu0  ;;  %v2188_v62 = vpop.f32.mrf.mxu1  ;;  %v8283_v12 = vld [vmem:[#allocation78_spill] sm:$0xff] }
 0x398   :  { %v4701_v11 = vmul.f32 -1.442695, %v2191_v16  ;;  %v2192_v14 = vadd.f32 %v2117_v59, %v8260_v26  ;;  %v4703_v61 = vmul.f32 -1.442695, %v2193_v24  ;;  %v4826_v13 = vpop.eup %4825  ;;  %v2194_v18 = vadd.f32 %v2188_v62, %v8262_v46  ;;  %v8286_v59 = vld [vmem:[#allocation81_spill] sm:$0xff]  ;;  %v8297_v24 = vld [vmem:[#allocation126_spill] sm:$0xff] }
 0x399   :  { %v6505_v32 = vadd.f32 %v2234_v10, %v2233_v43  ;;  %v8282_v10 = vld [vmem:[#allocation77_spill] sm:$0xff]  ;;  %v8285_v43 = vld [vmem:[#allocation80_spill] sm:$0xff]  ;;  %v8298_v62 = vld [vmem:[#allocation127_spill] sm:$0xff] }
 0x39a   :  { %v4702_v31 = vmul.f32 -1.442695, %v2192_v14  ;;  %v8288_v14 = vld [vmem:[#allocation117_spill] sm:$0xff]  ;;  %v8301_v46 = vld [vmem:[#allocation130_spill] sm:$0xff] }
 0x39b   :  { %4827 = vtanh.f32 %v6505_v32 }
 0x39c   :  { %4829 = vpow2.f32 %v4701_v11  ;;  %v8287_v11 = vld [vmem:[#allocation116_spill] sm:$0xff] }
 0x39d   :  { %4831 = vpow2.f32 %v4702_v31  ;;  %v8289_v31 = vld [vmem:[#allocation118_spill] sm:$0xff] }
 0x39e   :  { %4833 = vpow2.f32 %v4703_v61  ;;  %v8299_v61 = vld [vmem:[#allocation128_spill] sm:$0xff] }
 0x39f   :  { %4835 = vtanh.f32 %v2194_v18  ;;  %v8302_v18 = vld [vmem:[#allocation131_spill] sm:$0xff] }
 0x3a8   :  { %v4828_v28 = vpop.eup %4827 }
 0x3a9   :  { %v4830_v30 = vpop.eup %4829  ;;  %v2240_v39 = vmul.f32 %v4828_v28, %v4826_v13  ;;  %v8300_v13 = vld [vmem:[#allocation129_spill] sm:$0xff]  ;;  %v8303_v28 = vld [vmem:[#allocation132_spill] sm:$0xff] }
 0x3aa   :  { %v2223_v17 = vadd.f32 1.0, %v4830_v30  ;;  %v4832_v27 = vpop.eup %4831  ;;  %v8304_v30 = vld [vmem:[#allocation133_spill] sm:$0xff] }
 0x3ab   :  { %2246 = vst [vmem:[#allocation12 + $0x20] sm:$0xff] %v2240_v39  ;;  %2387 = vmatmul.mubr.f32.vlgmr.msra.gmra.mxu0 %v2240_v39  ;;  %2458 = vmatmul.mubr.f32.vlgmr.msra.gmra.mxu1 %v2240_v39  ;;  %v2224_v15 = vadd.f32 1.0, %v4832_v27  ;;  %v4834_v56 = vpop.eup %4833  ;;  %v8305_v39 = vld [vmem:[#allocation134_spill] sm:$0xff]  ;;  %v6599_v27 = vld [vmem:[#allocation8 + $0x1c0] sm:$0xff] }
 0x3ac   :  { %4837 = vrcp.f32 %v2223_v17  ;;  %2540 = vmatpush1.msra.mxu0 %v6239_v60  ;;  %2611 = vmatpush1.msra.mxu1 %v6241_v63  ;;  %v8267_v60 = vld [vmem:[#allocation62_spill] sm:$0xff]  ;;  %v8268_v63 = vld [vmem:[#allocation63_spill] sm:$0xff]  ;;  %v4836_v7 = vpop.eup %4835  ;;  %v2225_v16 = vadd.f32 1.0, %v4834_v56  ;;  %v6653_v56 = vld [vmem:[#allocation8 + $0x128] sm:$0xff] }
 0x3ad   :  { %2541 = vmatprep.subr.mxu0 %v6243_v45  ;;  %2612 = vmatprep.subr.mxu1 %v6245_v53  ;;  %4839 = vrcp.f32 %v2224_v15  ;;  %v8269_v45 = vld [vmem:[#allocation64_spill] sm:$0xff]  ;;  %v8270_v53 = vld [vmem:[#allocation65_spill] sm:$0xff]  ;;  %v6595_v17 = vld [vmem:[#allocation8 + $0x1d8] sm:$0xff] }
 0x3ae   :  { %2542 = vmatpush1.msra.mxu0 %v6247_v25  ;;  %2613 = vmatpush1.msra.mxu1 %v6249_v57  ;;  %v8272_v25 = vld [vmem:[#allocation67_spill] sm:$0xff]  ;;  %v8273_v57 = vld [vmem:[#allocation68_spill] sm:$0xff]  ;;  %4841 = vrcp.f32 %v2225_v16  ;;  %v6601_v15 = vld [vmem:[#allocation8 + $0x1d0] sm:$0xff] }
 0x3af   :  { %2543 = vmatprep.subr.mxu0 %v8263_v2  ;;  %2614 = vmatprep.subr.mxu1 %v8264_v20  ;;  %v6605_v2 = vld [vmem:[#allocation8 + $0x1a8] sm:$0xff]  ;;  %v6607_v20 = vld [vmem:[#allocation8 + $0x1b8] sm:$0xff] }
 0x3b0   :  { %2544 = vmatpush1.msra.mxu0 %v8265_v19  ;;  %2615 = vmatpush1.msra.mxu1 %v8266_v35  ;;  %v6611_v19 = vld [vmem:[#allocation8 + $0x1a0] sm:$0xff]  ;;  %v6613_v35 = vld [vmem:[#allocation8 + $0x1b0] sm:$0xff]  ;;  %v6689_v16 = vld [vmem:[#allocation8 + $0xc8] sm:$0xff] }
 0x3b1   :  { %2545 = vmatprep.subr.mxu0 %v8267_v60  ;;  %2616 = vmatprep.subr.mxu1 %v8268_v63  ;;  %v6617_v60 = vld [vmem:[#allocation8 + $0x188] sm:$0xff]  ;;  %v6619_v63 = vld [vmem:[#allocation8 + $0x198] sm:$0xff] }
 0x3b2   :  { %2546 = vmatpush1.msra.mxu0 %v8269_v45  ;;  %2617 = vmatpush1.msra.mxu1 %v8270_v53  ;;  %v6623_v45 = vld [vmem:[#allocation8 + $0x180] sm:$0xff]  ;;  %v6625_v53 = vld [vmem:[#allocation8 + $0x190] sm:$0xff] }
 0x3b3   :  { %2547 = vmatprep.subr.mxu0 %v8271_v1  ;;  %2618 = vmatprep.subr.mxu1 %v8272_v25  ;;  %v6629_v1 = vld [vmem:[#allocation8 + $0x168] sm:$0xff]  ;;  %v6631_v25 = vld [vmem:[#allocation8 + $0x178] sm:$0xff] }
 0x3b4   :  { %2548 = vmatpush1.msra.mxu0 %v8273_v57  ;;  %2619 = vmatpush1.msra.mxu1 %v8274_v5  ;;  %v6635_v57 = vld [vmem:[#allocation8 + $0x160] sm:$0xff]  ;;  %v6637_v5 = vld [vmem:[#allocation8 + $0x170] sm:$0xff] }
 0x3b5   :  { %2549 = vmatprep.subr.mxu0 %v8275_v58  ;;  %2620 = vmatprep.subr.mxu1 %v8276_v38  ;;  %v6641_v58 = vld [vmem:[#allocation8 + $0x148] sm:$0xff]  ;;  %v6643_v38 = vld [vmem:[#allocation8 + $0x158] sm:$0xff] }
 0x3b6   :  { %2550 = vmatpush1.msra.mxu0 %v8277_v49  ;;  %2621 = vmatpush1.msra.mxu1 %v8278_v0  ;;  %v6647_v49 = vld [vmem:[#allocation8 + $0x140] sm:$0xff]  ;;  %v6649_v0 = vld [vmem:[#allocation8 + $0x150] sm:$0xff] }
 0x3b7   :  { %2551 = vmatprep.subr.mxu0 %v8279_v6  ;;  %2622 = vmatprep.subr.mxu1 %v8280_v4  ;;  %v6655_v6 = vld [vmem:[#allocation8 + $0x138] sm:$0xff]  ;;  %v6659_v4 = vld [vmem:[#allocation8 + $0x120] sm:$0xff] }
 0x3b8   :  { %2552 = vmatpush1.msra.mxu0 %v6307_v51  ;;  %2623 = vmatpush1.msra.mxu1 %v8281_v8  ;;  %v6665_v8 = vld [vmem:[#allocation8 + $0x108] sm:$0xff] }
 0x3b9   :  { %v4838_v9 = vpop.eup %4837  ;;  %2553 = vmatprep.subr.mxu0 %v8282_v10  ;;  %2624 = vmatprep.subr.mxu1 %v8283_v12  ;;  %v6671_v10 = vld [vmem:[#allocation8 + $0x100] sm:$0xff]  ;;  %v6673_v12 = vld [vmem:[#allocation8 + $0x110] sm:$0xff] }
 0x3ba   :  { %v2237_v41 = vmul.f32 %v4838_v9, %v4836_v7  ;;  %2554 = vmatpush1.msra.mxu0 %v8284_v33  ;;  %2625 = vmatpush1.msra.mxu1 %v8285_v43  ;;  %v4840_v21 = vpop.eup %4839  ;;  %v6661_v7 = vld [vmem:[#allocation8 + $0x130] sm:$0xff]  ;;  %v6667_v9 = vld [vmem:[#allocation8 + $0x118] sm:$0xff]  ;;  %v6683_v43 = vld [vmem:[#allocation8 + $0xe0] sm:$0xff] }
 0x3bb   :  { %2555 = vmatprep.subr.mxu0 %v6325_v54  ;;  %2626 = vmatprep.subr.mxu1 %v6327_v29  ;;  %v2236_v51 = vmul.f32 %v4840_v21, %v6354_v40  ;;  %v8290_v54 = vld [vmem:[#allocation119_spill] sm:$0xff]  ;;  %v8291_v29 = vld [vmem:[#allocation120_spill] sm:$0xff]  ;;  %v8292_v40 = vld [vmem:[#allocation121_spill] sm:$0xff] }
 0x3bc   :  { %2556 = vmatpush1.msra.mxu0 %v8286_v59  ;;  %2627 = vmatpush1.msra.mxu1 %v8287_v11  ;;  %v6679_v33 = vld [vmem:[#allocation8 + $0xf8] sm:$0xff]  ;;  %v6685_v21 = vld [vmem:[#allocation8 + $0xf0] sm:$0xff]  ;;  %v6695_v59 = vld [vmem:[#allocation8 + $0xc0] sm:$0xff] }
 0x3bd   :  { %2557 = vmatprep.subr.mxu0 %v6337_v55  ;;  %2628 = vmatprep.subr.mxu1 %v6339_v23  ;;  %v6548_v26 = vadd.f32 %v2237_v41, %v2236_v51  ;;  %v8294_v55 = vld [vmem:[#allocation123_spill] sm:$0xff]  ;;  %v8295_v23 = vld [vmem:[#allocation124_spill] sm:$0xff]  ;;  %v6677_v41 = vld [vmem:[#allocation8 + $0xe8] sm:$0xff] }
 0x3be   :  { %2558 = vmatpush1.msra.mxu0 %v8288_v14  ;;  %2629 = vmatpush1.msra.mxu1 %v8289_v31  ;;  %v6691_v51 = vld [vmem:[#allocation8 + $0xd8] sm:$0xff]  ;;  %v6697_v11 = vld [vmem:[#allocation8 + $0xd0] sm:$0xff]  ;;  %v6701_v14 = vld [vmem:[#allocation8 + $0xa8] sm:$0xff] }
 0x3bf   :  { %2559 = vmatprep.subr.mxu0 %v8290_v54  ;;  %2630 = vmatprep.subr.mxu1 %v8291_v29  ;;  %4843 = vtanh.f32 %v6548_v26  ;;  %v6703_v31 = vld [vmem:[#allocation8 + $0xb8] sm:$0xff]  ;;  %v6707_v54 = vld [vmem:[#allocation8 + $0xa0] sm:$0xff]  ;;  %v6709_v29 = vld [vmem:[#allocation8 + $0xb0] sm:$0xff] }
 0x3c0   :  { %2560 = vmatpush1.msra.mxu0 %v8292_v40  ;;  %2631 = vmatpush1.msra.mxu1 %v8293_v36  ;;  %8306 = vst [vmem:[#allocation31_spill] sm:$0xff] %v6709_v29  ;;  %v6713_v40 = vld [vmem:[#allocation8 + $0x88] sm:$0xff]  ;;  %v6715_v36 = vld [vmem:[#allocation8 + $0x98] sm:$0xff] }
 0x3c1   :  { %2561 = vmatprep.subr.mxu0 %v8294_v55  ;;  %2632 = vmatprep.subr.mxu1 %v8295_v23  ;;  %8307 = vst [vmem:[#allocation32_spill] sm:$0xff] %v6713_v40  ;;  %8308 = vst [vmem:[#allocation33_spill] sm:$0xff] %v6715_v36  ;;  %v6719_v55 = vld [vmem:[#allocation8 + $0x80] sm:$0xff]  ;;  %v6721_v23 = vld [vmem:[#allocation8 + $0x90] sm:$0xff] }
 0x3c2   :  { %2562 = vmatpush1.msra.mxu0 %v8296_v42  ;;  %2633 = vmatpush1.msra.mxu1 %v8297_v24  ;;  %8309 = vst [vmem:[#allocation34_spill] sm:$0xff] %v6719_v55  ;;  %8310 = vst [vmem:[#allocation35_spill] sm:$0xff] %v6721_v23  ;;  %v6725_v42 = vld [vmem:[#allocation8 + $0x68] sm:$0xff]  ;;  %v6727_v24 = vld [vmem:[#allocation8 + $0x78] sm:$0xff] }
 0x3c3   :  { %2563 = vmatprep.subr.mxu0 %v8298_v62  ;;  %2634 = vmatprep.subr.mxu1 %v8299_v61  ;;  %8311 = vst [vmem:[#allocation36_spill] sm:$0xff] %v6725_v42  ;;  %8312 = vst [vmem:[#allocation37_spill] sm:$0xff] %v6727_v24  ;;  %v6731_v62 = vld [vmem:[#allocation8 + $0x60] sm:$0xff]  ;;  %v6733_v61 = vld [vmem:[#allocation8 + $0x70] sm:$0xff] }
 0x3c4   :  { %2564 = vmatpush1.msra.mxu0 %v8300_v13  ;;  %2635 = vmatpush1.msra.mxu1 %v8301_v46  ;;  %8313 = vst [vmem:[#allocation38_spill] sm:$0xff] %v6731_v62  ;;  %8314 = vst [vmem:[#allocation39_spill] sm:$0xff] %v6733_v61  ;;  %v6737_v13 = vld [vmem:[#allocation8 + $0x48] sm:$0xff]  ;;  %v6739_v46 = vld [vmem:[#allocation8 + $0x58] sm:$0xff] }
 0x3c5   :  { %2565 = vmatprep.subr.mxu0 %v6389_v50  ;;  %2636 = vmatprep.subr.mxu1 %v8302_v18  ;;  %v4842_v50 = vpop.eup %4841  ;;  %8315 = vst [vmem:[#allocation40_spill] sm:$0xff] %v6737_v13  ;;  %8316 = vst [vmem:[#allocation41_spill] sm:$0xff] %v6739_v46  ;;  %v6743_v18 = vld [vmem:[#allocation8 + $0x40] sm:$0xff] }
 0x3c6   :  { %2566 = vmatpush1.msra.mxu0 %v6395_v47  ;;  %2637 = vmatpush1.msra.mxu1 %v8303_v28  ;;  %8317 = vst [vmem:[#allocation42_spill] sm:$0xff] %v6743_v18  ;;  %v6745_v28 = vld [vmem:[#allocation8 + $0x50] sm:$0xff] }
 0x3c7   :  { %2567 = vmatprep.subr.mxu0 %v6401_v22  ;;  %2638 = vmatprep.subr.mxu1 %v8304_v30  ;;  %8318 = vst [vmem:[#allocation43_spill] sm:$0xff] %v6745_v28  ;;  %v6749_v30 = vld [vmem:[#allocation8 + $0x28] sm:$0xff] }
 0x3c8   :  { %2568 = vmatpush1.msra.mxu0 %v6407_v37  ;;  %2639 = vmatpush1.msra.mxu1 %v8305_v39  ;;  %v6593_v37 = vld [vmem:[#allocation8 + $0x1c8] sm:$0xff]  ;;  %8319 = vst [vmem:[#allocation44_spill] sm:$0xff] %v6749_v30  ;;  %v6751_v39 = vld [vmem:[#allocation8 + $0x38] sm:$0xff] }
 0x3c9   :  { %2569 = vmatprep.subr.mxu0 %v6413_v52  ;;  %2640 = vmatprep.subr.mxu1 %v6415_v48  ;;  %v6581_v52 = vld [vmem:[#allocation8 + $0x1e8] sm:$0xff]  ;;  %v6583_v48 = vld [vmem:[#allocation8 + $0x1f8] sm:$0xff]  ;;  %8320 = vst [vmem:[#allocation45_spill] sm:$0xff] %v6751_v39 }
 0x3ca   :  { %2570 = vmatpush1.msra.mxu0 %v6419_v44  ;;  %2603 = vmatprep.mubr.f32.mxu0 %v7991_v3  ;;  %v6587_v44 = vld [vmem:[#allocation8 + $0x1e0] sm:$0xff] }
 0x3cb   :  { %2641 = vmatpush1.msra.mxu1 %v6423_v34  ;;  %2674 = vmatprep.mubr.f32.mxu1 %v7991_v3  ;;  %v6589_v34 = vld [vmem:[#allocation8 + $0x1f0] sm:$0xff] }
 0x3cc   :  { %v4844_v22 = vpop.eup %4843  ;;  %2809 = vmatprep.subr.mxu0 %v6581_v52  ;;  %2880 = vmatprep.subr.mxu1 %v6583_v48 }
 0x3cd   :  { %v2242_v47 = vmul.f32 %v4844_v22, %v4842_v50  ;;  %v6755_v50 = vld [vmem:[#allocation8 + $0x20] sm:$0xff]  ;;  %v6757_v22 = vld [vmem:[#allocation8 + $0x30] sm:$0xff] }
 0x3ce   :  { %8321 = vst [vmem:[#allocation46_spill] sm:$0xff] %v6755_v50  ;;  %8322 = vst [vmem:[#allocation47_spill] sm:$0xff] %v6757_v22 }
 0x3cf   :  { %2250 = vst [vmem:[#allocation12 + $0x58] sm:$0xff] %v2242_v47  ;;  %2604 = vmatmul.mubr.f32.vlgmr.msra.gmra.mxu0 %v2242_v47  ;;  %2675 = vmatmul.mubr.f32.vlgmr.msra.gmra.mxu1 %v2242_v47  ;;  %v6761_v47 = vld [vmem:[#allocation8 + $0x8] sm:$0xff] }
 0x3d0   :  { %2873 = vmatprep.mubr.f32.mxu0 %v7991_v3  ;;  %2944 = vmatprep.mubr.f32.mxu1 %v7991_v3  ;;  %8323 = vst [vmem:[#allocation48_spill] sm:$0xff] %v6761_v47 }
 0x3d1   :  { %2810 = vmatpush1.msra.mxu0 %v6587_v44  ;;  %2881 = vmatpush1.msra.mxu1 %v6589_v34 }
 0x3d2   :  { %2811 = vmatprep.subr.mxu0 %v6593_v37  ;;  %2882 = vmatprep.subr.mxu1 %v6595_v17 }
 0x3d3   :  { %2812 = vmatpush1.msra.mxu0 %v6599_v27  ;;  %2883 = vmatpush1.msra.mxu1 %v6601_v15 }
 0x3d4   :  { %2813 = vmatprep.subr.mxu0 %v6605_v2  ;;  %2884 = vmatprep.subr.mxu1 %v6607_v20 }
 0x3d5   :  { %2814 = vmatpush1.msra.mxu0 %v6611_v19  ;;  %2885 = vmatpush1.msra.mxu1 %v6613_v35 }
 0x3d6   :  { %2815 = vmatprep.subr.mxu0 %v6617_v60  ;;  %2886 = vmatprep.subr.mxu1 %v6619_v63 }
 0x3d7   :  { %2816 = vmatpush1.msra.mxu0 %v6623_v45  ;;  %2887 = vmatpush1.msra.mxu1 %v6625_v53 }
 0x3d8   :  { %2817 = vmatprep.subr.mxu0 %v6629_v1  ;;  %2888 = vmatprep.subr.mxu1 %v6631_v25 }
 0x3d9   :  { %2818 = vmatpush1.msra.mxu0 %v6635_v57  ;;  %2889 = vmatpush1.msra.mxu1 %v6637_v5 }
 0x3da   :  { %2819 = vmatprep.subr.mxu0 %v6641_v58  ;;  %2890 = vmatprep.subr.mxu1 %v6643_v38 }
 0x3db   :  { %2820 = vmatpush1.msra.mxu0 %v6647_v49  ;;  %2891 = vmatpush1.msra.mxu1 %v6649_v0 }
 0x3dc   :  { %2821 = vmatprep.subr.mxu0 %v6653_v56  ;;  %2892 = vmatprep.subr.mxu1 %v6655_v6 }
 0x3dd   :  { %2822 = vmatpush1.msra.mxu0 %v6659_v4  ;;  %2893 = vmatpush1.msra.mxu1 %v6661_v7 }
 0x3de   :  { %2823 = vmatprep.subr.mxu0 %v6665_v8  ;;  %2894 = vmatprep.subr.mxu1 %v6667_v9 }
 0x3df   :  { %2824 = vmatpush1.msra.mxu0 %v6671_v10  ;;  %2895 = vmatpush1.msra.mxu1 %v6673_v12 }
 0x3e0   :  { %2825 = vmatprep.subr.mxu0 %v6677_v41  ;;  %2896 = vmatprep.subr.mxu1 %v6679_v33 }
 0x3e1   :  { %2826 = vmatpush1.msra.mxu0 %v6683_v43  ;;  %2897 = vmatpush1.msra.mxu1 %v6685_v21 }
 0x3e2   :  { %2827 = vmatprep.subr.mxu0 %v6689_v16  ;;  %2898 = vmatprep.subr.mxu1 %v6691_v51 }
 0x3e3   :  { %2828 = vmatpush1.msra.mxu0 %v6695_v59  ;;  %2899 = vmatpush1.msra.mxu1 %v6697_v11 }
 0x3e4   :  { %2829 = vmatprep.subr.mxu0 %v6701_v14  ;;  %2900 = vmatprep.subr.mxu1 %v6703_v31 }
 0x3e5   :  { %2830 = vmatpush1.msra.mxu0 %v6707_v54  ;;  %2901 = vmatpush1.msra.mxu1 %v6709_v29 }
 0x3e6   :  { %2831 = vmatprep.subr.mxu0 %v6713_v40  ;;  %2902 = vmatprep.subr.mxu1 %v6715_v36  ;;  %v8332_v36 = vld [vmem:[#allocation24_spill] sm:$0xff] }
 0x3e7   :  { %2832 = vmatpush1.msra.mxu0 %v6719_v55  ;;  %2903 = vmatpush1.msra.mxu1 %v6721_v23 }
 0x3e8   :  { %2833 = vmatprep.subr.mxu0 %v6725_v42  ;;  %2904 = vmatprep.subr.mxu1 %v6727_v24 }
 0x3e9   :  { %2834 = vmatpush1.msra.mxu0 %v6731_v62  ;;  %2905 = vmatpush1.msra.mxu1 %v6733_v61  ;;  %v8330_v61 = vld [vmem:[#allocation23_spill] sm:$0xff] }
 0x3ea   :  { %2835 = vmatprep.subr.mxu0 %v6737_v13  ;;  %2906 = vmatprep.subr.mxu1 %v6739_v46 }
 0x3eb   :  { %2836 = vmatpush1.msra.mxu0 %v6743_v18  ;;  %2907 = vmatpush1.msra.mxu1 %v6745_v28  ;;  %v6763_v18 = vld [vmem:[#allocation8 + $0x18] sm:$0xff]  ;;  %v6767_v28 = vld [vmem:[#allocation8] sm:$0xff] }
 0x3ec   :  { %2837 = vmatprep.subr.mxu0 %v6749_v30  ;;  %2908 = vmatprep.subr.mxu1 %v6751_v39  ;;  %8324 = vst [vmem:[#allocation49_spill] sm:$0xff] %v6763_v18  ;;  %8325 = vst [vmem:[#allocation50_spill] sm:$0xff] %v6767_v28  ;;  %v6769_v30 = vld [vmem:[#allocation8 + $0x10] sm:$0xff]  ;;  %v6773_v39 = vld [vmem:[#allocation9 + $0x1e8] sm:$0xff] }
 0x3ed   :  { %2838 = vmatpush1.msra.mxu0 %v6755_v50  ;;  %2909 = vmatpush1.msra.mxu1 %v6757_v22  ;;  %8326 = vst [vmem:[#allocation51_spill] sm:$0xff] %v6769_v30  ;;  %8327 = vst [vmem:[#allocation52_spill] sm:$0xff] %v6773_v39  ;;  %v6775_v50 = vld [vmem:[#allocation9 + $0x1f8] sm:$0xff] }
 0x3ee   :  { %2839 = vmatprep.subr.mxu0 %v6761_v47  ;;  %2910 = vmatprep.subr.mxu1 %v6763_v18  ;;  %8328 = vst [vmem:[#allocation53_spill] sm:$0xff] %v6775_v50  ;;  %v8329_v47 = vld [vmem:[#allocation21_spill] sm:$0xff] }
 0x3ef   :  { %2840 = vmatpush1.msra.mxu0 %v6767_v28  ;;  %2911 = vmatpush1.msra.mxu1 %v6769_v30  ;;  %v8331_v30 = vld [vmem:[#allocation22_spill] sm:$0xff] }
 0x3f0   :  { %3023 = vmatprep.subr.mxu0 %v6773_v39  ;;  %3094 = vmatprep.subr.mxu1 %v6775_v50 }
 0x46b   :  { %v2388_v22 = vpop.f32.mrf.mxu0  ;;  %v2459_v28 = vpop.f32.mrf.mxu1 }
 0x46c   :  { %v2464_v46 = vadd.f32 %v2388_v22, %v8329_v47  ;;  %v2466_v42 = vadd.f32 %v2459_v28, %v8331_v30 }
 0x46d   :  { %v2390_v18 = vpop.f32.mrf.mxu0  ;;  %v2461_v23 = vpop.f32.mrf.mxu1 }
 0x46e   :  { %v4704_v13 = vmul.f32 -1.442695, %v2464_v46  ;;  %v2465_v62 = vadd.f32 %v2390_v18, %v8330_v61  ;;  %v4706_v55 = vmul.f32 -1.442695, %v2466_v42  ;;  %v2467_v40 = vadd.f32 %v2461_v23, %v8332_v36  ;;  %v8333_v42 = vld [vmem:[#allocation108_spill] sm:$0xff] }
 0x470   :  { %4845 = vpow2.f32 %v4704_v13  ;;  %v4705_v24 = vmul.f32 -1.442695, %v2465_v62 }
 0x472   :  { %4847 = vpow2.f32 %v4705_v24 }
 0x473   :  { %4849 = vpow2.f32 %v4706_v55 }
 0x474   :  { %4851 = vtanh.f32 %v2467_v40  ;;  %v8334_v40 = vld [vmem:[#allocation110_spill] sm:$0xff] }
 0x47d   :  { %v4846_v39 = vpop.eup %4845 }
 0x47e   :  { %v2694_v29 = vadd.f32 1.0, %v4846_v39 }
 0x47f   :  { %v4848_v50 = vpop.eup %4847 }
 0x480   :  { %4853 = vrcp.f32 %v2694_v29  ;;  %v2695_v22 = vadd.f32 1.0, %v4848_v50  ;;  %v4850_v46 = vpop.eup %4849 }
 0x481   :  { %v4852_v61 = vpop.eup %4851  ;;  %v2696_v18 = vadd.f32 1.0, %v4850_v46 }
 0x482   :  { %4855 = vrcp.f32 %v2695_v22  ;;  %v8335_v22 = vld [vmem:[#allocation109_spill] sm:$0xff] }
 0x483   :  { %4857 = vrcp.f32 %v2696_v18  ;;  %v6791_v18 = vld [vmem:[#allocation9 + $0x1e0] sm:$0xff] }
 0x48d   :  { %v4854_v13 = vpop.eup %4853 }
 0x48e   :  { %v2724_v62 = vmul.f32 %v4854_v13, %v4852_v61 }
 0x48f   :  { %v4856_v24 = vpop.eup %4855  ;;  %v2605_v30 = vpop.f32.mrf.mxu0 }
 0x490   :  { %v2723_v28 = vmul.f32 %v4856_v24, %v6505_v32  ;;  %v2681_v47 = vadd.f32 %v2605_v30, %v8333_v42  ;;  %v2676_v50 = vpop.f32.mrf.mxu1  ;;  %v4858_v13 = vpop.eup %4857  ;;  %v8336_v24 = vld [vmem:[#allocation111_spill] sm:$0xff] }
 0x491   :  { %v2607_v23 = vpop.f32.mrf.mxu0  ;;  %v2683_v46 = vadd.f32 %v2676_v50, %v8335_v22  ;;  %v6801_v50 = vld [vmem:[#allocation9 + $0x1d0] sm:$0xff] }
 0x492   :  { %v6785_v36 = vadd.f32 %v2724_v62, %v2723_v28  ;;  %v4707_v55 = vmul.f32 -1.442695, %v2681_v47  ;;  %v2682_v29 = vadd.f32 %v2607_v23, %v8334_v40  ;;  %v2678_v61 = vpop.f32.mrf.mxu1  ;;  %v6793_v47 = vld [vmem:[#allocation9 + $0x1f0] sm:$0xff]  ;;  %v6797_v40 = vld [vmem:[#allocation9 + $0x1d8] sm:$0xff]  ;;  %8340 = vst [vmem:[#allocation57_spill] sm:$0xff] %v6801_v50 }
 0x493   :  { %v4709_v32 = vmul.f32 -1.442695, %v2683_v46  ;;  %v2684_v30 = vadd.f32 %v2678_v61, %v8336_v24  ;;  %8338 = vst [vmem:[#allocation55_spill] sm:$0xff] %v6797_v40  ;;  %v6805_v46 = vld [vmem:[#allocation9 + $0x1a8] sm:$0xff]  ;;  %v6807_v61 = vld [vmem:[#allocation9 + $0x1b8] sm:$0xff] }
 0x494   :  { %4859 = vtanh.f32 %v6785_v36  ;;  %v4708_v39 = vmul.f32 -1.442695, %v2682_v29  ;;  %8341 = vst [vmem:[#allocation17_spill] sm:$0xff] %v6805_v46  ;;  %8342 = vst [vmem:[#allocation19_spill] sm:$0xff] %v6807_v61  ;;  %v6817_v24 = vld [vmem:[#allocation9 + $0x188] sm:$0xff] }
 0x495   :  { %4861 = vpow2.f32 %v4707_v55  ;;  %v6795_v55 = vld [vmem:[#allocation9 + $0x1c8] sm:$0xff]  ;;  %8345 = vst [vmem:[#allocation112_spill] sm:$0xff] %v6817_v24 }
 0x496   :  { %4863 = vpow2.f32 %v4708_v39  ;;  %8337 = vst [vmem:[#allocation54_spill] sm:$0xff] %v6795_v55  ;;  %v6799_v39 = vld [vmem:[#allocation9 + $0x1c0] sm:$0xff] }
 0x497   :  { %4865 = vpow2.f32 %v4709_v32  ;;  %8339 = vst [vmem:[#allocation56_spill] sm:$0xff] %v6799_v39  ;;  %v6811_v32 = vld [vmem:[#allocation9 + $0x1a0] sm:$0xff] }
 0x498   :  { %4867 = vtanh.f32 %v2684_v30  ;;  %8343 = vst [vmem:[#allocation18_spill] sm:$0xff] %v6811_v32  ;;  %v6819_v30 = vld [vmem:[#allocation9 + $0x198] sm:$0xff] }
 0x499   :  { %8346 = vst [vmem:[#allocation114_spill] sm:$0xff] %v6819_v30 }
 0x4a1   :  { %v4860_v62 = vpop.eup %4859 }
 0x4a2   :  { %v4862_v28 = vpop.eup %4861  ;;  %v2730_v42 = vmul.f32 %v4860_v62, %v4858_v13  ;;  %v6813_v13 = vld [vmem:[#allocation9 + $0x1b0] sm:$0xff]  ;;  %v6823_v62 = vld [vmem:[#allocation9 + $0x180] sm:$0xff] }
 0x4a3   :  { %v2713_v23 = vadd.f32 1.0, %v4862_v28  ;;  %v4864_v29 = vpop.eup %4863  ;;  %8344 = vst [vmem:[#allocation20_spill] sm:$0xff] %v6813_v13  ;;  %8347 = vst [vmem:[#allocation113_spill] sm:$0xff] %v6823_v62  ;;  %v6825_v28 = vld [vmem:[#allocation9 + $0x190] sm:$0xff] }
 0x4a4   :  { %2736 = vst [vmem:[#allocation12 + $0x30] sm:$0xff] %v2730_v42  ;;  %2874 = vmatmul.mubr.f32.vlgmr.msra.gmra.mxu0 %v2730_v42  ;;  %2945 = vmatmul.mubr.f32.vlgmr.msra.gmra.mxu1 %v2730_v42  ;;  %v2714_v22 = vadd.f32 1.0, %v4864_v29  ;;  %8348 = vst [vmem:[#allocation115_spill] sm:$0xff] %v6825_v28  ;;  %v6829_v42 = vld [vmem:[#allocation9 + $0x168] sm:$0xff]  ;;  %v6835_v29 = vld [vmem:[#allocation9 + $0x160] sm:$0xff] }
 0x4a5   :  { %4869 = vrcp.f32 %v2713_v23  ;;  %3024 = vmatpush1.msra.mxu0 %v6791_v18  ;;  %3095 = vmatpush1.msra.mxu1 %v6793_v47  ;;  %8349 = vst [vmem:[#allocation58_spill] sm:$0xff] %v6829_v42  ;;  %v6831_v23 = vld [vmem:[#allocation9 + $0x178] sm:$0xff]  ;;  %8351 = vst [vmem:[#allocation60_spill] sm:$0xff] %v6835_v29 }
 0x4a6   :  { %3025 = vmatprep.subr.mxu0 %v6795_v55  ;;  %3096 = vmatprep.subr.mxu1 %v6797_v40  ;;  %4871 = vrcp.f32 %v2714_v22  ;;  %8350 = vst [vmem:[#allocation59_spill] sm:$0xff] %v6831_v23  ;;  %v6837_v22 = vld [vmem:[#allocation9 + $0x170] sm:$0xff] }
 0x4a7   :  { %3026 = vmatpush1.msra.mxu0 %v6799_v39  ;;  %3097 = vmatpush1.msra.mxu1 %v6801_v50  ;;  %8352 = vst [vmem:[#allocation61_spill] sm:$0xff] %v6837_v22 }
 0x4a8   :  { %3027 = vmatprep.subr.mxu0 %v6805_v46  ;;  %3098 = vmatprep.subr.mxu1 %v6807_v61  ;;  %v6841_v61 = vld [vmem:[#allocation9 + $0x148] sm:$0xff] }
 0x4a9   :  { %3028 = vmatpush1.msra.mxu0 %v6811_v32  ;;  %3099 = vmatpush1.msra.mxu1 %v6813_v13  ;;  %8353 = vst [vmem:[#allocation62_spill] sm:$0xff] %v6841_v61  ;;  %v6843_v32 = vld [vmem:[#allocation9 + $0x158] sm:$0xff]  ;;  %v6847_v13 = vld [vmem:[#allocation9 + $0x140] sm:$0xff] }
 0x4aa   :  { %3029 = vmatprep.subr.mxu0 %v6817_v24  ;;  %3100 = vmatprep.subr.mxu1 %v6819_v30  ;;  %8354 = vst [vmem:[#allocation63_spill] sm:$0xff] %v6843_v32  ;;  %8355 = vst [vmem:[#allocation64_spill] sm:$0xff] %v6847_v13  ;;  %v6849_v24 = vld [vmem:[#allocation9 + $0x150] sm:$0xff]  ;;  %v6853_v30 = vld [vmem:[#allocation9 + $0x128] sm:$0xff] }
 0x4ab   :  { %3030 = vmatpush1.msra.mxu0 %v6823_v62  ;;  %3101 = vmatpush1.msra.mxu1 %v6825_v28  ;;  %8356 = vst [vmem:[#allocation65_spill] sm:$0xff] %v6849_v24  ;;  %8357 = vst [vmem:[#allocation66_spill] sm:$0xff] %v6853_v30  ;;  %v6855_v62 = vld [vmem:[#allocation9 + $0x138] sm:$0xff]  ;;  %v6859_v28 = vld [vmem:[#allocation9 + $0x120] sm:$0xff] }
 0x4ac   :  { %3031 = vmatprep.subr.mxu0 %v6829_v42  ;;  %3102 = vmatprep.subr.mxu1 %v6831_v23  ;;  %8358 = vst [vmem:[#allocation67_spill] sm:$0xff] %v6855_v62  ;;  %8359 = vst [vmem:[#allocation68_spill] sm:$0xff] %v6859_v28  ;;  %v6861_v42 = vld [vmem:[#allocation9 + $0x130] sm:$0xff]  ;;  %v6865_v23 = vld [vmem:[#allocation9 + $0x108] sm:$0xff] }
 0x4ad   :  { %3032 = vmatpush1.msra.mxu0 %v6835_v29  ;;  %3103 = vmatpush1.msra.mxu1 %v6837_v22  ;;  %8360 = vst [vmem:[#allocation69_spill] sm:$0xff] %v6861_v42  ;;  %8361 = vst [vmem:[#allocation70_spill] sm:$0xff] %v6865_v23  ;;  %v6867_v29 = vld [vmem:[#allocation9 + $0x118] sm:$0xff]  ;;  %v4866_v22 = vpop.eup %4865 }
 0x4ae   :  { %3033 = vmatprep.subr.mxu0 %v6841_v61  ;;  %3104 = vmatprep.subr.mxu1 %v6843_v32  ;;  %8362 = vst [vmem:[#allocation71_spill] sm:$0xff] %v6867_v29  ;;  %v6871_v61 = vld [vmem:[#allocation9 + $0x100] sm:$0xff]  ;;  %v6873_v32 = vld [vmem:[#allocation9 + $0x110] sm:$0xff]  ;;  %v4868_v46 = vpop.eup %4867  ;;  %v2715_v55 = vadd.f32 1.0, %v4866_v22 }
 0x4af   :  { %3034 = vmatpush1.msra.mxu0 %v6847_v13  ;;  %3105 = vmatpush1.msra.mxu1 %v6849_v24  ;;  %8363 = vst [vmem:[#allocation72_spill] sm:$0xff] %v6873_v32  ;;  %v6877_v13 = vld [vmem:[#allocation9 + $0xe8] sm:$0xff]  ;;  %v6879_v24 = vld [vmem:[#allocation9 + $0xf8] sm:$0xff]  ;;  %v6908_v22 = vld [vmem:[#allocation9 + $0xa0] sm:$0xff] }
 0x4b0   :  { %3035 = vmatprep.subr.mxu0 %v6853_v30  ;;  %3106 = vmatprep.subr.mxu1 %v6855_v62  ;;  %8364 = vst [vmem:[#allocation73_spill] sm:$0xff] %v6877_v13  ;;  %8365 = vst [vmem:[#allocation74_spill] sm:$0xff] %v6879_v24  ;;  %v6883_v30 = vld [vmem:[#allocation9 + $0xe0] sm:$0xff]  ;;  %v6885_v62 = vld [vmem:[#allocation9 + $0xf0] sm:$0xff]  ;;  %4873 = vrcp.f32 %v2715_v55 }
 0x4b1   :  { %3036 = vmatpush1.msra.mxu0 %v6859_v28  ;;  %3107 = vmatpush1.msra.mxu1 %v6861_v42  ;;  %v6889_v28 = vld [vmem:[#allocation9 + $0xc8] sm:$0xff]  ;;  %v6891_v42 = vld [vmem:[#allocation9 + $0xd8] sm:$0xff]  ;;  %8370 = vst [vmem:[#allocation79_spill] sm:$0xff] %v6908_v22  ;;  %v6935_v55 = vld [vmem:[#allocation9 + $0x60] sm:$0xff] }
 0x4b2   :  { %v4870_v50 = vpop.eup %4869  ;;  %3037 = vmatprep.subr.mxu0 %v6865_v23  ;;  %3108 = vmatprep.subr.mxu1 %v6867_v29  ;;  %8366 = vst [vmem:[#allocation75_spill] sm:$0xff] %v6889_v28  ;;  %8367 = vst [vmem:[#allocation76_spill] sm:$0xff] %v6891_v42  ;;  %v6895_v29 = vld [vmem:[#allocation9 + $0xc0] sm:$0xff]  ;;  %v6897_v23 = vld [vmem:[#allocation9 + $0xd0] sm:$0xff] }
 0x4b3   :  { %v2727_v39 = vmul.f32 %v4870_v50, %v4868_v46  ;;  %3038 = vmatpush1.msra.mxu0 %v6871_v61  ;;  %3109 = vmatpush1.msra.mxu1 %v6873_v32  ;;  %v4872_v40 = vpop.eup %4871  ;;  %v6902_v46 = vld [vmem:[#allocation9 + $0xa8] sm:$0xff]  ;;  %v6904_v32 = vld [vmem:[#allocation9 + $0xb8] sm:$0xff]  ;;  %8378 = vst [vmem:[#allocation121_spill] sm:$0xff] %v6935_v55 }
 0x4b4   :  { %3039 = vmatprep.subr.mxu0 %v6877_v13  ;;  %3110 = vmatprep.subr.mxu1 %v6879_v24  ;;  %v2726_v50 = vmul.f32 %v4872_v40, %v6548_v26  ;;  %8368 = vst [vmem:[#allocation77_spill] sm:$0xff] %v6902_v46  ;;  %8369 = vst [vmem:[#allocation78_spill] sm:$0xff] %v6904_v32  ;;  %v6910_v24 = vld [vmem:[#allocation9 + $0xb0] sm:$0xff]  ;;  %v6916_v26 = vld [vmem:[#allocation9 + $0x88] sm:$0xff] }
 0x4b5   :  { %3040 = vmatpush1.msra.mxu0 %v6883_v30  ;;  %3111 = vmatpush1.msra.mxu1 %v6885_v62  ;;  %8371 = vst [vmem:[#allocation80_spill] sm:$0xff] %v6910_v24  ;;  %8372 = vst [vmem:[#allocation81_spill] sm:$0xff] %v6916_v26  ;;  %v6918_v40 = vld [vmem:[#allocation9 + $0x98] sm:$0xff] }
 0x4b6   :  { %3041 = vmatprep.subr.mxu0 %v6889_v28  ;;  %3112 = vmatprep.subr.mxu1 %v6891_v42  ;;  %v6912_v13 = vadd.f32 %v2727_v39, %v2726_v50  ;;  %8373 = vst [vmem:[#allocation116_spill] sm:$0xff] %v6918_v40  ;;  %v6922_v42 = vld [vmem:[#allocation9 + $0x80] sm:$0xff]  ;;  %v6924_v28 = vld [vmem:[#allocation9 + $0x90] sm:$0xff]  ;;  %v6929_v39 = vld [vmem:[#allocation9 + $0x68] sm:$0xff] }
 0x4b7   :  { %3042 = vmatpush1.msra.mxu0 %v6895_v29  ;;  %3113 = vmatpush1.msra.mxu1 %v6897_v23  ;;  %8374 = vst [vmem:[#allocation117_spill] sm:$0xff] %v6922_v42  ;;  %8375 = vst [vmem:[#allocation118_spill] sm:$0xff] %v6924_v28  ;;  %v6931_v50 = vld [vmem:[#allocation9 + $0x78] sm:$0xff] }
 0x4b8   :  { %3043 = vmatprep.subr.mxu0 %v6902_v46  ;;  %3114 = vmatprep.subr.mxu1 %v6904_v32  ;;  %4875 = vtanh.f32 %v6912_v13  ;;  %8376 = vst [vmem:[#allocation119_spill] sm:$0xff] %v6929_v39  ;;  %8377 = vst [vmem:[#allocation120_spill] sm:$0xff] %v6931_v50  ;;  %v6937_v32 = vld [vmem:[#allocation9 + $0x70] sm:$0xff]  ;;  %v6941_v46 = vld [vmem:[#allocation9 + $0x48] sm:$0xff] }
 0x4b9   :  { %3044 = vmatpush1.msra.mxu0 %v6908_v22  ;;  %3115 = vmatpush1.msra.mxu1 %v6910_v24  ;;  %8379 = vst [vmem:[#allocation122_spill] sm:$0xff] %v6937_v32  ;;  %v6943_v22 = vld [vmem:[#allocation9 + $0x58] sm:$0xff]  ;;  %v6947_v24 = vld [vmem:[#allocation9 + $0x40] sm:$0xff] }
 0x4ba   :  { %3045 = vmatprep.subr.mxu0 %v6916_v26  ;;  %3116 = vmatprep.subr.mxu1 %v6918_v40  ;;  %8380 = vst [vmem:[#allocation123_spill] sm:$0xff] %v6943_v22  ;;  %v6949_v26 = vld [vmem:[#allocation9 + $0x50] sm:$0xff]  ;;  %v6953_v40 = vld [vmem:[#allocation9 + $0x28] sm:$0xff] }
 0x4bb   :  { %3046 = vmatpush1.msra.mxu0 %v6922_v42  ;;  %3117 = vmatpush1.msra.mxu1 %v6924_v28  ;;  %v6955_v42 = vld [vmem:[#allocation9 + $0x38] sm:$0xff]  ;;  %v6959_v28 = vld [vmem:[#allocation9 + $0x20] sm:$0xff] }
 0x4bc   :  { %3047 = vmatprep.subr.mxu0 %v6929_v39  ;;  %3118 = vmatprep.subr.mxu1 %v6931_v50  ;;  %8381 = vst [vmem:[#allocation124_spill] sm:$0xff] %v6955_v42  ;;  %8382 = vst [vmem:[#allocation125_spill] sm:$0xff] %v6959_v28  ;;  %v6961_v39 = vld [vmem:[#allocation9 + $0x30] sm:$0xff]  ;;  %v6965_v50 = vld [vmem:[#allocation9 + $0x8] sm:$0xff] }
 0x4bd   :  { %3048 = vmatpush1.msra.mxu0 %v6935_v55  ;;  %3119 = vmatpush1.msra.mxu1 %v6937_v32  ;;  %8383 = vst [vmem:[#allocation126_spill] sm:$0xff] %v6961_v39  ;;  %v6967_v55 = vld [vmem:[#allocation9 + $0x18] sm:$0xff]  ;;  %v6971_v32 = vld [vmem:[#allocation9] sm:$0xff] }
 0x4be   :  { %3049 = vmatprep.subr.mxu0 %v6941_v46  ;;  %3120 = vmatprep.subr.mxu1 %v6943_v22  ;;  %v6975_v22 = vld [vmem:[#allocation9 + $0x10] sm:$0xff] }
 0x4bf   :  { %3050 = vmatpush1.msra.mxu0 %v6947_v24  ;;  %3121 = vmatpush1.msra.mxu1 %v6949_v26 }
 0x4c0   :  { %3051 = vmatprep.subr.mxu0 %v6953_v40  ;;  %3122 = vmatprep.subr.mxu1 %v6955_v42  ;;  %v4874_v42 = vpop.eup %4873 }
 0x4c1   :  { %3052 = vmatpush1.msra.mxu0 %v6959_v28  ;;  %3123 = vmatpush1.msra.mxu1 %v6961_v39 }
 0x4c2   :  { %3053 = vmatprep.subr.mxu0 %v6965_v50  ;;  %3124 = vmatprep.subr.mxu1 %v6967_v55 }
 0x4c3   :  { %3054 = vmatpush1.msra.mxu0 %v6971_v32  ;;  %3087 = vmatprep.mubr.f32.mxu0 %v7991_v3 }
 0x4c4   :  { %3125 = vmatpush1.msra.mxu1 %v6975_v22  ;;  %3158 = vmatprep.mubr.f32.mxu1 %v7991_v3 }
 0x4c5   :  { %3287 = vmatprep.subr.mxu0 %v6581_v52  ;;  %3358 = vmatprep.subr.mxu1 %v6583_v48  ;;  %v4876_v39 = vpop.eup %4875  ;;  %v8384_v52 = vld [vmem:[#allocation31_spill] sm:$0xff]  ;;  %v8385_v48 = vld [vmem:[#allocation32_spill] sm:$0xff] }
 0x4c6   :  { %v2732_v28 = vmul.f32 %v4876_v39, %v4874_v42 }
 0x4c8   :  { %2740 = vst [vmem:[#allocation12 + $0x48] sm:$0xff] %v2732_v28  ;;  %3088 = vmatmul.mubr.f32.vlgmr.msra.gmra.mxu0 %v2732_v28  ;;  %3159 = vmatmul.mubr.f32.vlgmr.msra.gmra.mxu1 %v2732_v28 }
 0x4c9   :  { %3288 = vmatpush1.msra.mxu0 %v6587_v44  ;;  %3359 = vmatpush1.msra.mxu1 %v6589_v34  ;;  %v8386_v44 = vld [vmem:[#allocation33_spill] sm:$0xff]  ;;  %v8387_v34 = vld [vmem:[#allocation34_spill] sm:$0xff] }
 0x4ca   :  { %3289 = vmatprep.subr.mxu0 %v6593_v37  ;;  %3360 = vmatprep.subr.mxu1 %v6595_v17  ;;  %v8388_v37 = vld [vmem:[#allocation35_spill] sm:$0xff]  ;;  %v8389_v17 = vld [vmem:[#allocation36_spill] sm:$0xff] }
 0x4cb   :  { %3290 = vmatpush1.msra.mxu0 %v6599_v27  ;;  %3361 = vmatpush1.msra.mxu1 %v6601_v15  ;;  %v8390_v27 = vld [vmem:[#allocation37_spill] sm:$0xff]  ;;  %v8391_v15 = vld [vmem:[#allocation38_spill] sm:$0xff] }
 0x4cc   :  { %3291 = vmatprep.subr.mxu0 %v6605_v2  ;;  %3362 = vmatprep.subr.mxu1 %v6607_v20  ;;  %v8392_v2 = vld [vmem:[#allocation39_spill] sm:$0xff]  ;;  %v8393_v20 = vld [vmem:[#allocation40_spill] sm:$0xff] }
 0x4cd   :  { %3292 = vmatpush1.msra.mxu0 %v6611_v19  ;;  %3363 = vmatpush1.msra.mxu1 %v6613_v35  ;;  %v8394_v19 = vld [vmem:[#allocation41_spill] sm:$0xff]  ;;  %v8395_v35 = vld [vmem:[#allocation42_spill] sm:$0xff] }
 0x4ce   :  { %3293 = vmatprep.subr.mxu0 %v6617_v60  ;;  %3364 = vmatprep.subr.mxu1 %v6619_v63  ;;  %v8396_v60 = vld [vmem:[#allocation43_spill] sm:$0xff]  ;;  %v8397_v63 = vld [vmem:[#allocation44_spill] sm:$0xff] }
 0x4cf   :  { %3294 = vmatpush1.msra.mxu0 %v6623_v45  ;;  %3365 = vmatpush1.msra.mxu1 %v6625_v53  ;;  %v8398_v45 = vld [vmem:[#allocation45_spill] sm:$0xff]  ;;  %v8399_v53 = vld [vmem:[#allocation46_spill] sm:$0xff] }
 0x4d0   :  { %3295 = vmatprep.subr.mxu0 %v6629_v1  ;;  %3366 = vmatprep.subr.mxu1 %v6631_v25  ;;  %v8400_v1 = vld [vmem:[#allocation47_spill] sm:$0xff]  ;;  %v8401_v25 = vld [vmem:[#allocation48_spill] sm:$0xff] }
 0x4d1   :  { %3296 = vmatpush1.msra.mxu0 %v6635_v57  ;;  %3367 = vmatpush1.msra.mxu1 %v6637_v5  ;;  %v8402_v57 = vld [vmem:[#allocation49_spill] sm:$0xff]  ;;  %v8403_v5 = vld [vmem:[#allocation50_spill] sm:$0xff] }
 0x4d2   :  { %3297 = vmatprep.subr.mxu0 %v6641_v58  ;;  %3368 = vmatprep.subr.mxu1 %v6643_v38  ;;  %v8404_v58 = vld [vmem:[#allocation51_spill] sm:$0xff]  ;;  %v8405_v38 = vld [vmem:[#allocation52_spill] sm:$0xff] }
 0x4d3   :  { %3298 = vmatpush1.msra.mxu0 %v6647_v49  ;;  %3369 = vmatpush1.msra.mxu1 %v6649_v0  ;;  %v8406_v49 = vld [vmem:[#allocation53_spill] sm:$0xff] }
 0x4d4   :  { %3299 = vmatprep.subr.mxu0 %v6653_v56  ;;  %3370 = vmatprep.subr.mxu1 %v6655_v6  ;;  %v8407_v56 = vld [vmem:[#allocation25_spill] sm:$0xff] }
 0x4d5   :  { %3300 = vmatpush1.msra.mxu0 %v6659_v4  ;;  %3371 = vmatpush1.msra.mxu1 %v6661_v7 }
 0x4d6   :  { %3301 = vmatprep.subr.mxu0 %v6665_v8  ;;  %3372 = vmatprep.subr.mxu1 %v6667_v9  ;;  %v8408_v8 = vld [vmem:[#allocation27_spill] sm:$0xff] }
 0x4d7   :  { %3302 = vmatpush1.msra.mxu0 %v6671_v10  ;;  %3373 = vmatpush1.msra.mxu1 %v6673_v12 }
 0x4d8   :  { %3303 = vmatprep.subr.mxu0 %v6677_v41  ;;  %3374 = vmatprep.subr.mxu1 %v6679_v33  ;;  %v8409_v41 = vld [vmem:[#allocation26_spill] sm:$0xff] }
 0x4d9   :  { %3304 = vmatpush1.msra.mxu0 %v6683_v43  ;;  %3375 = vmatpush1.msra.mxu1 %v6685_v21 }
 0x4da   :  { %3305 = vmatprep.subr.mxu0 %v6689_v16  ;;  %3376 = vmatprep.subr.mxu1 %v6691_v51  ;;  %v8410_v16 = vld [vmem:[#allocation28_spill] sm:$0xff] }
 0x4db   :  { %3306 = vmatpush1.msra.mxu0 %v6695_v59  ;;  %3377 = vmatpush1.msra.mxu1 %v6697_v11 }
 0x4dc   :  { %3307 = vmatprep.subr.mxu0 %v6701_v14  ;;  %3378 = vmatprep.subr.mxu1 %v6703_v31 }
 0x4dd   :  { %3308 = vmatpush1.msra.mxu0 %v6707_v54  ;;  %3379 = vmatpush1.msra.mxu1 %v8384_v52 }
 0x4de   :  { %3309 = vmatprep.subr.mxu0 %v8385_v48  ;;  %3380 = vmatprep.subr.mxu1 %v8386_v44 }
 0x4df   :  { %3310 = vmatpush1.msra.mxu0 %v8387_v34  ;;  %3381 = vmatpush1.msra.mxu1 %v8388_v37  ;;  %v8411_v37 = vld [vmem:[#allocation104_spill] sm:$0xff] }
 0x4e0   :  { %3311 = vmatprep.subr.mxu0 %v8389_v17  ;;  %3382 = vmatprep.subr.mxu1 %v8390_v27 }
 0x4e1   :  { %3312 = vmatpush1.msra.mxu0 %v8391_v15  ;;  %3383 = vmatpush1.msra.mxu1 %v8392_v2 }
 0x4e2   :  { %3313 = vmatprep.subr.mxu0 %v8393_v20  ;;  %3384 = vmatprep.subr.mxu1 %v8394_v19  ;;  %v8412_v20 = vld [vmem:[#allocation106_spill] sm:$0xff] }
 0x4e3   :  { %3314 = vmatpush1.msra.mxu0 %v8395_v35  ;;  %3385 = vmatpush1.msra.mxu1 %v8396_v60 }
 0x4e4   :  { %3315 = vmatprep.subr.mxu0 %v8397_v63  ;;  %3386 = vmatprep.subr.mxu1 %v8398_v45  ;;  %v8413_v63 = vld [vmem:[#allocation105_spill] sm:$0xff] }
 0x4e5   :  { %3316 = vmatpush1.msra.mxu0 %v8399_v53  ;;  %3387 = vmatpush1.msra.mxu1 %v8400_v1 }
 0x4e6   :  { %3317 = vmatprep.subr.mxu0 %v8401_v25  ;;  %3388 = vmatprep.subr.mxu1 %v8402_v57  ;;  %v8414_v25 = vld [vmem:[#allocation107_spill] sm:$0xff] }
 0x4e7   :  { %3318 = vmatpush1.msra.mxu0 %v8403_v5  ;;  %3351 = vmatprep.mubr.f32.mxu0 %v7991_v3 }
 0x4e8   :  { %3389 = vmatpush1.msra.mxu1 %v8404_v58  ;;  %3422 = vmatprep.mubr.f32.mxu1 %v7991_v3 }
 0x4e9   :  { %3501 = vmatprep.subr.mxu0 %v8405_v38  ;;  %3572 = vmatprep.subr.mxu1 %v8406_v49 }
 0x564   :  { %v2875_v0 = vpop.f32.mrf.mxu0  ;;  %v2946_v12 = vpop.f32.mrf.mxu1 }
 0x565   :  { %v2951_v6 = vadd.f32 %v2875_v0, %v8407_v56  ;;  %v2953_v33 = vadd.f32 %v2946_v12, %v8409_v41  ;;  %v8421_v12 = vld [vmem:[#allocation18_spill] sm:$0xff]  ;;  %v8422_v41 = vld [vmem:[#allocation20_spill] sm:$0xff] }
 0x566   :  { %v2877_v4 = vpop.f32.mrf.mxu0  ;;  %v2948_v43 = vpop.f32.mrf.mxu1 }
 0x567   :  { %v4710_v7 = vmul.f32 -1.442695, %v2951_v6  ;;  %v2952_v9 = vadd.f32 %v2877_v4, %v8408_v8  ;;  %v4712_v21 = vmul.f32 -1.442695, %v2953_v33  ;;  %v2954_v51 = vadd.f32 %v2948_v43, %v8410_v16  ;;  %v8415_v6 = vld [vmem:[#allocation54_spill] sm:$0xff]  ;;  %v8416_v4 = vld [vmem:[#allocation55_spill] sm:$0xff] }
 0x568   :  { %v8418_v8 = vld [vmem:[#allocation57_spill] sm:$0xff]  ;;  %v8426_v43 = vld [vmem:[#allocation115_spill] sm:$0xff] }
 0x569   :  { %4877 = vpow2.f32 %v4710_v7  ;;  %v4711_v10 = vmul.f32 -1.442695, %v2952_v9  ;;  %v8417_v7 = vld [vmem:[#allocation56_spill] sm:$0xff]  ;;  %v8419_v9 = vld [vmem:[#allocation17_spill] sm:$0xff]  ;;  %v8428_v16 = vld [vmem:[#allocation59_spill] sm:$0xff] }
 0x56a   :  { %v8425_v33 = vld [vmem:[#allocation113_spill] sm:$0xff] }
 0x56b   :  { %4879 = vpow2.f32 %v4711_v10  ;;  %v8420_v10 = vld [vmem:[#allocation19_spill] sm:$0xff] }
 0x56c   :  { %4881 = vpow2.f32 %v4712_v21  ;;  %v8427_v21 = vld [vmem:[#allocation58_spill] sm:$0xff] }
 0x56d   :  { %4883 = vtanh.f32 %v2954_v51  ;;  %v8429_v51 = vld [vmem:[#allocation60_spill] sm:$0xff] }
 0x576   :  { %v4878_v59 = vpop.eup %4877 }
 0x577   :  { %v3178_v11 = vadd.f32 1.0, %v4878_v59  ;;  %v8430_v59 = vld [vmem:[#allocation61_spill] sm:$0xff] }
 0x578   :  { %v4880_v14 = vpop.eup %4879 }
 0x579   :  { %4885 = vrcp.f32 %v3178_v11  ;;  %v3179_v31 = vadd.f32 1.0, %v4880_v14  ;;  %v4882_v54 = vpop.eup %4881  ;;  %v8431_v11 = vld [vmem:[#allocation62_spill] sm:$0xff]  ;;  %v8432_v14 = vld [vmem:[#allocation63_spill] sm:$0xff] }
 0x57a   :  { %v4884_v28 = vpop.eup %4883  ;;  %v3180_v48 = vadd.f32 1.0, %v4882_v54  ;;  %v8434_v54 = vld [vmem:[#allocation65_spill] sm:$0xff] }
 0x57b   :  { %4887 = vrcp.f32 %v3179_v31  ;;  %v8433_v31 = vld [vmem:[#allocation64_spill] sm:$0xff] }
 0x57c   :  { %4889 = vrcp.f32 %v3180_v48  ;;  %v8437_v48 = vld [vmem:[#allocation68_spill] sm:$0xff] }
 0x586   :  { %v4886_v42 = vpop.eup %4885 }
 0x587   :  { %v3208_v39 = vmul.f32 %v4886_v42, %v4884_v28  ;;  %v8435_v42 = vld [vmem:[#allocation66_spill] sm:$0xff] }
 0x588   :  { %v4888_v52 = vpop.eup %4887  ;;  %v3089_v34 = vpop.f32.mrf.mxu0 }
 0x589   :  { %v3207_v44 = vmul.f32 %v4888_v52, %v6785_v36  ;;  %v3165_v17 = vadd.f32 %v3089_v34, %v8411_v37  ;;  %v3160_v60 = vpop.f32.mrf.mxu1  ;;  %v4890_v1 = vpop.eup %4889  ;;  %v8439_v37 = vld [vmem:[#allocation70_spill] sm:$0xff] }
 0x58a   :  { %v3091_v15 = vpop.f32.mrf.mxu0  ;;  %v3167_v45 = vadd.f32 %v3160_v60, %v8413_v63  ;;  %v8443_v60 = vld [vmem:[#allocation74_spill] sm:$0xff] }
 0x58b   :  { %v7057_v27 = vadd.f32 %v3208_v39, %v3207_v44  ;;  %v4713_v2 = vmul.f32 -1.442695, %v3165_v17  ;;  %v3166_v19 = vadd.f32 %v3091_v15, %v8412_v20  ;;  %v3162_v53 = vpop.f32.mrf.mxu1  ;;  %v8436_v39 = vld [vmem:[#allocation67_spill] sm:$0xff]  ;;  %v8438_v44 = vld [vmem:[#allocation69_spill] sm:$0xff] }
 0x58c   :  { %v4715_v36 = vmul.f32 -1.442695, %v3167_v45  ;;  %v3168_v57 = vadd.f32 %v3162_v53, %v8414_v25  ;;  %v8440_v17 = vld [vmem:[#allocation71_spill] sm:$0xff]  ;;  %v8445_v53 = vld [vmem:[#allocation76_spill] sm:$0xff] }
 0x58d   :  { %4891 = vtanh.f32 %v7057_v27  ;;  %v4714_v35 = vmul.f32 -1.442695, %v3166_v19  ;;  %v8444_v45 = vld [vmem:[#allocation75_spill] sm:$0xff]  ;;  %v8451_v25 = vld [vmem:[#allocation116_spill] sm:$0xff] }
 0x58e   :  { %4893 = vpow2.f32 %v4713_v2  ;;  %v8441_v2 = vld [vmem:[#allocation72_spill] sm:$0xff] }
 0x58f   :  { %4895 = vpow2.f32 %v4714_v35  ;;  %v8442_v35 = vld [vmem:[#allocation73_spill] sm:$0xff] }
 0x590   :  { %4897 = vpow2.f32 %v4715_v36 }
 0x591   :  { %4899 = vtanh.f32 %v3168_v57  ;;  %v8452_v57 = vld [vmem:[#allocation117_spill] sm:$0xff] }
 0x59a   :  { %v4892_v5 = vpop.eup %4891 }
 0x59b   :  { %v4894_v58 = vpop.eup %4893  ;;  %v3214_v38 = vmul.f32 %v4892_v5, %v4890_v1  ;;  %v8447_v1 = vld [vmem:[#allocation78_spill] sm:$0xff]  ;;  %v8455_v5 = vld [vmem:[#allocation120_spill] sm:$0xff] }
 0x59c   :  { %v3197_v49 = vadd.f32 1.0, %v4894_v58  ;;  %v4896_v0 = vpop.eup %4895  ;;  %v8456_v58 = vld [vmem:[#allocation121_spill] sm:$0xff] }
 0x59d   :  { %3217 = vst [vmem:[#allocation12 + $0x40] sm:$0xff] %v3214_v38  ;;  %3352 = vmatmul.mubr.f32.vlgmr.msra.gmra.mxu0 %v3214_v38  ;;  %3423 = vmatmul.mubr.f32.vlgmr.msra.gmra.mxu1 %v3214_v38  ;;  %v3198_v56 = vadd.f32 1.0, %v4896_v0  ;;  %v4898_v28 = vpop.eup %4897  ;;  %v8457_v38 = vld [vmem:[#allocation122_spill] sm:$0xff]  ;;  %v8459_v0 = vld [vmem:[#allocation124_spill] sm:$0xff] }
 0x59e   :  { %4901 = vrcp.f32 %v3197_v49  ;;  %3502 = vmatpush1.msra.mxu0 %v6791_v18  ;;  %3573 = vmatpush1.msra.mxu1 %v6793_v47  ;;  %v8423_v18 = vld [vmem:[#allocation112_spill] sm:$0xff]  ;;  %v8424_v47 = vld [vmem:[#allocation114_spill] sm:$0xff]  ;;  %v4900_v52 = vpop.eup %4899  ;;  %v3199_v19 = vadd.f32 1.0, %v4898_v28  ;;  %v8458_v49 = vld [vmem:[#allocation123_spill] sm:$0xff] }
 0x59f   :  { %3503 = vmatprep.subr.mxu0 %v8415_v6  ;;  %3574 = vmatprep.subr.mxu1 %v8416_v4  ;;  %4903 = vrcp.f32 %v3198_v56  ;;  %v8460_v56 = vld [vmem:[#allocation125_spill] sm:$0xff]  ;;  %v8461_v6 = vld [vmem:[#allocation126_spill] sm:$0xff]  ;;  %v7147_v4 = vld [vmem:[#allocation8 + $0x1d8] sm:$0xff] }
 0x5a0   :  { %3504 = vmatpush1.msra.mxu0 %v8417_v7  ;;  %3575 = vmatpush1.msra.mxu1 %v8418_v8  ;;  %4905 = vrcp.f32 %v3199_v19  ;;  %v7151_v7 = vld [vmem:[#allocation8 + $0x1c0] sm:$0xff]  ;;  %v7153_v8 = vld [vmem:[#allocation8 + $0x1d0] sm:$0xff]  ;;  %v7205_v28 = vld [vmem:[#allocation8 + $0x128] sm:$0xff] }
 0x5a1   :  { %3505 = vmatprep.subr.mxu0 %v8419_v9  ;;  %3576 = vmatprep.subr.mxu1 %v8420_v10  ;;  %v7157_v9 = vld [vmem:[#allocation8 + $0x1a8] sm:$0xff]  ;;  %v7159_v10 = vld [vmem:[#allocation8 + $0x1b8] sm:$0xff] }
 0x5a2   :  { %3506 = vmatpush1.msra.mxu0 %v8421_v12  ;;  %3577 = vmatpush1.msra.mxu1 %v8422_v41  ;;  %v7163_v12 = vld [vmem:[#allocation8 + $0x1a0] sm:$0xff]  ;;  %v7165_v41 = vld [vmem:[#allocation8 + $0x1b0] sm:$0xff]  ;;  %v7241_v19 = vld [vmem:[#allocation8 + $0xc8] sm:$0xff] }
 0x5a3   :  { %3507 = vmatprep.subr.mxu0 %v8423_v18  ;;  %3578 = vmatprep.subr.mxu1 %v8424_v47  ;;  %v7169_v18 = vld [vmem:[#allocation8 + $0x188] sm:$0xff]  ;;  %v7171_v47 = vld [vmem:[#allocation8 + $0x198] sm:$0xff] }
 0x5a4   :  { %3508 = vmatpush1.msra.mxu0 %v8425_v33  ;;  %3579 = vmatpush1.msra.mxu1 %v8426_v43  ;;  %v7175_v33 = vld [vmem:[#allocation8 + $0x180] sm:$0xff]  ;;  %v7177_v43 = vld [vmem:[#allocation8 + $0x190] sm:$0xff] }
 0x5a5   :  { %3509 = vmatprep.subr.mxu0 %v8427_v21  ;;  %3580 = vmatprep.subr.mxu1 %v8428_v16  ;;  %v7181_v21 = vld [vmem:[#allocation8 + $0x168] sm:$0xff]  ;;  %v7183_v16 = vld [vmem:[#allocation8 + $0x178] sm:$0xff] }
 0x5a6   :  { %3510 = vmatpush1.msra.mxu0 %v8429_v51  ;;  %3581 = vmatpush1.msra.mxu1 %v8430_v59  ;;  %v7187_v51 = vld [vmem:[#allocation8 + $0x160] sm:$0xff]  ;;  %v7189_v59 = vld [vmem:[#allocation8 + $0x170] sm:$0xff] }
 0x5a7   :  { %3511 = vmatprep.subr.mxu0 %v8431_v11  ;;  %3582 = vmatprep.subr.mxu1 %v8432_v14  ;;  %v7193_v11 = vld [vmem:[#allocation8 + $0x148] sm:$0xff]  ;;  %v7195_v14 = vld [vmem:[#allocation8 + $0x158] sm:$0xff] }
 0x5a8   :  { %3512 = vmatpush1.msra.mxu0 %v8433_v31  ;;  %3583 = vmatpush1.msra.mxu1 %v8434_v54  ;;  %v7199_v31 = vld [vmem:[#allocation8 + $0x140] sm:$0xff]  ;;  %v7201_v54 = vld [vmem:[#allocation8 + $0x150] sm:$0xff] }
 0x5a9   :  { %3513 = vmatprep.subr.mxu0 %v8435_v42  ;;  %3584 = vmatprep.subr.mxu1 %v8436_v39  ;;  %v7207_v42 = vld [vmem:[#allocation8 + $0x138] sm:$0xff]  ;;  %v7211_v39 = vld [vmem:[#allocation8 + $0x120] sm:$0xff] }
 0x5aa   :  { %3514 = vmatpush1.msra.mxu0 %v8437_v48  ;;  %3585 = vmatpush1.msra.mxu1 %v8438_v44  ;;  %v7217_v48 = vld [vmem:[#allocation8 + $0x108] sm:$0xff]  ;;  %v7219_v44 = vld [vmem:[#allocation8 + $0x118] sm:$0xff] }
 0x5ab   :  { %v4902_v34 = vpop.eup %4901  ;;  %3515 = vmatprep.subr.mxu0 %v8439_v37  ;;  %3586 = vmatprep.subr.mxu1 %v8440_v17  ;;  %v7225_v37 = vld [vmem:[#allocation8 + $0x110] sm:$0xff]  ;;  %v7229_v17 = vld [vmem:[#allocation8 + $0xe8] sm:$0xff] }
 0x5ac   :  { %v3211_v15 = vmul.f32 %v4902_v34, %v4900_v52  ;;  %3516 = vmatpush1.msra.mxu0 %v6871_v61  ;;  %3587 = vmatpush1.msra.mxu1 %v8441_v2  ;;  %v4904_v20 = vpop.eup %4903  ;;  %v8446_v61 = vld [vmem:[#allocation77_spill] sm:$0xff]  ;;  %v7213_v52 = vld [vmem:[#allocation8 + $0x130] sm:$0xff]  ;;  %v7223_v34 = vld [vmem:[#allocation8 + $0x100] sm:$0xff] }
 0x5ad   :  { %3517 = vmatprep.subr.mxu0 %v8442_v35  ;;  %3588 = vmatprep.subr.mxu1 %v8443_v60  ;;  %v3210_v63 = vmul.f32 %v4904_v20, %v6912_v13  ;;  %v8448_v13 = vld [vmem:[#allocation79_spill] sm:$0xff]  ;;  %v7235_v2 = vld [vmem:[#allocation8 + $0xe0] sm:$0xff]  ;;  %v7237_v20 = vld [vmem:[#allocation8 + $0xf0] sm:$0xff] }
 0x5ae   :  { %3518 = vmatpush1.msra.mxu0 %v6883_v30  ;;  %3589 = vmatpush1.msra.mxu1 %v6885_v62  ;;  %v8449_v30 = vld [vmem:[#allocation80_spill] sm:$0xff]  ;;  %v8450_v62 = vld [vmem:[#allocation81_spill] sm:$0xff]  ;;  %v7243_v35 = vld [vmem:[#allocation8 + $0xd8] sm:$0xff] }
 0x5af   :  { %3519 = vmatprep.subr.mxu0 %v8444_v45  ;;  %3590 = vmatprep.subr.mxu1 %v8445_v53  ;;  %v7100_v36 = vadd.f32 %v3211_v15, %v3210_v63  ;;  %v7231_v15 = vld [vmem:[#allocation8 + $0xf8] sm:$0xff]  ;;  %v7247_v60 = vld [vmem:[#allocation8 + $0xc0] sm:$0xff]  ;;  %v7249_v63 = vld [vmem:[#allocation8 + $0xd0] sm:$0xff] }
 0x5b0   :  { %3520 = vmatpush1.msra.mxu0 %v6895_v29  ;;  %3591 = vmatpush1.msra.mxu1 %v6897_v23  ;;  %v8453_v29 = vld [vmem:[#allocation118_spill] sm:$0xff]  ;;  %v8454_v23 = vld [vmem:[#allocation119_spill] sm:$0xff]  ;;  %v7253_v45 = vld [vmem:[#allocation8 + $0xa8] sm:$0xff] }
 0x5b1   :  { %3521 = vmatprep.subr.mxu0 %v8446_v61  ;;  %3592 = vmatprep.subr.mxu1 %v8447_v1  ;;  %4907 = vtanh.f32 %v7100_v36  ;;  %v7255_v53 = vld [vmem:[#allocation8 + $0xb8] sm:$0xff]  ;;  %v7259_v61 = vld [vmem:[#allocation8 + $0xa0] sm:$0xff]  ;;  %v7261_v1 = vld [vmem:[#allocation8 + $0xb0] sm:$0xff] }
 0x5b2   :  { %3522 = vmatpush1.msra.mxu0 %v8448_v13  ;;  %3593 = vmatpush1.msra.mxu1 %v8449_v30  ;;  %8462 = vst [vmem:[#allocation127_spill] sm:$0xff] %v7261_v1  ;;  %v7265_v13 = vld [vmem:[#allocation8 + $0x88] sm:$0xff]  ;;  %v7267_v30 = vld [vmem:[#allocation8 + $0x98] sm:$0xff] }
 0x5b3   :  { %3523 = vmatprep.subr.mxu0 %v8450_v62  ;;  %3594 = vmatprep.subr.mxu1 %v8451_v25  ;;  %8463 = vst [vmem:[#allocation128_spill] sm:$0xff] %v7265_v13  ;;  %8464 = vst [vmem:[#allocation129_spill] sm:$0xff] %v7267_v30  ;;  %v7271_v62 = vld [vmem:[#allocation8 + $0x80] sm:$0xff]  ;;  %v7273_v25 = vld [vmem:[#allocation8 + $0x90] sm:$0xff] }
 0x5b4   :  { %3524 = vmatpush1.msra.mxu0 %v8452_v57  ;;  %3595 = vmatpush1.msra.mxu1 %v8453_v29  ;;  %8465 = vst [vmem:[#allocation130_spill] sm:$0xff] %v7271_v62  ;;  %8466 = vst [vmem:[#allocation131_spill] sm:$0xff] %v7273_v25  ;;  %v7277_v57 = vld [vmem:[#allocation8 + $0x68] sm:$0xff]  ;;  %v7279_v29 = vld [vmem:[#allocation8 + $0x78] sm:$0xff] }
 0x5b5   :  { %3525 = vmatprep.subr.mxu0 %v8454_v23  ;;  %3596 = vmatprep.subr.mxu1 %v8455_v5  ;;  %8467 = vst [vmem:[#allocation132_spill] sm:$0xff] %v7277_v57  ;;  %8468 = vst [vmem:[#allocation133_spill] sm:$0xff] %v7279_v29  ;;  %v7283_v23 = vld [vmem:[#allocation8 + $0x60] sm:$0xff]  ;;  %v7285_v5 = vld [vmem:[#allocation8 + $0x70] sm:$0xff] }
 0x5b6   :  { %3526 = vmatpush1.msra.mxu0 %v8456_v58  ;;  %3597 = vmatpush1.msra.mxu1 %v8457_v38  ;;  %8469 = vst [vmem:[#allocation134_spill] sm:$0xff] %v7283_v23  ;;  %8470 = vst [vmem:[#allocation21_spill] sm:$0xff] %v7285_v5  ;;  %v7289_v58 = vld [vmem:[#allocation8 + $0x48] sm:$0xff]  ;;  %v7291_v38 = vld [vmem:[#allocation8 + $0x58] sm:$0xff] }
 0x5b7   :  { %3527 = vmatprep.subr.mxu0 %v6941_v46  ;;  %3598 = vmatprep.subr.mxu1 %v8458_v49  ;;  %8471 = vst [vmem:[#allocation23_spill] sm:$0xff] %v7289_v58  ;;  %8472 = vst [vmem:[#allocation22_spill] sm:$0xff] %v7291_v38  ;;  %v7295_v49 = vld [vmem:[#allocation8 + $0x40] sm:$0xff] }
 0x5b8   :  { %3528 = vmatpush1.msra.mxu0 %v6947_v24  ;;  %3599 = vmatpush1.msra.mxu1 %v6949_v26  ;;  %v4906_v24 = vpop.eup %4905  ;;  %8473 = vst [vmem:[#allocation24_spill] sm:$0xff] %v7295_v49 }
 0x5b9   :  { %3529 = vmatprep.subr.mxu0 %v6953_v40  ;;  %3600 = vmatprep.subr.mxu1 %v8459_v0  ;;  %v7133_v40 = vld [vmem:[#allocation8 + $0x1e8] sm:$0xff]  ;;  %v7297_v0 = vld [vmem:[#allocation8 + $0x50] sm:$0xff] }
 0x5ba   :  { %3530 = vmatpush1.msra.mxu0 %v8460_v56  ;;  %3601 = vmatpush1.msra.mxu1 %v8461_v6  ;;  %8474 = vst [vmem:[#allocation108_spill] sm:$0xff] %v7297_v0  ;;  %v7301_v56 = vld [vmem:[#allocation8 + $0x28] sm:$0xff]  ;;  %v7303_v6 = vld [vmem:[#allocation8 + $0x38] sm:$0xff] }
 0x5bb   :  { %3531 = vmatprep.subr.mxu0 %v6965_v50  ;;  %3602 = vmatprep.subr.mxu1 %v6967_v55  ;;  %v7135_v50 = vld [vmem:[#allocation8 + $0x1f8] sm:$0xff]  ;;  %v7145_v55 = vld [vmem:[#allocation8 + $0x1c8] sm:$0xff]  ;;  %8475 = vst [vmem:[#allocation110_spill] sm:$0xff] %v7301_v56  ;;  %8476 = vst [vmem:[#allocation109_spill] sm:$0xff] %v7303_v6 }
 0x5bc   :  { %3532 = vmatpush1.msra.mxu0 %v6971_v32  ;;  %3565 = vmatprep.mubr.f32.mxu0 %v7991_v3  ;;  %v7139_v32 = vld [vmem:[#allocation8 + $0x1e0] sm:$0xff] }
 0x5bd   :  { %3603 = vmatpush1.msra.mxu1 %v6975_v22  ;;  %3636 = vmatprep.mubr.f32.mxu1 %v7991_v3  ;;  %v7141_v22 = vld [vmem:[#allocation8 + $0x1f0] sm:$0xff] }
 0x5be   :  { %v4908_v46 = vpop.eup %4907  ;;  %3765 = vmatprep.subr.mxu0 %v7133_v40  ;;  %3836 = vmatprep.subr.mxu1 %v7135_v50 }
 0x5bf   :  { %v3216_v26 = vmul.f32 %v4908_v46, %v4906_v24  ;;  %v7307_v24 = vld [vmem:[#allocation8 + $0x20] sm:$0xff]  ;;  %v7309_v46 = vld [vmem:[#allocation8 + $0x30] sm:$0xff] }
 0x5c0   :  { %8477 = vst [vmem:[#allocation111_spill] sm:$0xff] %v7307_v24  ;;  %8478 = vst [vmem:[#allocation31_spill] sm:$0xff] %v7309_v46 }
 0x5c1   :  { %3218 = vst [vmem:[#allocation12 + $0x38] sm:$0xff] %v3216_v26  ;;  %3566 = vmatmul.mubr.f32.vlgmr.msra.gmra.mxu0 %v3216_v26  ;;  %3637 = vmatmul.mubr.f32.vlgmr.msra.gmra.mxu1 %v3216_v26  ;;  %v7313_v26 = vld [vmem:[#allocation8 + $0x8] sm:$0xff] }
 0x5c2   :  { %3829 = vmatprep.mubr.f32.mxu0 %v7991_v3  ;;  %3900 = vmatprep.mubr.f32.mxu1 %v7991_v3  ;;  %8479 = vst [vmem:[#allocation32_spill] sm:$0xff] %v7313_v26 }
 0x5c3   :  { %3766 = vmatpush1.msra.mxu0 %v7139_v32  ;;  %3837 = vmatpush1.msra.mxu1 %v7141_v22 }
 0x5c4   :  { %3767 = vmatprep.subr.mxu0 %v7145_v55  ;;  %3838 = vmatprep.subr.mxu1 %v7147_v4 }
 0x5c5   :  { %3768 = vmatpush1.msra.mxu0 %v7151_v7  ;;  %3839 = vmatpush1.msra.mxu1 %v7153_v8 }
 0x5c6   :  { %3769 = vmatprep.subr.mxu0 %v7157_v9  ;;  %3840 = vmatprep.subr.mxu1 %v7159_v10 }
 0x5c7   :  { %3770 = vmatpush1.msra.mxu0 %v7163_v12  ;;  %3841 = vmatpush1.msra.mxu1 %v7165_v41 }
 0x5c8   :  { %3771 = vmatprep.subr.mxu0 %v7169_v18  ;;  %3842 = vmatprep.subr.mxu1 %v7171_v47 }
 0x5c9   :  { %3772 = vmatpush1.msra.mxu0 %v7175_v33  ;;  %3843 = vmatpush1.msra.mxu1 %v7177_v43 }
 0x5ca   :  { %3773 = vmatprep.subr.mxu0 %v7181_v21  ;;  %3844 = vmatprep.subr.mxu1 %v7183_v16 }
 0x5cb   :  { %3774 = vmatpush1.msra.mxu0 %v7187_v51  ;;  %3845 = vmatpush1.msra.mxu1 %v7189_v59 }
 0x5cc   :  { %3775 = vmatprep.subr.mxu0 %v7193_v11  ;;  %3846 = vmatprep.subr.mxu1 %v7195_v14 }
 0x5cd   :  { %3776 = vmatpush1.msra.mxu0 %v7199_v31  ;;  %3847 = vmatpush1.msra.mxu1 %v7201_v54 }
 0x5ce   :  { %3777 = vmatprep.subr.mxu0 %v7205_v28  ;;  %3848 = vmatprep.subr.mxu1 %v7207_v42 }
 0x5cf   :  { %3778 = vmatpush1.msra.mxu0 %v7211_v39  ;;  %3849 = vmatpush1.msra.mxu1 %v7213_v52 }
 0x5d0   :  { %3779 = vmatprep.subr.mxu0 %v7217_v48  ;;  %3850 = vmatprep.subr.mxu1 %v7219_v44 }
 0x5d1   :  { %3780 = vmatpush1.msra.mxu0 %v7223_v34  ;;  %3851 = vmatpush1.msra.mxu1 %v7225_v37 }
 0x5d2   :  { %3781 = vmatprep.subr.mxu0 %v7229_v17  ;;  %3852 = vmatprep.subr.mxu1 %v7231_v15 }
 0x5d3   :  { %3782 = vmatpush1.msra.mxu0 %v7235_v2  ;;  %3853 = vmatpush1.msra.mxu1 %v7237_v20 }
 0x5d4   :  { %3783 = vmatprep.subr.mxu0 %v7241_v19  ;;  %3854 = vmatprep.subr.mxu1 %v7243_v35 }
 0x5d5   :  { %3784 = vmatpush1.msra.mxu0 %v7247_v60  ;;  %3855 = vmatpush1.msra.mxu1 %v7249_v63 }
 0x5d6   :  { %3785 = vmatprep.subr.mxu0 %v7253_v45  ;;  %3856 = vmatprep.subr.mxu1 %v7255_v53 }
 0x5d7   :  { %3786 = vmatpush1.msra.mxu0 %v7259_v61  ;;  %3857 = vmatpush1.msra.mxu1 %v7261_v1 }
 0x5d8   :  { %3787 = vmatprep.subr.mxu0 %v7265_v13  ;;  %3858 = vmatprep.subr.mxu1 %v7267_v30  ;;  %v8488_v30 = vld [vmem:[#allocation83_spill] sm:$0xff] }
 0x5d9   :  { %3788 = vmatpush1.msra.mxu0 %v7271_v62  ;;  %3859 = vmatpush1.msra.mxu1 %v7273_v25 }
 0x5da   :  { %3789 = vmatprep.subr.mxu0 %v7277_v57  ;;  %3860 = vmatprep.subr.mxu1 %v7279_v29 }
 0x5db   :  { %3790 = vmatpush1.msra.mxu0 %v7283_v23  ;;  %3861 = vmatpush1.msra.mxu1 %v7285_v5  ;;  %v8486_v5 = vld [vmem:[#allocation82_spill] sm:$0xff] }
 0x5dc   :  { %3791 = vmatprep.subr.mxu0 %v7289_v58  ;;  %3862 = vmatprep.subr.mxu1 %v7291_v38 }
 0x5dd   :  { %3792 = vmatpush1.msra.mxu0 %v7295_v49  ;;  %3863 = vmatpush1.msra.mxu1 %v7297_v0  ;;  %v7315_v49 = vld [vmem:[#allocation8 + $0x18] sm:$0xff]  ;;  %v7319_v0 = vld [vmem:[#allocation8] sm:$0xff] }
 0x5de   :  { %3793 = vmatprep.subr.mxu0 %v7301_v56  ;;  %3864 = vmatprep.subr.mxu1 %v7303_v6  ;;  %8480 = vst [vmem:[#allocation33_spill] sm:$0xff] %v7315_v49  ;;  %8481 = vst [vmem:[#allocation34_spill] sm:$0xff] %v7319_v0  ;;  %v7321_v56 = vld [vmem:[#allocation8 + $0x10] sm:$0xff]  ;;  %v7325_v6 = vld [vmem:[#allocation9 + $0x1e8] sm:$0xff] }
 0x5df   :  { %3794 = vmatpush1.msra.mxu0 %v7307_v24  ;;  %3865 = vmatpush1.msra.mxu1 %v7309_v46  ;;  %8482 = vst [vmem:[#allocation35_spill] sm:$0xff] %v7321_v56  ;;  %8483 = vst [vmem:[#allocation36_spill] sm:$0xff] %v7325_v6  ;;  %v7327_v24 = vld [vmem:[#allocation9 + $0x1f8] sm:$0xff] }
 0x5e0   :  { %3795 = vmatprep.subr.mxu0 %v7313_v26  ;;  %3866 = vmatprep.subr.mxu1 %v7315_v49  ;;  %8484 = vst [vmem:[#allocation37_spill] sm:$0xff] %v7327_v24  ;;  %v8485_v26 = vld [vmem:[#allocation29_spill] sm:$0xff] }
 0x5e1   :  { %3796 = vmatpush1.msra.mxu0 %v7319_v0  ;;  %3867 = vmatpush1.msra.mxu1 %v7321_v56  ;;  %v8487_v56 = vld [vmem:[#allocation30_spill] sm:$0xff] }
 0x5e2   :  { %3979 = vmatprep.subr.mxu0 %v7325_v6  ;;  %4050 = vmatprep.subr.mxu1 %v7327_v24 }
 0x65d   :  { %v3353_v46 = vpop.f32.mrf.mxu0  ;;  %v3424_v0 = vpop.f32.mrf.mxu1 }
 0x65e   :  { %v3429_v38 = vadd.f32 %v3353_v46, %v8485_v26  ;;  %v3431_v57 = vadd.f32 %v3424_v0, %v8487_v56 }
 0x65f   :  { %v3355_v49 = vpop.f32.mrf.mxu0  ;;  %v3426_v25 = vpop.f32.mrf.mxu1 }
 0x660   :  { %v4716_v58 = vmul.f32 -1.442695, %v3429_v38  ;;  %v3430_v23 = vadd.f32 %v3355_v49, %v8486_v5  ;;  %v4718_v62 = vmul.f32 -1.442695, %v3431_v57  ;;  %v3432_v13 = vadd.f32 %v3426_v25, %v8488_v30  ;;  %v8489_v57 = vld [vmem:[#allocation100_spill] sm:$0xff] }
 0x662   :  { %4909 = vpow2.f32 %v4716_v58  ;;  %v4717_v29 = vmul.f32 -1.442695, %v3430_v23 }
 0x664   :  { %4911 = vpow2.f32 %v4717_v29 }
 0x665   :  { %4913 = vpow2.f32 %v4718_v62 }
 0x666   :  { %4915 = vtanh.f32 %v3432_v13  ;;  %v8490_v13 = vld [vmem:[#allocation102_spill] sm:$0xff] }
 0x66f   :  { %v4910_v6 = vpop.eup %4909 }
 0x670   :  { %v3656_v1 = vadd.f32 1.0, %v4910_v6 }
 0x671   :  { %v4912_v24 = vpop.eup %4911 }
 0x672   :  { %4917 = vrcp.f32 %v3656_v1  ;;  %v3657_v46 = vadd.f32 1.0, %v4912_v24  ;;  %v4914_v38 = vpop.eup %4913 }
 0x673   :  { %v4916_v5 = vpop.eup %4915  ;;  %v3658_v49 = vadd.f32 1.0, %v4914_v38 }
 0x674   :  { %4919 = vrcp.f32 %v3657_v46  ;;  %v8491_v46 = vld [vmem:[#allocation101_spill] sm:$0xff] }
 0x675   :  { %4921 = vrcp.f32 %v3658_v49  ;;  %v7343_v49 = vld [vmem:[#allocation9 + $0x1e0] sm:$0xff] }
 0x67f   :  { %v4918_v58 = vpop.eup %4917 }
 0x680   :  { %v3686_v23 = vmul.f32 %v4918_v58, %v4916_v5 }
 0x681   :  { %v4920_v29 = vpop.eup %4919  ;;  %v3567_v56 = vpop.f32.mrf.mxu0 }
 0x682   :  { %v3685_v0 = vmul.f32 %v4920_v29, %v7057_v27  ;;  %v3643_v26 = vadd.f32 %v3567_v56, %v8489_v57  ;;  %v3638_v24 = vpop.f32.mrf.mxu1  ;;  %v4922_v58 = vpop.eup %4921  ;;  %v8492_v29 = vld [vmem:[#allocation103_spill] sm:$0xff] }
 0x683   :  { %v3569_v25 = vpop.f32.mrf.mxu0  ;;  %v3645_v38 = vadd.f32 %v3638_v24, %v8491_v46  ;;  %v7353_v24 = vld [vmem:[#allocation9 + $0x1d0] sm:$0xff] }
 0x684   :  { %v7337_v30 = vadd.f32 %v3686_v23, %v3685_v0  ;;  %v4719_v62 = vmul.f32 -1.442695, %v3643_v26  ;;  %v3644_v1 = vadd.f32 %v3569_v25, %v8490_v13  ;;  %v3640_v5 = vpop.f32.mrf.mxu1  ;;  %v7345_v26 = vld [vmem:[#allocation9 + $0x1f0] sm:$0xff]  ;;  %v7349_v13 = vld [vmem:[#allocation9 + $0x1d8] sm:$0xff]  ;;  %8496 = vst [vmem:[#allocation41_spill] sm:$0xff] %v7353_v24 }
 0x685   :  { %v4721_v27 = vmul.f32 -1.442695, %v3645_v38  ;;  %v3646_v56 = vadd.f32 %v3640_v5, %v8492_v29  ;;  %8494 = vst [vmem:[#allocation39_spill] sm:$0xff] %v7349_v13  ;;  %v7357_v38 = vld [vmem:[#allocation9 + $0x1a8] sm:$0xff]  ;;  %v7359_v5 = vld [vmem:[#allocation9 + $0x1b8] sm:$0xff] }
 0x686   :  { %4923 = vtanh.f32 %v7337_v30  ;;  %v4720_v6 = vmul.f32 -1.442695, %v3644_v1  ;;  %8497 = vst [vmem:[#allocation42_spill] sm:$0xff] %v7357_v38  ;;  %8498 = vst [vmem:[#allocation43_spill] sm:$0xff] %v7359_v5  ;;  %v7369_v29 = vld [vmem:[#allocation9 + $0x188] sm:$0xff] }
 0x687   :  { %4925 = vpow2.f32 %v4719_v62  ;;  %v7347_v62 = vld [vmem:[#allocation9 + $0x1c8] sm:$0xff]  ;;  %8501 = vst [vmem:[#allocation46_spill] sm:$0xff] %v7369_v29 }
 0x688   :  { %4927 = vpow2.f32 %v4720_v6  ;;  %8493 = vst [vmem:[#allocation38_spill] sm:$0xff] %v7347_v62  ;;  %v7351_v6 = vld [vmem:[#allocation9 + $0x1c0] sm:$0xff] }
 0x689   :  { %4929 = vpow2.f32 %v4721_v27  ;;  %8495 = vst [vmem:[#allocation40_spill] sm:$0xff] %v7351_v6  ;;  %v7363_v27 = vld [vmem:[#allocation9 + $0x1a0] sm:$0xff] }
 0x68a   :  { %4931 = vtanh.f32 %v3646_v56  ;;  %8499 = vst [vmem:[#allocation44_spill] sm:$0xff] %v7363_v27  ;;  %v7371_v56 = vld [vmem:[#allocation9 + $0x198] sm:$0xff] }
 0x68b   :  { %8502 = vst [vmem:[#allocation47_spill] sm:$0xff] %v7371_v56 }
 0x693   :  { %v4924_v23 = vpop.eup %4923 }
 0x694   :  { %v4926_v0 = vpop.eup %4925  ;;  %v3692_v57 = vmul.f32 %v4924_v23, %v4922_v58  ;;  %v7365_v58 = vld [vmem:[#allocation9 + $0x1b0] sm:$0xff]  ;;  %v7375_v23 = vld [vmem:[#allocation9 + $0x180] sm:$0xff] }
 0x695   :  { %v3675_v25 = vadd.f32 1.0, %v4926_v0  ;;  %v4928_v1 = vpop.eup %4927  ;;  %8500 = vst [vmem:[#allocation45_spill] sm:$0xff] %v7365_v58  ;;  %8503 = vst [vmem:[#allocation48_spill] sm:$0xff] %v7375_v23  ;;  %v7377_v0 = vld [vmem:[#allocation9 + $0x190] sm:$0xff] }
 0x696   :  { %3695 = vst [vmem:[#allocation12 + $0x50] sm:$0xff] %v3692_v57  ;;  %3830 = vmatmul.mubr.f32.vlgmr.msra.gmra.mxu0 %v3692_v57  ;;  %3901 = vmatmul.mubr.f32.vlgmr.msra.gmra.mxu1 %v3692_v57  ;;  %v3676_v46 = vadd.f32 1.0, %v4928_v1  ;;  %8504 = vst [vmem:[#allocation49_spill] sm:$0xff] %v7377_v0  ;;  %v7381_v57 = vld [vmem:[#allocation9 + $0x168] sm:$0xff]  ;;  %v7387_v1 = vld [vmem:[#allocation9 + $0x160] sm:$0xff] }
 0x697   :  { %4933 = vrcp.f32 %v3675_v25  ;;  %3980 = vmatpush1.msra.mxu0 %v7343_v49  ;;  %4051 = vmatpush1.msra.mxu1 %v7345_v26  ;;  %8505 = vst [vmem:[#allocation50_spill] sm:$0xff] %v7381_v57  ;;  %v7383_v25 = vld [vmem:[#allocation9 + $0x178] sm:$0xff]  ;;  %8507 = vst [vmem:[#allocation52_spill] sm:$0xff] %v7387_v1 }
 0x698   :  { %3981 = vmatprep.subr.mxu0 %v7347_v62  ;;  %4052 = vmatprep.subr.mxu1 %v7349_v13  ;;  %4935 = vrcp.f32 %v3676_v46  ;;  %8506 = vst [vmem:[#allocation51_spill] sm:$0xff] %v7383_v25  ;;  %v7389_v46 = vld [vmem:[#allocation9 + $0x170] sm:$0xff] }
 0x699   :  { %3982 = vmatpush1.msra.mxu0 %v7351_v6  ;;  %4053 = vmatpush1.msra.mxu1 %v7353_v24  ;;  %8508 = vst [vmem:[#allocation53_spill] sm:$0xff] %v7389_v46 }
 0x69a   :  { %3983 = vmatprep.subr.mxu0 %v7357_v38  ;;  %4054 = vmatprep.subr.mxu1 %v7359_v5  ;;  %v7393_v5 = vld [vmem:[#allocation9 + $0x148] sm:$0xff] }
 0x69b   :  { %3984 = vmatpush1.msra.mxu0 %v7363_v27  ;;  %4055 = vmatpush1.msra.mxu1 %v7365_v58  ;;  %8509 = vst [vmem:[#allocation25_spill] sm:$0xff] %v7393_v5  ;;  %v7395_v27 = vld [vmem:[#allocation9 + $0x158] sm:$0xff]  ;;  %v7399_v58 = vld [vmem:[#allocation9 + $0x140] sm:$0xff] }
 0x69c   :  { %3985 = vmatprep.subr.mxu0 %v7369_v29  ;;  %4056 = vmatprep.subr.mxu1 %v7371_v56  ;;  %8510 = vst [vmem:[#allocation27_spill] sm:$0xff] %v7395_v27  ;;  %8511 = vst [vmem:[#allocation26_spill] sm:$0xff] %v7399_v58  ;;  %v7401_v29 = vld [vmem:[#allocation9 + $0x150] sm:$0xff]  ;;  %v7405_v56 = vld [vmem:[#allocation9 + $0x128] sm:$0xff] }
 0x69d   :  { %3986 = vmatpush1.msra.mxu0 %v7375_v23  ;;  %4057 = vmatpush1.msra.mxu1 %v7377_v0  ;;  %8512 = vst [vmem:[#allocation28_spill] sm:$0xff] %v7401_v29  ;;  %8513 = vst [vmem:[#allocation104_spill] sm:$0xff] %v7405_v56  ;;  %v7407_v23 = vld [vmem:[#allocation9 + $0x138] sm:$0xff]  ;;  %v7411_v0 = vld [vmem:[#allocation9 + $0x120] sm:$0xff] }
 0x69e   :  { %3987 = vmatprep.subr.mxu0 %v7381_v57  ;;  %4058 = vmatprep.subr.mxu1 %v7383_v25  ;;  %8514 = vst [vmem:[#allocation106_spill] sm:$0xff] %v7407_v23  ;;  %8515 = vst [vmem:[#allocation105_spill] sm:$0xff] %v7411_v0  ;;  %v7413_v57 = vld [vmem:[#allocation9 + $0x130] sm:$0xff]  ;;  %v7417_v25 = vld [vmem:[#allocation9 + $0x108] sm:$0xff] }
 0x69f   :  { %3988 = vmatpush1.msra.mxu0 %v7387_v1  ;;  %4059 = vmatpush1.msra.mxu1 %v7389_v46  ;;  %8516 = vst [vmem:[#allocation107_spill] sm:$0xff] %v7413_v57  ;;  %8517 = vst [vmem:[#allocation54_spill] sm:$0xff] %v7417_v25  ;;  %v7419_v1 = vld [vmem:[#allocation9 + $0x118] sm:$0xff]  ;;  %v4930_v46 = vpop.eup %4929 }
 0x6a0   :  { %3989 = vmatprep.subr.mxu0 %v7393_v5  ;;  %4060 = vmatprep.subr.mxu1 %v7395_v27  ;;  %8518 = vst [vmem:[#allocation55_spill] sm:$0xff] %v7419_v1  ;;  %v7423_v5 = vld [vmem:[#allocation9 + $0x100] sm:$0xff]  ;;  %v7425_v27 = vld [vmem:[#allocation9 + $0x110] sm:$0xff]  ;;  %v4932_v38 = vpop.eup %4931  ;;  %v3677_v62 = vadd.f32 1.0, %v4930_v46 }
 0x6a1   :  { %3990 = vmatpush1.msra.mxu0 %v7399_v58  ;;  %4061 = vmatpush1.msra.mxu1 %v7401_v29  ;;  %8519 = vst [vmem:[#allocation56_spill] sm:$0xff] %v7425_v27  ;;  %v7429_v58 = vld [vmem:[#allocation9 + $0xe8] sm:$0xff]  ;;  %v7431_v29 = vld [vmem:[#allocation9 + $0xf8] sm:$0xff]  ;;  %v7460_v46 = vld [vmem:[#allocation9 + $0xa0] sm:$0xff] }
 0x6a2   :  { %3991 = vmatprep.subr.mxu0 %v7405_v56  ;;  %4062 = vmatprep.subr.mxu1 %v7407_v23  ;;  %8520 = vst [vmem:[#allocation57_spill] sm:$0xff] %v7429_v58  ;;  %8521 = vst [vmem:[#allocation17_spill] sm:$0xff] %v7431_v29  ;;  %v7435_v56 = vld [vmem:[#allocation9 + $0xe0] sm:$0xff]  ;;  %v7437_v23 = vld [vmem:[#allocation9 + $0xf0] sm:$0xff]  ;;  %4937 = vrcp.f32 %v3677_v62 }
 0x6a3   :  { %3992 = vmatpush1.msra.mxu0 %v7411_v0  ;;  %4063 = vmatpush1.msra.mxu1 %v7413_v57  ;;  %v7441_v0 = vld [vmem:[#allocation9 + $0xc8] sm:$0xff]  ;;  %v7443_v57 = vld [vmem:[#allocation9 + $0xd8] sm:$0xff]  ;;  %8526 = vst [vmem:[#allocation114_spill] sm:$0xff] %v7460_v46  ;;  %v7487_v62 = vld [vmem:[#allocation9 + $0x60] sm:$0xff] }
 0x6a4   :  { %v4934_v24 = vpop.eup %4933  ;;  %3993 = vmatprep.subr.mxu0 %v7417_v25  ;;  %4064 = vmatprep.subr.mxu1 %v7419_v1  ;;  %8522 = vst [vmem:[#allocation19_spill] sm:$0xff] %v7441_v0  ;;  %8523 = vst [vmem:[#allocation18_spill] sm:$0xff] %v7443_v57  ;;  %v7447_v1 = vld [vmem:[#allocation9 + $0xc0] sm:$0xff]  ;;  %v7449_v25 = vld [vmem:[#allocation9 + $0xd0] sm:$0xff] }
 0x6a5   :  { %v3689_v6 = vmul.f32 %v4934_v24, %v4932_v38  ;;  %3994 = vmatpush1.msra.mxu0 %v7423_v5  ;;  %4065 = vmatpush1.msra.mxu1 %v7425_v27  ;;  %v4936_v13 = vpop.eup %4935  ;;  %v7454_v38 = vld [vmem:[#allocation9 + $0xa8] sm:$0xff]  ;;  %v7456_v27 = vld [vmem:[#allocation9 + $0xb8] sm:$0xff]  ;;  %8534 = vst [vmem:[#allocation63_spill] sm:$0xff] %v7487_v62 }
 0x6a6   :  { %3995 = vmatprep.subr.mxu0 %v7429_v58  ;;  %4066 = vmatprep.subr.mxu1 %v7431_v29  ;;  %v3688_v24 = vmul.f32 %v4936_v13, %v7100_v36  ;;  %8524 = vst [vmem:[#allocation20_spill] sm:$0xff] %v7454_v38  ;;  %8525 = vst [vmem:[#allocation112_spill] sm:$0xff] %v7456_v27  ;;  %v7462_v29 = vld [vmem:[#allocation9 + $0xb0] sm:$0xff]  ;;  %v7468_v36 = vld [vmem:[#allocation9 + $0x88] sm:$0xff] }
 0x6a7   :  { %3996 = vmatpush1.msra.mxu0 %v7435_v56  ;;  %4067 = vmatpush1.msra.mxu1 %v7437_v23  ;;  %8527 = vst [vmem:[#allocation113_spill] sm:$0xff] %v7462_v29  ;;  %8528 = vst [vmem:[#allocation115_spill] sm:$0xff] %v7468_v36  ;;  %v7470_v13 = vld [vmem:[#allocation9 + $0x98] sm:$0xff] }
 0x6a8   :  { %3997 = vmatprep.subr.mxu0 %v7441_v0  ;;  %4068 = vmatprep.subr.mxu1 %v7443_v57  ;;  %v7464_v58 = vadd.f32 %v3689_v6, %v3688_v24  ;;  %8529 = vst [vmem:[#allocation58_spill] sm:$0xff] %v7470_v13  ;;  %v7474_v57 = vld [vmem:[#allocation9 + $0x80] sm:$0xff]  ;;  %v7476_v0 = vld [vmem:[#allocation9 + $0x90] sm:$0xff]  ;;  %v7481_v6 = vld [vmem:[#allocation9 + $0x68] sm:$0xff] }
 0x6a9   :  { %3998 = vmatpush1.msra.mxu0 %v7447_v1  ;;  %4069 = vmatpush1.msra.mxu1 %v7449_v25  ;;  %8530 = vst [vmem:[#allocation59_spill] sm:$0xff] %v7474_v57  ;;  %8531 = vst [vmem:[#allocation60_spill] sm:$0xff] %v7476_v0  ;;  %v7483_v24 = vld [vmem:[#allocation9 + $0x78] sm:$0xff] }
 0x6aa   :  { %3999 = vmatprep.subr.mxu0 %v7454_v38  ;;  %4070 = vmatprep.subr.mxu1 %v7456_v27  ;;  %4939 = vtanh.f32 %v7464_v58  ;;  %8532 = vst [vmem:[#allocation61_spill] sm:$0xff] %v7481_v6  ;;  %8533 = vst [vmem:[#allocation62_spill] sm:$0xff] %v7483_v24  ;;  %v7489_v27 = vld [vmem:[#allocation9 + $0x70] sm:$0xff]  ;;  %v7493_v38 = vld [vmem:[#allocation9 + $0x48] sm:$0xff] }
 0x6ab   :  { %4000 = vmatpush1.msra.mxu0 %v7460_v46  ;;  %4071 = vmatpush1.msra.mxu1 %v7462_v29  ;;  %8535 = vst [vmem:[#allocation64_spill] sm:$0xff] %v7489_v27  ;;  %v7495_v46 = vld [vmem:[#allocation9 + $0x58] sm:$0xff]  ;;  %v7499_v29 = vld [vmem:[#allocation9 + $0x40] sm:$0xff] }
 0x6ac   :  { %4001 = vmatprep.subr.mxu0 %v7468_v36  ;;  %4072 = vmatprep.subr.mxu1 %v7470_v13  ;;  %8536 = vst [vmem:[#allocation65_spill] sm:$0xff] %v7495_v46  ;;  %v7501_v36 = vld [vmem:[#allocation9 + $0x50] sm:$0xff]  ;;  %v7505_v13 = vld [vmem:[#allocation9 + $0x28] sm:$0xff] }
 0x6ad   :  { %4002 = vmatpush1.msra.mxu0 %v7474_v57  ;;  %4073 = vmatpush1.msra.mxu1 %v7476_v0  ;;  %v7507_v57 = vld [vmem:[#allocation9 + $0x38] sm:$0xff]  ;;  %v7511_v0 = vld [vmem:[#allocation9 + $0x20] sm:$0xff] }
 0x6ae   :  { %4003 = vmatprep.subr.mxu0 %v7481_v6  ;;  %4074 = vmatprep.subr.mxu1 %v7483_v24  ;;  %8537 = vst [vmem:[#allocation66_spill] sm:$0xff] %v7507_v57  ;;  %8538 = vst [vmem:[#allocation67_spill] sm:$0xff] %v7511_v0  ;;  %v7513_v6 = vld [vmem:[#allocation9 + $0x30] sm:$0xff]  ;;  %v7517_v24 = vld [vmem:[#allocation9 + $0x8] sm:$0xff] }
 0x6af   :  { %4004 = vmatpush1.msra.mxu0 %v7487_v62  ;;  %4075 = vmatpush1.msra.mxu1 %v7489_v27  ;;  %8539 = vst [vmem:[#allocation68_spill] sm:$0xff] %v7513_v6  ;;  %v7519_v62 = vld [vmem:[#allocation9 + $0x18] sm:$0xff]  ;;  %v7523_v27 = vld [vmem:[#allocation9] sm:$0xff] }
 0x6b0   :  { %4005 = vmatprep.subr.mxu0 %v7493_v38  ;;  %4076 = vmatprep.subr.mxu1 %v7495_v46  ;;  %v7527_v46 = vld [vmem:[#allocation9 + $0x10] sm:$0xff] }
 0x6b1   :  { %4006 = vmatpush1.msra.mxu0 %v7499_v29  ;;  %4077 = vmatpush1.msra.mxu1 %v7501_v36 }
 0x6b2   :  { %4007 = vmatprep.subr.mxu0 %v7505_v13  ;;  %4078 = vmatprep.subr.mxu1 %v7507_v57  ;;  %v4938_v57 = vpop.eup %4937 }
 0x6b3   :  { %4008 = vmatpush1.msra.mxu0 %v7511_v0  ;;  %4079 = vmatpush1.msra.mxu1 %v7513_v6 }
 0x6b4   :  { %4009 = vmatprep.subr.mxu0 %v7517_v24  ;;  %4080 = vmatprep.subr.mxu1 %v7519_v62 }
 0x6b5   :  { %4010 = vmatpush1.msra.mxu0 %v7523_v27  ;;  %4043 = vmatprep.mubr.f32.mxu0 %v7991_v3 }
 0x6b6   :  { %4081 = vmatpush1.msra.mxu1 %v7527_v46  ;;  %4114 = vmatprep.mubr.f32.mxu1 %v7991_v3 }
 0x6b7   :  { %4243 = vmatprep.subr.mxu0 %v7133_v40  ;;  %4314 = vmatprep.subr.mxu1 %v7135_v50  ;;  %v4940_v6 = vpop.eup %4939  ;;  %v8540_v40 = vld [vmem:[#allocation127_spill] sm:$0xff]  ;;  %v8541_v50 = vld [vmem:[#allocation128_spill] sm:$0xff] }
 0x6b8   :  { %v3694_v0 = vmul.f32 %v4940_v6, %v4938_v57 }
 0x6ba   :  { %3696 = vst [vmem:[#allocation12 + $0x28] sm:$0xff] %v3694_v0  ;;  %4044 = vmatmul.mubr.f32.vlgmr.msra.gmra.mxu0 %v3694_v0  ;;  %4115 = vmatmul.mubr.f32.vlgmr.msra.gmra.mxu1 %v3694_v0 }
 0x6bb   :  { %4244 = vmatpush1.msra.mxu0 %v7139_v32  ;;  %4315 = vmatpush1.msra.mxu1 %v7141_v22  ;;  %v8542_v32 = vld [vmem:[#allocation129_spill] sm:$0xff]  ;;  %v8543_v22 = vld [vmem:[#allocation130_spill] sm:$0xff] }
 0x6bc   :  { %4245 = vmatprep.subr.mxu0 %v7145_v55  ;;  %4316 = vmatprep.subr.mxu1 %v7147_v4  ;;  %v8544_v55 = vld [vmem:[#allocation131_spill] sm:$0xff]  ;;  %v8545_v4 = vld [vmem:[#allocation132_spill] sm:$0xff] }
 0x6bd   :  { %4246 = vmatpush1.msra.mxu0 %v7151_v7  ;;  %4317 = vmatpush1.msra.mxu1 %v7153_v8  ;;  %v8546_v7 = vld [vmem:[#allocation133_spill] sm:$0xff]  ;;  %v8547_v8 = vld [vmem:[#allocation134_spill] sm:$0xff] }
 0x6be   :  { %4247 = vmatprep.subr.mxu0 %v7157_v9  ;;  %4318 = vmatprep.subr.mxu1 %v7159_v10  ;;  %v8548_v9 = vld [vmem:[#allocation21_spill] sm:$0xff]  ;;  %v8549_v10 = vld [vmem:[#allocation23_spill] sm:$0xff] }
 0x6bf   :  { %4248 = vmatpush1.msra.mxu0 %v7163_v12  ;;  %4319 = vmatpush1.msra.mxu1 %v7165_v41  ;;  %v8550_v12 = vld [vmem:[#allocation22_spill] sm:$0xff]  ;;  %v8551_v41 = vld [vmem:[#allocation24_spill] sm:$0xff] }
 0x6c0   :  { %4249 = vmatprep.subr.mxu0 %v7169_v18  ;;  %4320 = vmatprep.subr.mxu1 %v7171_v47  ;;  %v8552_v18 = vld [vmem:[#allocation108_spill] sm:$0xff]  ;;  %v8553_v47 = vld [vmem:[#allocation110_spill] sm:$0xff] }
 0x6c1   :  { %4250 = vmatpush1.msra.mxu0 %v7175_v33  ;;  %4321 = vmatpush1.msra.mxu1 %v7177_v43  ;;  %v8554_v33 = vld [vmem:[#allocation109_spill] sm:$0xff]  ;;  %v8555_v43 = vld [vmem:[#allocation111_spill] sm:$0xff] }
 0x6c2   :  { %4251 = vmatprep.subr.mxu0 %v7181_v21  ;;  %4322 = vmatprep.subr.mxu1 %v7183_v16  ;;  %v8556_v21 = vld [vmem:[#allocation31_spill] sm:$0xff]  ;;  %v8557_v16 = vld [vmem:[#allocation32_spill] sm:$0xff] }
 0x6c3   :  { %4252 = vmatpush1.msra.mxu0 %v7187_v51  ;;  %4323 = vmatpush1.msra.mxu1 %v7189_v59  ;;  %v8558_v51 = vld [vmem:[#allocation33_spill] sm:$0xff]  ;;  %v8559_v59 = vld [vmem:[#allocation34_spill] sm:$0xff] }
 0x6c4   :  { %4253 = vmatprep.subr.mxu0 %v7193_v11  ;;  %4324 = vmatprep.subr.mxu1 %v7195_v14  ;;  %v8560_v11 = vld [vmem:[#allocation35_spill] sm:$0xff]  ;;  %v8561_v14 = vld [vmem:[#allocation36_spill] sm:$0xff] }
 0x6c5   :  { %4254 = vmatpush1.msra.mxu0 %v7199_v31  ;;  %4325 = vmatpush1.msra.mxu1 %v7201_v54  ;;  %v8562_v31 = vld [vmem:[#allocation37_spill] sm:$0xff] }
 0x6c6   :  { %4255 = vmatprep.subr.mxu0 %v7205_v28  ;;  %4326 = vmatprep.subr.mxu1 %v7207_v42  ;;  %v8563_v28 = vld [vmem:[#allocation84_spill] sm:$0xff] }
 0x6c7   :  { %4256 = vmatpush1.msra.mxu0 %v7211_v39  ;;  %4327 = vmatpush1.msra.mxu1 %v7213_v52 }
 0x6c8   :  { %4257 = vmatprep.subr.mxu0 %v7217_v48  ;;  %4328 = vmatprep.subr.mxu1 %v7219_v44  ;;  %v8564_v48 = vld [vmem:[#allocation86_spill] sm:$0xff] }
 0x6c9   :  { %4258 = vmatpush1.msra.mxu0 %v7223_v34  ;;  %4329 = vmatpush1.msra.mxu1 %v7225_v37 }
 0x6ca   :  { %4259 = vmatprep.subr.mxu0 %v7229_v17  ;;  %4330 = vmatprep.subr.mxu1 %v7231_v15  ;;  %v8565_v17 = vld [vmem:[#allocation85_spill] sm:$0xff] }
 0x6cb   :  { %4260 = vmatpush1.msra.mxu0 %v7235_v2  ;;  %4331 = vmatpush1.msra.mxu1 %v7237_v20 }
 0x6cc   :  { %4261 = vmatprep.subr.mxu0 %v7241_v19  ;;  %4332 = vmatprep.subr.mxu1 %v7243_v35  ;;  %v8566_v19 = vld [vmem:[#allocation87_spill] sm:$0xff] }
 0x6cd   :  { %4262 = vmatpush1.msra.mxu0 %v7247_v60  ;;  %4333 = vmatpush1.msra.mxu1 %v7249_v63 }
 0x6ce   :  { %4263 = vmatprep.subr.mxu0 %v7253_v45  ;;  %4334 = vmatprep.subr.mxu1 %v7255_v53 }
 0x6cf   :  { %4264 = vmatpush1.msra.mxu0 %v7259_v61  ;;  %4335 = vmatpush1.msra.mxu1 %v8540_v40 }
 0x6d0   :  { %4265 = vmatprep.subr.mxu0 %v8541_v50  ;;  %4336 = vmatprep.subr.mxu1 %v8542_v32 }
 0x6d1   :  { %4266 = vmatpush1.msra.mxu0 %v8543_v22  ;;  %4337 = vmatpush1.msra.mxu1 %v8544_v55  ;;  %v8567_v55 = vld [vmem:[#allocation96_spill] sm:$0xff] }
 0x6d2   :  { %4267 = vmatprep.subr.mxu0 %v8545_v4  ;;  %4338 = vmatprep.subr.mxu1 %v8546_v7 }
 0x6d3   :  { %4268 = vmatpush1.msra.mxu0 %v8547_v8  ;;  %4339 = vmatpush1.msra.mxu1 %v8548_v9 }
 0x6d4   :  { %4269 = vmatprep.subr.mxu0 %v8549_v10  ;;  %4340 = vmatprep.subr.mxu1 %v8550_v12  ;;  %v8568_v10 = vld [vmem:[#allocation98_spill] sm:$0xff] }
 0x6d5   :  { %4270 = vmatpush1.msra.mxu0 %v8551_v41  ;;  %4341 = vmatpush1.msra.mxu1 %v8552_v18 }
 0x6d6   :  { %4271 = vmatprep.subr.mxu0 %v8553_v47  ;;  %4342 = vmatprep.subr.mxu1 %v8554_v33  ;;  %v8569_v47 = vld [vmem:[#allocation97_spill] sm:$0xff] }
 0x6d7   :  { %4272 = vmatpush1.msra.mxu0 %v8555_v43  ;;  %4343 = vmatpush1.msra.mxu1 %v8556_v21 }
 0x6d8   :  { %4273 = vmatprep.subr.mxu0 %v8557_v16  ;;  %4344 = vmatprep.subr.mxu1 %v8558_v51  ;;  %v8570_v16 = vld [vmem:[#allocation99_spill] sm:$0xff] }
 0x6d9   :  { %4274 = vmatpush1.msra.mxu0 %v8559_v59  ;;  %4307 = vmatprep.mubr.f32.mxu0 %v7991_v3 }
 0x6da   :  { %4345 = vmatpush1.msra.mxu1 %v8560_v11  ;;  %4378 = vmatprep.mubr.f32.mxu1 %v7991_v3 }
 0x6db   :  { %4457 = vmatprep.subr.mxu0 %v8561_v14  ;;  %4528 = vmatprep.subr.mxu1 %v8562_v31 }
 0x756   :  { %v3831_v54 = vpop.f32.mrf.mxu0  ;;  %v3902_v37 = vpop.f32.mrf.mxu1 }
 0x757   :  { %v3907_v42 = vadd.f32 %v3831_v54, %v8563_v28  ;;  %v3909_v15 = vadd.f32 %v3902_v37, %v8565_v17  ;;  %v8577_v37 = vld [vmem:[#allocation44_spill] sm:$0xff]  ;;  %v8578_v17 = vld [vmem:[#allocation45_spill] sm:$0xff] }
 0x758   :  { %v3833_v39 = vpop.f32.mrf.mxu0  ;;  %v3904_v2 = vpop.f32.mrf.mxu1 }
 0x759   :  { %v4722_v52 = vmul.f32 -1.442695, %v3907_v42  ;;  %v3908_v44 = vadd.f32 %v3833_v39, %v8564_v48  ;;  %v4724_v20 = vmul.f32 -1.442695, %v3909_v15  ;;  %v3910_v35 = vadd.f32 %v3904_v2, %v8566_v19  ;;  %v8571_v42 = vld [vmem:[#allocation38_spill] sm:$0xff]  ;;  %v8572_v39 = vld [vmem:[#allocation39_spill] sm:$0xff] }
 0x75a   :  { %v8574_v48 = vld [vmem:[#allocation41_spill] sm:$0xff]  ;;  %v8581_v15 = vld [vmem:[#allocation48_spill] sm:$0xff]  ;;  %v8584_v19 = vld [vmem:[#allocation51_spill] sm:$0xff] }
 0x75b   :  { %4941 = vpow2.f32 %v4722_v52  ;;  %v4723_v34 = vmul.f32 -1.442695, %v3908_v44  ;;  %v8573_v52 = vld [vmem:[#allocation40_spill] sm:$0xff]  ;;  %v8575_v44 = vld [vmem:[#allocation42_spill] sm:$0xff]  ;;  %v8582_v2 = vld [vmem:[#allocation49_spill] sm:$0xff] }
 0x75d   :  { %4943 = vpow2.f32 %v4723_v34  ;;  %v8576_v34 = vld [vmem:[#allocation43_spill] sm:$0xff] }
 0x75e   :  { %4945 = vpow2.f32 %v4724_v20  ;;  %v8583_v20 = vld [vmem:[#allocation50_spill] sm:$0xff] }
 0x75f   :  { %4947 = vtanh.f32 %v3910_v35  ;;  %v8585_v35 = vld [vmem:[#allocation52_spill] sm:$0xff] }
 0x768   :  { %v4942_v60 = vpop.eup %4941 }
 0x769   :  { %v4134_v63 = vadd.f32 1.0, %v4942_v60  ;;  %v8586_v60 = vld [vmem:[#allocation53_spill] sm:$0xff] }
 0x76a   :  { %v4944_v45 = vpop.eup %4943 }
 0x76b   :  { %4949 = vrcp.f32 %v4134_v63  ;;  %v4135_v53 = vadd.f32 1.0, %v4944_v45  ;;  %v4946_v61 = vpop.eup %4945  ;;  %v8587_v63 = vld [vmem:[#allocation25_spill] sm:$0xff]  ;;  %v8588_v45 = vld [vmem:[#allocation27_spill] sm:$0xff] }
 0x76c   :  { %v4948_v0 = vpop.eup %4947  ;;  %v4136_v50 = vadd.f32 1.0, %v4946_v61  ;;  %v8590_v61 = vld [vmem:[#allocation28_spill] sm:$0xff] }
 0x76d   :  { %4951 = vrcp.f32 %v4135_v53  ;;  %v8589_v53 = vld [vmem:[#allocation26_spill] sm:$0xff] }
 0x76e   :  { %4953 = vrcp.f32 %v4136_v50  ;;  %v8593_v50 = vld [vmem:[#allocation105_spill] sm:$0xff] }
 0x778   :  { %v4950_v57 = vpop.eup %4949 }
 0x779   :  { %v4164_v6 = vmul.f32 %v4950_v57, %v4948_v0  ;;  %v8591_v57 = vld [vmem:[#allocation104_spill] sm:$0xff] }
 0x77a   :  { %v4952_v40 = vpop.eup %4951  ;;  %v4045_v22 = vpop.f32.mrf.mxu0 }
 0x77b   :  { %v4163_v32 = vmul.f32 %v4952_v40, %v7337_v30  ;;  %v4121_v4 = vadd.f32 %v4045_v22, %v8567_v55  ;;  %v4116_v18 = vpop.f32.mrf.mxu1  ;;  %v4954_v21 = vpop.eup %4953  ;;  %v8595_v55 = vld [vmem:[#allocation54_spill] sm:$0xff] }
 0x77c   :  { %v4047_v8 = vpop.f32.mrf.mxu0  ;;  %v4123_v33 = vadd.f32 %v4116_v18, %v8569_v47  ;;  %v8599_v18 = vld [vmem:[#allocation17_spill] sm:$0xff] }
 0x77d   :  { %v7609_v7 = vadd.f32 %v4164_v6, %v4163_v32  ;;  %v4725_v9 = vmul.f32 -1.442695, %v4121_v4  ;;  %v4122_v12 = vadd.f32 %v4047_v8, %v8568_v10  ;;  %v4118_v43 = vpop.f32.mrf.mxu1  ;;  %v8592_v6 = vld [vmem:[#allocation106_spill] sm:$0xff]  ;;  %v8594_v32 = vld [vmem:[#allocation107_spill] sm:$0xff] }
 0x77e   :  { %v4727_v30 = vmul.f32 -1.442695, %v4123_v33  ;;  %v4124_v51 = vadd.f32 %v4118_v43, %v8570_v16  ;;  %v8596_v4 = vld [vmem:[#allocation55_spill] sm:$0xff]  ;;  %v8601_v43 = vld [vmem:[#allocation18_spill] sm:$0xff] }
 0x77f   :  { %4955 = vtanh.f32 %v7609_v7  ;;  %v4726_v41 = vmul.f32 -1.442695, %v4122_v12  ;;  %v8600_v33 = vld [vmem:[#allocation19_spill] sm:$0xff]  ;;  %v8607_v16 = vld [vmem:[#allocation58_spill] sm:$0xff] }
 0x780   :  { %4957 = vpow2.f32 %v4725_v9  ;;  %v8597_v9 = vld [vmem:[#allocation56_spill] sm:$0xff] }
 0x781   :  { %4959 = vpow2.f32 %v4726_v41  ;;  %v8598_v41 = vld [vmem:[#allocation57_spill] sm:$0xff] }
 0x782   :  { %4961 = vpow2.f32 %v4727_v30 }
 0x783   :  { %4963 = vtanh.f32 %v4124_v51  ;;  %v8608_v51 = vld [vmem:[#allocation59_spill] sm:$0xff] }
 0x78c   :  { %v4956_v59 = vpop.eup %4955 }
 0x78d   :  { %v4958_v11 = vpop.eup %4957  ;;  %v4170_v14 = vmul.f32 %v4956_v59, %v4954_v21  ;;  %v8603_v21 = vld [vmem:[#allocation112_spill] sm:$0xff]  ;;  %v8611_v59 = vld [vmem:[#allocation62_spill] sm:$0xff] }
 0x78e   :  { %v4153_v31 = vadd.f32 1.0, %v4958_v11  ;;  %v4960_v54 = vpop.eup %4959  ;;  %v8612_v11 = vld [vmem:[#allocation63_spill] sm:$0xff] }
 0x78f   :  { %4173 = vst [vmem:[#allocation12 + $0x60] sm:$0xff] %v4170_v14  ;;  %4308 = vmatmul.mubr.f32.vlgmr.msra.gmra.mxu0 %v4170_v14  ;;  %4379 = vmatmul.mubr.f32.vlgmr.msra.gmra.mxu1 %v4170_v14  ;;  %v4154_v28 = vadd.f32 1.0, %v4960_v54  ;;  %v4962_v0 = vpop.eup %4961  ;;  %v8613_v14 = vld [vmem:[#allocation64_spill] sm:$0xff]  ;;  %v8615_v54 = vld [vmem:[#allocation66_spill] sm:$0xff] }
 0x790   :  { %4965 = vrcp.f32 %v4153_v31  ;;  %4458 = vmatpush1.msra.mxu0 %v7343_v49  ;;  %4529 = vmatpush1.msra.mxu1 %v7345_v26  ;;  %v8579_v49 = vld [vmem:[#allocation46_spill] sm:$0xff]  ;;  %v8580_v26 = vld [vmem:[#allocation47_spill] sm:$0xff]  ;;  %v4964_v40 = vpop.eup %4963  ;;  %v4155_v12 = vadd.f32 1.0, %v4962_v0  ;;  %v8614_v31 = vld [vmem:[#allocation65_spill] sm:$0xff] }
 0x791   :  { %4459 = vmatprep.subr.mxu0 %v8571_v42  ;;  %4530 = vmatprep.subr.mxu1 %v8572_v39  ;;  %4967 = vrcp.f32 %v4154_v28  ;;  %v8616_v28 = vld [vmem:[#allocation67_spill] sm:$0xff]  ;;  %v8617_v42 = vld [vmem:[#allocation68_spill] sm:$0xff] }
 0x792   :  { %4460 = vmatpush1.msra.mxu0 %v8573_v52  ;;  %4531 = vmatpush1.msra.mxu1 %v8574_v48  ;;  %4969 = vrcp.f32 %v4155_v12  ;;  %v8618_v39 = vld [vmem:[#allocation88_spill] sm:$0xff] }
 0x793   :  { %4461 = vmatprep.subr.mxu0 %v8575_v44  ;;  %4532 = vmatprep.subr.mxu1 %v8576_v34 }
 0x794   :  { %4462 = vmatpush1.msra.mxu0 %v8577_v37  ;;  %4533 = vmatpush1.msra.mxu1 %v8578_v17 }
 0x795   :  { %4463 = vmatprep.subr.mxu0 %v8579_v49  ;;  %4534 = vmatprep.subr.mxu1 %v8580_v26  ;;  %v8621_v49 = vld [vmem:[#allocation91_spill] sm:$0xff] }
 0x796   :  { %4464 = vmatpush1.msra.mxu0 %v8581_v15  ;;  %4535 = vmatpush1.msra.mxu1 %v8582_v2 }
 0x797   :  { %4465 = vmatprep.subr.mxu0 %v8583_v20  ;;  %4536 = vmatprep.subr.mxu1 %v8584_v19 }
 0x798   :  { %4466 = vmatpush1.msra.mxu0 %v8585_v35  ;;  %4537 = vmatpush1.msra.mxu1 %v8586_v60 }
 0x799   :  { %4467 = vmatprep.subr.mxu0 %v8587_v63  ;;  %4538 = vmatprep.subr.mxu1 %v8588_v45 }
 0x79a   :  { %4468 = vmatpush1.msra.mxu0 %v8589_v53  ;;  %4539 = vmatpush1.msra.mxu1 %v8590_v61 }
 0x79b   :  { %4469 = vmatprep.subr.mxu0 %v8591_v57  ;;  %4540 = vmatprep.subr.mxu1 %v8592_v6  ;;  %v8622_v6 = vld [vmem:[#allocation92_spill] sm:$0xff] }
 0x79c   :  { %4470 = vmatpush1.msra.mxu0 %v8593_v50  ;;  %4541 = vmatpush1.msra.mxu1 %v8594_v32 }
 0x79d   :  { %v4966_v22 = vpop.eup %4965  ;;  %4471 = vmatprep.subr.mxu0 %v8595_v55  ;;  %4542 = vmatprep.subr.mxu1 %v8596_v4  ;;  %v8623_v55 = vld [vmem:[#allocation94_spill] sm:$0xff] }
 0x79e   :  { %v4167_v8 = vmul.f32 %v4966_v22, %v4964_v40  ;;  %4472 = vmatpush1.msra.mxu0 %v7423_v5  ;;  %4543 = vmatpush1.msra.mxu1 %v8597_v9  ;;  %v4968_v10 = vpop.eup %4967  ;;  %v8602_v5 = vld [vmem:[#allocation20_spill] sm:$0xff] }
 0x79f   :  { %4473 = vmatprep.subr.mxu0 %v8598_v41  ;;  %4544 = vmatprep.subr.mxu1 %v8599_v18  ;;  %v4166_v47 = vmul.f32 %v4968_v10, %v7464_v58  ;;  %v8604_v58 = vld [vmem:[#allocation114_spill] sm:$0xff]  ;;  %v8624_v10 = vld [vmem:[#allocation93_spill] sm:$0xff] }
 0x7a0   :  { %4474 = vmatpush1.msra.mxu0 %v7435_v56  ;;  %4545 = vmatpush1.msra.mxu1 %v7437_v23  ;;  %v8605_v56 = vld [vmem:[#allocation113_spill] sm:$0xff]  ;;  %v8606_v23 = vld [vmem:[#allocation115_spill] sm:$0xff] }
 0x7a1   :  { %4475 = vmatprep.subr.mxu0 %v8600_v33  ;;  %4546 = vmatprep.subr.mxu1 %v8601_v43  ;;  %v7652_v30 = vadd.f32 %v4167_v8, %v4166_v47 }
 0x7a2   :  { %4476 = vmatpush1.msra.mxu0 %v7447_v1  ;;  %4547 = vmatpush1.msra.mxu1 %v7449_v25  ;;  %v8609_v1 = vld [vmem:[#allocation60_spill] sm:$0xff]  ;;  %v8610_v25 = vld [vmem:[#allocation61_spill] sm:$0xff] }
 0x7a3   :  { %4477 = vmatprep.subr.mxu0 %v8602_v5  ;;  %4548 = vmatprep.subr.mxu1 %v8603_v21  ;;  %4971 = vtanh.f32 %v7652_v30 }
 0x7a4   :  { %4478 = vmatpush1.msra.mxu0 %v8604_v58  ;;  %4549 = vmatpush1.msra.mxu1 %v8605_v56 }
 0x7a5   :  { %4479 = vmatprep.subr.mxu0 %v8606_v23  ;;  %4550 = vmatprep.subr.mxu1 %v8607_v16 }
 0x7a6   :  { %4480 = vmatpush1.msra.mxu0 %v8608_v51  ;;  %4551 = vmatpush1.msra.mxu1 %v8609_v1 }
 0x7a7   :  { %4481 = vmatprep.subr.mxu0 %v8610_v25  ;;  %4552 = vmatprep.subr.mxu1 %v8611_v59 }
 0x7a8   :  { %4482 = vmatpush1.msra.mxu0 %v8612_v11  ;;  %4553 = vmatpush1.msra.mxu1 %v8613_v14 }
 0x7a9   :  { %4483 = vmatprep.subr.mxu0 %v7493_v38  ;;  %4554 = vmatprep.subr.mxu1 %v8614_v31 }
 0x7aa   :  { %4484 = vmatpush1.msra.mxu0 %v7499_v29  ;;  %4555 = vmatpush1.msra.mxu1 %v7501_v36  ;;  %v4970_v29 = vpop.eup %4969 }
 0x7ab   :  { %4485 = vmatprep.subr.mxu0 %v7505_v13  ;;  %4556 = vmatprep.subr.mxu1 %v8615_v54 }
 0x7ac   :  { %4486 = vmatpush1.msra.mxu0 %v8616_v28  ;;  %4557 = vmatpush1.msra.mxu1 %v8617_v42 }
 0x7ad   :  { %4487 = vmatprep.subr.mxu0 %v7517_v24  ;;  %4558 = vmatprep.subr.mxu1 %v7519_v62  ;;  %v8619_v62 = vld [vmem:[#allocation90_spill] sm:$0xff] }
 0x7ae   :  { %4488 = vmatpush1.msra.mxu0 %v7523_v27  ;;  %4521 = vmatprep.mubr.f32.mxu0 %v7991_v3 }
 0x7af   :  { %4559 = vmatpush1.msra.mxu1 %v7527_v46  ;;  %4592 = vmatprep.mubr.f32.mxu1 %v7991_v3  ;;  %v8620_v46 = vld [vmem:[#allocation89_spill] sm:$0xff] }
 0x7b0   :  { %v4972_v38 = vpop.eup %4971 }
 0x7b1   :  { %v4172_v36 = vmul.f32 %v4972_v38, %v4970_v29 }
 0x7b3   :  { %4174 = vst [vmem:[#allocation12 + $0x18] sm:$0xff] %v4172_v36  ;;  %4522 = vmatmul.mubr.f32.vlgmr.msra.gmra.mxu0 %v4172_v36  ;;  %4593 = vmatmul.mubr.f32.vlgmr.msra.gmra.mxu1 %v4172_v36 }
 0x84f   :  { %v4309_v13 = vpop.f32.mrf.mxu0  ;;  %v4380_v34 = vpop.f32.mrf.mxu1 }
 0x850   :  { %v4385_v52 = vadd.f32 %v4309_v13, %v8618_v39  ;;  %v4387_v37 = vadd.f32 %v4380_v34, %v8620_v46 }
 0x851   :  { %v4311_v24 = vpop.f32.mrf.mxu0  ;;  %v4382_v3 = vpop.f32.mrf.mxu1 }
 0x852   :  { %v4728_v48 = vmul.f32 -1.442695, %v4385_v52  ;;  %v4386_v44 = vadd.f32 %v4311_v24, %v8619_v62  ;;  %v4730_v17 = vmul.f32 -1.442695, %v4387_v37  ;;  %v4388_v26 = vadd.f32 %v4382_v3, %v8621_v49 }
 0x854   :  { %4973 = vpow2.f32 %v4728_v48  ;;  %v4729_v27 = vmul.f32 -1.442695, %v4386_v44 }
 0x856   :  { %4975 = vpow2.f32 %v4729_v27 }
 0x857   :  { %4977 = vpow2.f32 %v4730_v17 }
 0x858   :  { %4979 = vtanh.f32 %v4388_v26 }
 0x861   :  { %v4974_v15 = vpop.eup %4973 }
 0x862   :  { %v4612_v2 = vadd.f32 1.0, %v4974_v15 }
 0x863   :  { %v4976_v20 = vpop.eup %4975 }
 0x864   :  { %4981 = vrcp.f32 %v4612_v2  ;;  %v4613_v19 = vadd.f32 1.0, %v4976_v20  ;;  %v4978_v35 = vpop.eup %4977 }
 0x865   :  { %v4980_v60 = vpop.eup %4979  ;;  %v4614_v61 = vadd.f32 1.0, %v4978_v35 }
 0x866   :  { %4983 = vrcp.f32 %v4613_v19 }
 0x867   :  { %4985 = vrcp.f32 %v4614_v61 }
 0x871   :  { %v4982_v63 = vpop.eup %4981 }
 0x872   :  { %v4642_v45 = vmul.f32 %v4982_v63, %v4980_v60 }
 0x873   :  { %v4984_v53 = vpop.eup %4983  ;;  %v4523_v57 = vpop.f32.mrf.mxu0 }
 0x874   :  { %v4641_v0 = vmul.f32 %v4984_v53, %v7609_v7  ;;  %v4599_v40 = vadd.f32 %v4523_v57, %v8622_v6  ;;  %v4594_v9 = vpop.f32.mrf.mxu1  ;;  %v4986_v47 = vpop.eup %4985  ;;  %v8625_v7 = vld [vmem:[#allocation95_spill] sm:$0xff] }
 0x875   :  { %v4525_v32 = vpop.f32.mrf.mxu0  ;;  %v4601_v12 = vadd.f32 %v4594_v9, %v8624_v10 }
 0x876   :  { %v4643_v50 = vadd.f32 %v4642_v45, %v4641_v0  ;;  %v4731_v22 = vmul.f32 -1.442695, %v4599_v40  ;;  %v4600_v4 = vadd.f32 %v4525_v32, %v8623_v55  ;;  %v4596_v41 = vpop.f32.mrf.mxu1 }
 0x877   :  { %v4733_v18 = vmul.f32 -1.442695, %v4601_v12  ;;  %v4602_v33 = vadd.f32 %v4596_v41, %v8625_v7 }
 0x878   :  { %4987 = vtanh.f32 %v4643_v50  ;;  %v4732_v8 = vmul.f32 -1.442695, %v4600_v4 }
 0x879   :  { %4989 = vpow2.f32 %v4731_v22 }
 0x87a   :  { %4991 = vpow2.f32 %v4732_v8 }
 0x87b   :  { %4993 = vpow2.f32 %v4733_v18 }
 0x87c   :  { %4995 = vtanh.f32 %v4602_v33 }
 0x885   :  { %v4988_v43 = vpop.eup %4987 }
 0x886   :  { %v4990_v5 = vpop.eup %4989  ;;  %v4648_v21 = vmul.f32 %v4988_v43, %v4986_v47 }
 0x887   :  { %v4631_v58 = vadd.f32 1.0, %v4990_v5  ;;  %v4992_v56 = vpop.eup %4991 }
 0x888   :  { %4651 = vst [vmem:[#allocation12 + $0x70] sm:$0xff] %v4648_v21  ;;  %v4632_v23 = vadd.f32 1.0, %v4992_v56  ;;  %v4994_v16 = vpop.eup %4993 }
 0x889   :  { %4997 = vrcp.f32 %v4631_v58  ;;  %v4996_v51 = vpop.eup %4995  ;;  %v4633_v11 = vadd.f32 1.0, %v4994_v16 }
 0x88a   :  { %4999 = vrcp.f32 %v4632_v23 }
 0x88b   :  { %5001 = vrcp.f32 %v4633_v11 }
 0x896   :  { %v4998_v1 = vpop.eup %4997 }
 0x897   :  { %v4645_v25 = vmul.f32 %v4998_v1, %v4996_v51  ;;  %v5000_v59 = vpop.eup %4999 }
 0x898   :  { %v4644_v14 = vmul.f32 %v5000_v59, %v7652_v30  ;;  %v5002_v54 = vpop.eup %5001 }
 0x89a   :  { %v4646_v31 = vadd.f32 %v4645_v25, %v4644_v14 }
 0x89c   :  { %5003 = vtanh.f32 %v4646_v31 }
 0x8a9   :  { %v5004_v28 = vpop.eup %5003 }
 0x8aa   :  { %v4650_v42 = vmul.f32 %v5004_v28, %v5002_v54 }
 0x8ac   :  { %4652 = vst [vmem:[#allocation12 + $0x8] sm:$0xff] %v4650_v42 }
 0x8ad   :  { %5116 = shalt.err (!%p5113_p1)
}
 0x8ae   :  { %s5146_s22 = smov 256   ;;  %s5147_s23 = smov 16  }
 0x8af   :  { %4664 = dma.vmem_to_hbm [thread:$0]  %s4659_s4, 2048, %s7701_s5, [#allocation5], %s5146_s22, %s5146_s22, %s5147_s23  }
 0x8b0   :  { %5131 = dma.done.wait [#allocation5], 2048  }
 0x8b1   :  { %5132 = vsyncadd [#allocation5], 4294965248 }
 0x8b2   :  { %4668 = vsyncpa [#allocation4], 1 }
 0x8b3   :  { %4669 = vsyncpa [#allocation7], 1 }
 0x8b4   :  { %4670 = vsyncpa [#allocation10], 1 }
 0x8b5   :  { %4671 = vsyncpa [#allocation5], 1 }

</bundles_post_ra>
